<compile_context>
chip_gen: v7x
topology: tpu7x:2x2x1
jax: 0.10.0
libtpu: 0.0.40
codegen_flags: <defaults>
</compile_context>

<pallas_src>
import functools

import jax
import jax.numpy as jnp
import numpy as np
from jax import lax
from jax.experimental import pallas as pl
from jax.experimental.pallas import tpu as pltpu

AXIS = 3
C_IN = 7 * AXIS          # 21 conv input channels
L_IN = 36                # conv input length (2*18 -> LSTM input_size == 18)
C_OUT = 128              # conv output channels == LSTM sequence length
L_POOL = L_IN // 2       # 18 == LSTM input_size
HID = 128                # LSTM hidden size
NGATE = 4 * HID          # 512 gates (i, f, g, o)
NCLS = 5                 # classifier outputs
GROUP = 8                # sublane tile == static inner unroll of the recurrence


def _mm(a, b):
    return jnp.dot(a, b, preferred_element_type=jnp.float32)


def _forward_kernel(x_stk_ref, wc_ref, bc_ref, wih_t_ref, whh_t_ref,
                    lstm_b_ref, wfc_t_ref, bfc_ref, out_ref, xproj_ref, *, batch):
    """Whole forward pass, single kernel invocation (no grid; everything in VMEM)."""
    wc = wc_ref[...]            # (C_OUT, C_IN)   bf16 conv weight (k=1 squeezed)
    bc = bc_ref[...]            # (C_OUT, 1)      f32
    wih_t = wih_t_ref[...]      # (L_POOL, NGATE) bf16 == W_ih.T
    whh_t = whh_t_ref[...]      # (HID,   NGATE)  bf16 == W_hh.T, loop-invariant RHS
    lstm_b = lstm_b_ref[...]    # (1, NGATE)      f32  == b_ih + b_hh
    wfc_t = wfc_t_ref[...]      # (HID, NCLS)     f32
    bfc = bfc_ref[...]          # (1, NCLS)       f32

    # ---- Stage 1 (one-time, before the recurrence):
    # x_stk columns are [even | odd] blocks, one lane-tile (128 cols, first 18
    # valid) per sample, so every slice below starts on a 128-lane boundary.
    half = batch * C_OUT
    conv = jnp.maximum(_mm(wc, x_stk_ref[...]) + bc, 0.0)        # (C_OUT, 2*B*C_OUT) f32
    pooled = jnp.maximum(conv[:, :half], conv[:, half:])         # (C_OUT, B*C_OUT)  MaxPool1d(2,2)
    # b-major stack of per-sample (seq=128, feat=18) blocks -> one projection matmul.
    pooled_bmaj = jnp.concatenate(
        [pooled[:, b * C_OUT: b * C_OUT + L_POOL] for b in range(batch)],
        axis=0)                                                   # (B*C_OUT, L_POOL), row b*128 + t
    # Gate pre-activations (x @ W_ih.T + b_ih + b_hh) for all (b, t), contiguous store.
    xproj_ref[...] = _mm(pooled_bmaj.astype(jnp.bfloat16), wih_t) + lstm_b   # (B*C_OUT, NGATE) f32

    # ---- Stage 2: batch-fused LSTM recurrence over 128 steps (h0 = c0 = 0).
    # 16 groups x 8 steps: aligned slab loads per group, static row-slices per step.
    def group_step(g, carry):
        h, c = carry                                              # (B, HID) f32 each
        slabs = [
            xproj_ref[pl.ds(pl.multiple_of(g * GROUP + b * C_OUT, GROUP), GROUP), :]
            for b in range(batch)
        ]                                                         # each (GROUP, NGATE) f32, aligned
        for j in range(GROUP):
            xs = jnp.concatenate([s[j:j + 1, :] for s in slabs], axis=0)   # (B, NGATE)
            gates = xs + jnp.dot(h.astype(jnp.bfloat16), whh_t,
                                 preferred_element_type=jnp.float32)
            i = jax.nn.sigmoid(gates[:, 0 * HID:1 * HID])
            f = jax.nn.sigmoid(gates[:, 1 * HID:2 * HID])
            gg = jnp.tanh(gates[:, 2 * HID:3 * HID])
            o = jax.nn.sigmoid(gates[:, 3 * HID:4 * HID])
            c = f * c + i * gg
            h = o * jnp.tanh(c)
        return (h, c)

    h0 = jnp.zeros((batch, HID), jnp.float32)
    c0 = jnp.zeros((batch, HID), jnp.float32)
    h_last, _ = lax.fori_loop(0, C_OUT // GROUP, group_step, (h0, c0))

    # ---- Classifier on last-step hidden state (== r_out[:, -1, :]).
    out_ref[...] = _mm(h_last, wfc_t) + bfc


def init_params(key):
    ks = jax.random.split(key, 8)

    def u(k, shape, bound):
        return jax.random.uniform(k, shape, jnp.float32, -bound, bound)

    kc = 1.0 / np.sqrt(C_IN)    # PyTorch Conv1d default bound (fan_in = C_IN * 1)
    kl = 1.0 / np.sqrt(HID)     # PyTorch LSTM default bound
    kf = 1.0 / np.sqrt(HID)     # PyTorch Linear default bound
    return dict(
        wc=u(ks[0], (C_OUT, C_IN), kc),
        bc=u(ks[1], (C_OUT,), kc),
        wih=u(ks[2], (NGATE, L_POOL), kl),
        whh=u(ks[3], (NGATE, HID), kl),
        bih=u(ks[4], (NGATE,), kl),
        bhh=u(ks[5], (NGATE,), kl),
        wfc=u(ks[6], (NCLS, HID), kf),
        bfc=u(ks[7], (NCLS,), kf),
    )


@jax.jit
def multi_conv_lstm_forward(x, params):
    B = x.shape[0]
    # Glue (all plain XLA): even/odd length split so MaxPool1d(2,2) becomes an
    # elementwise max (the conv is pointwise, so it commutes with the split),
    # stacked batch-on-lanes with per-sample lane-tile padding (18 -> 128) so
    # every in-kernel slice is 128-lane aligned.
    xe = x[:, :, 0::2]                                   # (B, C_IN, L_POOL)
    xo = x[:, :, 1::2]                                   # (B, C_IN, L_POOL)
    x_eo = jnp.concatenate([xe, xo], axis=0)             # (2B, C_IN, L_POOL)
    x_eo = jnp.pad(x_eo, ((0, 0), (0, 0), (0, C_OUT - L_POOL)))   # (2B, C_IN, 128)
    x_stk = jnp.transpose(x_eo, (1, 0, 2)).reshape(C_IN, 2 * B * C_OUT)
    x_stk = x_stk.astype(jnp.bfloat16)                   # (C_IN, 2*B*128)

    wc = params["wc"].astype(jnp.bfloat16)               # (C_OUT, C_IN)
    bc = params["bc"].reshape(C_OUT, 1)
    wih_t = params["wih"].T.astype(jnp.bfloat16)         # (L_POOL, NGATE)
    whh_t = params["whh"].T.astype(jnp.bfloat16)         # (HID, NGATE), MXU operand
    lstm_b = (params["bih"] + params["bhh"]).reshape(1, NGATE)
    wfc_t = params["wfc"].T                              # (HID, NCLS)
    bfc = params["bfc"].reshape(1, NCLS)

    kernel = functools.partial(_forward_kernel, batch=B)
    vmem = pl.BlockSpec(memory_space=pltpu.MemorySpace.VMEM)
    return pl.pallas_call(
        kernel,
        out_shape=jax.ShapeDtypeStruct((B, NCLS), jnp.float32),
        in_specs=[vmem] * 8,
        out_specs=vmem,
        scratch_shapes=[pltpu.VMEM((B * C_OUT, NGATE), jnp.float32)],
    )(x_stk, wc, bc, wih_t, whh_t, lstm_b, wfc_t, bfc)


def reference_forward(x, params):
    """Pure-JAX (f32) reference mirroring the PyTorch forward."""
    B = x.shape[0]
    conv = jnp.einsum("oc,bcl->bol", params["wc"], x) + params["bc"][None, :, None]
    conv = jnp.maximum(conv, 0.0)                                  # ReLU
    pooled = jnp.max(conv.reshape(B, C_OUT, L_POOL, 2), axis=-1)   # MaxPool1d(2,2)

    wih, whh = params["wih"], params["whh"]
    bih, bhh = params["bih"], params["bhh"]

    def step(carry, xt):
        h, c = carry
        gates = xt @ wih.T + bih + h @ whh.T + bhh
        i = jax.nn.sigmoid(gates[:, 0 * HID:1 * HID])
        f = jax.nn.sigmoid(gates[:, 1 * HID:2 * HID])
        g = jnp.tanh(gates[:, 2 * HID:3 * HID])
        o = jax.nn.sigmoid(gates[:, 3 * HID:4 * HID])
        c = f * c + i * g
        h = o * jnp.tanh(c)
        return (h, c), None

    xs = jnp.transpose(pooled, (1, 0, 2))            # (seq, B, feat)
    (h, _), _ = jax.lax.scan(
        step, (jnp.zeros((B, HID), jnp.float32), jnp.zeros((B, HID), jnp.float32)), xs)
    return h @ params["wfc"].T + params["bfc"]


if __name__ == "__main__":
    B = 2
    key = jax.random.PRNGKey(0)
    kx, kp = jax.random.split(key)
    x = jax.random.normal(kx, (B, C_IN, L_IN), jnp.float32)   # (2, 21, 36)
    params = init_params(kp)

    out = multi_conv_lstm_forward(x, params)
    out = jax.block_until_ready(out)

    ref = reference_forward(x, params)
    assert out.shape == (B, NCLS)
    # Tolerance 2e-2: conv + projection + the 128-step recurrent matmul all run
    # on the bf16 MXU path (f32 accumulate); observed end-to-end error is a few
    # 1e-3 against the f32 reference.
    assert np.allclose(np.asarray(out), np.asarray(ref), rtol=2e-2, atol=2e-2), (out, ref)
    print("KERNEL_OK")
</pallas_src>

<mosaic_0001>
module attributes {stable_mosaic.version = 11 : i64} {
  func.func @_forward_kernel(%arg0: memref<21x512xbf16, #tpu.memory_space<vmem>>, %arg1: memref<128x21xbf16, #tpu.memory_space<vmem>>, %arg2: memref<128x1xf32, #tpu.memory_space<vmem>>, %arg3: memref<18x512xbf16, #tpu.memory_space<vmem>>, %arg4: memref<128x512xbf16, #tpu.memory_space<vmem>>, %arg5: memref<1x512xf32, #tpu.memory_space<vmem>>, %arg6: memref<128x5xf32, #tpu.memory_space<vmem>>, %arg7: memref<1x5xf32, #tpu.memory_space<vmem>>, %arg8: memref<2x5xf32, #tpu.memory_space<vmem>>, %arg9: memref<256x512xf32, #tpu.memory_space<vmem>>) attributes {dimension_semantics = [], scalar_prefetch = 0 : i64, scratch_operands = 1 : i64, tpu.core_type = #tpu.core_type<tc>} {
    %c0 = arith.constant 0 : index
    %c0_0 = arith.constant 0 : index
    %0 = vector.load %arg1[%c0, %c0_0] : memref<128x21xbf16, #tpu.memory_space<vmem>>, vector<128x21xbf16>
    %c0_1 = arith.constant 0 : index
    %c0_2 = arith.constant 0 : index
    %1 = vector.load %arg2[%c0_1, %c0_2] : memref<128x1xf32, #tpu.memory_space<vmem>>, vector<128x1xf32>
    %c0_3 = arith.constant 0 : index
    %c0_4 = arith.constant 0 : index
    %2 = vector.load %arg3[%c0_3, %c0_4] : memref<18x512xbf16, #tpu.memory_space<vmem>>, vector<18x512xbf16>
    %c0_5 = arith.constant 0 : index
    %c0_6 = arith.constant 0 : index
    %3 = vector.load %arg4[%c0_5, %c0_6] : memref<128x512xbf16, #tpu.memory_space<vmem>>, vector<128x512xbf16>
    %c0_7 = arith.constant 0 : index
    %c0_8 = arith.constant 0 : index
    %4 = vector.load %arg5[%c0_7, %c0_8] : memref<1x512xf32, #tpu.memory_space<vmem>>, vector<1x512xf32>
    %c0_9 = arith.constant 0 : index
    %c0_10 = arith.constant 0 : index
    %5 = vector.load %arg6[%c0_9, %c0_10] : memref<128x5xf32, #tpu.memory_space<vmem>>, vector<128x5xf32>
    %c0_11 = arith.constant 0 : index
    %c0_12 = arith.constant 0 : index
    %6 = vector.load %arg7[%c0_11, %c0_12] : memref<1x5xf32, #tpu.memory_space<vmem>>, vector<1x5xf32>
    %c0_13 = arith.constant 0 : index
    %c0_14 = arith.constant 0 : index
    %7 = vector.load %arg0[%c0_13, %c0_14] : memref<21x512xbf16, #tpu.memory_space<vmem>>, vector<21x512xbf16>
    %cst = arith.constant dense<0.000000e+00> : vector<128x512xf32>
    %8 = tpu.matmul %0, %7, %cst {dimension_numbers = #tpu.dot_dimension_numbers<[1], [0], [0], [1], [0, 0, 1, 1], [], []>} : vector<128x21xbf16>, vector<21x512xbf16>, vector<128x512xf32> -> vector<128x512xf32>
    %9 = vector.broadcast %1 : vector<128x1xf32> to vector<128x512xf32>
    %10 = arith.addf %8, %9 : vector<128x512xf32>
    %cst_15 = arith.constant 0.000000e+00 : f32
    %11 = vector.broadcast %cst_15 : f32 to vector<128x512xf32>
    %12 = arith.maximumf %10, %11 : vector<128x512xf32>
    %13 = vector.extract_strided_slice %12 {offsets = [0, 0], sizes = [128, 256], strides = [1, 1]} : vector<128x512xf32> to vector<128x256xf32>
    %14 = vector.extract_strided_slice %12 {offsets = [0, 256], sizes = [128, 256], strides = [1, 1]} : vector<128x512xf32> to vector<128x256xf32>
    %15 = arith.maximumf %13, %14 : vector<128x256xf32>
    %16 = vector.extract_strided_slice %15 {offsets = [0, 0], sizes = [128, 18], strides = [1, 1]} : vector<128x256xf32> to vector<128x18xf32>
    %17 = vector.extract_strided_slice %15 {offsets = [0, 128], sizes = [128, 18], strides = [1, 1]} : vector<128x256xf32> to vector<128x18xf32>
    %18 = tpu.concatenate %16, %17 in 0 : vector<128x18xf32>, vector<128x18xf32> -> vector<256x18xf32>
    %19 = arith.truncf %18 : vector<256x18xf32> to vector<256x18xbf16>
    %cst_16 = arith.constant dense<0.000000e+00> : vector<256x512xf32>
    %20 = tpu.matmul %19, %2, %cst_16 {dimension_numbers = #tpu.dot_dimension_numbers<[1], [0], [0], [1], [0, 0, 1, 1], [], []>} : vector<256x18xbf16>, vector<18x512xbf16>, vector<256x512xf32> -> vector<256x512xf32>
    %21 = vector.broadcast %4 : vector<1x512xf32> to vector<256x512xf32>
    %22 = arith.addf %20, %21 : vector<256x512xf32>
    %c0_17 = arith.constant 0 : index
    %c0_18 = arith.constant 0 : index
    %23 = vector.load %arg9[%c0_17, %c0_18] : memref<256x512xf32, #tpu.memory_space<vmem>>, vector<256x512xf32>
    tpu.vector_store %arg9[%c0_17, %c0_18], %22 {strides = array<i32>} : memref<256x512xf32, #tpu.memory_space<vmem>>, vector<256x512xf32>,
    %cst_19 = arith.constant 0.000000e+00 : f32
    %24 = vector.broadcast %cst_19 : f32 to vector<2x128xf32>
    %cst_20 = arith.constant 0.000000e+00 : f32
    %25 = vector.broadcast %cst_20 : f32 to vector<2x128xf32>
    %c0_i32 = arith.constant 0 : i32
    %c16_i32 = arith.constant 16 : i32
    %26 = arith.addi %c0_i32, %c16_i32 : i32
    %c1_i32 = arith.constant 1 : i32
    %27:2 = scf.for %arg10 = %c0_i32 to %26 step %c1_i32 iter_args(%arg11 = %24, %arg12 = %25) -> (vector<2x128xf32>, vector<2x128xf32>)  : i32 {
      %c8_i32 = arith.constant 8 : i32
      %32 = arith.muli %arg10, %c8_i32 : i32
      %c0_i32_25 = arith.constant 0 : i32
      %33 = arith.addi %32, %c0_i32_25 : i32
      %34 = tpu.assume_multiple %33, 8 : i32
      %35 = arith.index_cast %34 : i32 to index
      %c0_26 = arith.constant 0 : index
      %36 = vector.load %arg9[%35, %c0_26] : memref<256x512xf32, #tpu.memory_space<vmem>>, vector<8x512xf32>
      %c8_i32_27 = arith.constant 8 : i32
      %37 = arith.muli %arg10, %c8_i32_27 : i32
      %c128_i32 = arith.constant 128 : i32
      %38 = arith.addi %37, %c128_i32 : i32
      %39 = tpu.assume_multiple %38, 8 : i32
      %40 = arith.index_cast %39 : i32 to index
      %c0_28 = arith.constant 0 : index
      %41 = vector.load %arg9[%40, %c0_28] : memref<256x512xf32, #tpu.memory_space<vmem>>, vector<8x512xf32>
      %42 = vector.extract_strided_slice %36 {offsets = [0, 0], sizes = [1, 512], strides = [1, 1]} : vector<8x512xf32> to vector<1x512xf32>
      %43 = vector.extract_strided_slice %41 {offsets = [0, 0], sizes = [1, 512], strides = [1, 1]} : vector<8x512xf32> to vector<1x512xf32>
      %44 = tpu.concatenate %42, %43 in 0 : vector<1x512xf32>, vector<1x512xf32> -> vector<2x512xf32>
      %45 = arith.truncf %arg11 : vector<2x128xf32> to vector<2x128xbf16>
      %cst_29 = arith.constant dense<0.000000e+00> : vector<2x512xf32>
      %46 = tpu.matmul %45, %3, %cst_29 {dimension_numbers = #tpu.dot_dimension_numbers<[1], [0], [0], [1], [0, 0, 1, 1], [], []>} : vector<2x128xbf16>, vector<128x512xbf16>, vector<2x512xf32> -> vector<2x512xf32>
      %47 = arith.addf %44, %46 : vector<2x512xf32>
      %48 = vector.extract_strided_slice %47 {offsets = [0, 0], sizes = [2, 128], strides = [1, 1]} : vector<2x512xf32> to vector<2x128xf32>
      %49 = arith.negf %48 : vector<2x128xf32>
      %50 = math.exp %49 : vector<2x128xf32>
      %cst_30 = arith.constant 1.000000e+00 : f32
      %51 = vector.broadcast %cst_30 : f32 to vector<2x128xf32>
      %52 = arith.addf %51, %50 : vector<2x128xf32>
      %53 = arith.divf %51, %52 : vector<2x128xf32>
      %54 = vector.extract_strided_slice %47 {offsets = [0, 128], sizes = [2, 128], strides = [1, 1]} : vector<2x512xf32> to vector<2x128xf32>
      %55 = arith.negf %54 : vector<2x128xf32>
      %56 = math.exp %55 : vector<2x128xf32>
      %cst_31 = arith.constant 1.000000e+00 : f32
      %57 = vector.broadcast %cst_31 : f32 to vector<2x128xf32>
      %58 = arith.addf %57, %56 : vector<2x128xf32>
      %59 = arith.divf %57, %58 : vector<2x128xf32>
      %60 = vector.extract_strided_slice %47 {offsets = [0, 256], sizes = [2, 128], strides = [1, 1]} : vector<2x512xf32> to vector<2x128xf32>
      %61 = math.tanh %60 : vector<2x128xf32>
      %62 = vector.extract_strided_slice %47 {offsets = [0, 384], sizes = [2, 128], strides = [1, 1]} : vector<2x512xf32> to vector<2x128xf32>
      %63 = arith.negf %62 : vector<2x128xf32>
      %64 = math.exp %63 : vector<2x128xf32>
      %cst_32 = arith.constant 1.000000e+00 : f32
      %65 = vector.broadcast %cst_32 : f32 to vector<2x128xf32>
      %66 = arith.addf %65, %64 : vector<2x128xf32>
      %67 = arith.divf %65, %66 : vector<2x128xf32>
      %68 = arith.mulf %59, %arg12 : vector<2x128xf32>
      %69 = arith.mulf %53, %61 : vector<2x128xf32>
      %70 = arith.addf %68, %69 : vector<2x128xf32>
      %71 = math.tanh %70 : vector<2x128xf32>
      %72 = arith.mulf %67, %71 : vector<2x128xf32>
      %73 = vector.extract_strided_slice %36 {offsets = [1, 0], sizes = [1, 512], strides = [1, 1]} : vector<8x512xf32> to vector<1x512xf32>
      %74 = vector.extract_strided_slice %41 {offsets = [1, 0], sizes = [1, 512], strides = [1, 1]} : vector<8x512xf32> to vector<1x512xf32>
      %75 = tpu.concatenate %73, %74 in 0 : vector<1x512xf32>, vector<1x512xf32> -> vector<2x512xf32>
      %76 = arith.truncf %72 : vector<2x128xf32> to vector<2x128xbf16>
      %cst_33 = arith.constant dense<0.000000e+00> : vector<2x512xf32>
      %77 = tpu.matmul %76, %3, %cst_33 {dimension_numbers = #tpu.dot_dimension_numbers<[1], [0], [0], [1], [0, 0, 1, 1], [], []>} : vector<2x128xbf16>, vector<128x512xbf16>, vector<2x512xf32> -> vector<2x512xf32>
      %78 = arith.addf %75, %77 : vector<2x512xf32>
      %79 = vector.extract_strided_slice %78 {offsets = [0, 0], sizes = [2, 128], strides = [1, 1]} : vector<2x512xf32> to vector<2x128xf32>
      %80 = arith.negf %79 : vector<2x128xf32>
      %81 = math.exp %80 : vector<2x128xf32>
      %cst_34 = arith.constant 1.000000e+00 : f32
      %82 = vector.broadcast %cst_34 : f32 to vector<2x128xf32>
      %83 = arith.addf %82, %81 : vector<2x128xf32>
      %84 = arith.divf %82, %83 : vector<2x128xf32>
      %85 = vector.extract_strided_slice %78 {offsets = [0, 128], sizes = [2, 128], strides = [1, 1]} : vector<2x512xf32> to vector<2x128xf32>
      %86 = arith.negf %85 : vector<2x128xf32>
      %87 = math.exp %86 : vector<2x128xf32>
      %cst_35 = arith.constant 1.000000e+00 : f32
      %88 = vector.broadcast %cst_35 : f32 to vector<2x128xf32>
      %89 = arith.addf %88, %87 : vector<2x128xf32>
      %90 = arith.divf %88, %89 : vector<2x128xf32>
      %91 = vector.extract_strided_slice %78 {offsets = [0, 256], sizes = [2, 128], strides = [1, 1]} : vector<2x512xf32> to vector<2x128xf32>
      %92 = math.tanh %91 : vector<2x128xf32>
      %93 = vector.extract_strided_slice %78 {offsets = [0, 384], sizes = [2, 128], strides = [1, 1]} : vector<2x512xf32> to vector<2x128xf32>
      %94 = arith.negf %93 : vector<2x128xf32>
      %95 = math.exp %94 : vector<2x128xf32>
      %cst_36 = arith.constant 1.000000e+00 : f32
      %96 = vector.broadcast %cst_36 : f32 to vector<2x128xf32>
      %97 = arith.addf %96, %95 : vector<2x128xf32>
      %98 = arith.divf %96, %97 : vector<2x128xf32>
      %99 = arith.mulf %90, %70 : vector<2x128xf32>
      %100 = arith.mulf %84, %92 : vector<2x128xf32>
      %101 = arith.addf %99, %100 : vector<2x128xf32>
      %102 = math.tanh %101 : vector<2x128xf32>
      %103 = arith.mulf %98, %102 : vector<2x128xf32>
      %104 = vector.extract_strided_slice %36 {offsets = [2, 0], sizes = [1, 512], strides = [1, 1]} : vector<8x512xf32> to vector<1x512xf32>
      %105 = vector.extract_strided_slice %41 {offsets = [2, 0], sizes = [1, 512], strides = [1, 1]} : vector<8x512xf32> to vector<1x512xf32>
      %106 = tpu.concatenate %104, %105 in 0 : vector<1x512xf32>, vector<1x512xf32> -> vector<2x512xf32>
      %107 = arith.truncf %103 : vector<2x128xf32> to vector<2x128xbf16>
      %cst_37 = arith.constant dense<0.000000e+00> : vector<2x512xf32>
      %108 = tpu.matmul %107, %3, %cst_37 {dimension_numbers = #tpu.dot_dimension_numbers<[1], [0], [0], [1], [0, 0, 1, 1], [], []>} : vector<2x128xbf16>, vector<128x512xbf16>, vector<2x512xf32> -> vector<2x512xf32>
      %109 = arith.addf %106, %108 : vector<2x512xf32>
      %110 = vector.extract_strided_slice %109 {offsets = [0, 0], sizes = [2, 128], strides = [1, 1]} : vector<2x512xf32> to vector<2x128xf32>
      %111 = arith.negf %110 : vector<2x128xf32>
      %112 = math.exp %111 : vector<2x128xf32>
      %cst_38 = arith.constant 1.000000e+00 : f32
      %113 = vector.broadcast %cst_38 : f32 to vector<2x128xf32>
      %114 = arith.addf %113, %112 : vector<2x128xf32>
      %115 = arith.divf %113, %114 : vector<2x128xf32>
      %116 = vector.extract_strided_slice %109 {offsets = [0, 128], sizes = [2, 128], strides = [1, 1]} : vector<2x512xf32> to vector<2x128xf32>
      %117 = arith.negf %116 : vector<2x128xf32>
      %118 = math.exp %117 : vector<2x128xf32>
      %cst_39 = arith.constant 1.000000e+00 : f32
      %119 = vector.broadcast %cst_39 : f32 to vector<2x128xf32>
      %120 = arith.addf %119, %118 : vector<2x128xf32>
      %121 = arith.divf %119, %120 : vector<2x128xf32>
      %122 = vector.extract_strided_slice %109 {offsets = [0, 256], sizes = [2, 128], strides = [1, 1]} : vector<2x512xf32> to vector<2x128xf32>
      %123 = math.tanh %122 : vector<2x128xf32>
      %124 = vector.extract_strided_slice %109 {offsets = [0, 384], sizes = [2, 128], strides = [1, 1]} : vector<2x512xf32> to vector<2x128xf32>
      %125 = arith.negf %124 : vector<2x128xf32>
      %126 = math.exp %125 : vector<2x128xf32>
      %cst_40 = arith.constant 1.000000e+00 : f32
      %127 = vector.broadcast %cst_40 : f32 to vector<2x128xf32>
      %128 = arith.addf %127, %126 : vector<2x128xf32>
      %129 = arith.divf %127, %128 : vector<2x128xf32>
      %130 = arith.mulf %121, %101 : vector<2x128xf32>
      %131 = arith.mulf %115, %123 : vector<2x128xf32>
      %132 = arith.addf %130, %131 : vector<2x128xf32>
      %133 = math.tanh %132 : vector<2x128xf32>
      %134 = arith.mulf %129, %133 : vector<2x128xf32>
      %135 = vector.extract_strided_slice %36 {offsets = [3, 0], sizes = [1, 512], strides = [1, 1]} : vector<8x512xf32> to vector<1x512xf32>
      %136 = vector.extract_strided_slice %41 {offsets = [3, 0], sizes = [1, 512], strides = [1, 1]} : vector<8x512xf32> to vector<1x512xf32>
      %137 = tpu.concatenate %135, %136 in 0 : vector<1x512xf32>, vector<1x512xf32> -> vector<2x512xf32>
      %138 = arith.truncf %134 : vector<2x128xf32> to vector<2x128xbf16>
      %cst_41 = arith.constant dense<0.000000e+00> : vector<2x512xf32>
      %139 = tpu.matmul %138, %3, %cst_41 {dimension_numbers = #tpu.dot_dimension_numbers<[1], [0], [0], [1], [0, 0, 1, 1], [], []>} : vector<2x128xbf16>, vector<128x512xbf16>, vector<2x512xf32> -> vector<2x512xf32>
      %140 = arith.addf %137, %139 : vector<2x512xf32>
      %141 = vector.extract_strided_slice %140 {offsets = [0, 0], sizes = [2, 128], strides = [1, 1]} : vector<2x512xf32> to vector<2x128xf32>
      %142 = arith.negf %141 : vector<2x128xf32>
      %143 = math.exp %142 : vector<2x128xf32>
      %cst_42 = arith.constant 1.000000e+00 : f32
      %144 = vector.broadcast %cst_42 : f32 to vector<2x128xf32>
      %145 = arith.addf %144, %143 : vector<2x128xf32>
      %146 = arith.divf %144, %145 : vector<2x128xf32>
      %147 = vector.extract_strided_slice %140 {offsets = [0, 128], sizes = [2, 128], strides = [1, 1]} : vector<2x512xf32> to vector<2x128xf32>
      %148 = arith.negf %147 : vector<2x128xf32>
      %149 = math.exp %148 : vector<2x128xf32>
      %cst_43 = arith.constant 1.000000e+00 : f32
      %150 = vector.broadcast %cst_43 : f32 to vector<2x128xf32>
      %151 = arith.addf %150, %149 : vector<2x128xf32>
      %152 = arith.divf %150, %151 : vector<2x128xf32>
      %153 = vector.extract_strided_slice %140 {offsets = [0, 256], sizes = [2, 128], strides = [1, 1]} : vector<2x512xf32> to vector<2x128xf32>
      %154 = math.tanh %153 : vector<2x128xf32>
      %155 = vector.extract_strided_slice %140 {offsets = [0, 384], sizes = [2, 128], strides = [1, 1]} : vector<2x512xf32> to vector<2x128xf32>
      %156 = arith.negf %155 : vector<2x128xf32>
      %157 = math.exp %156 : vector<2x128xf32>
      %cst_44 = arith.constant 1.000000e+00 : f32
      %158 = vector.broadcast %cst_44 : f32 to vector<2x128xf32>
      %159 = arith.addf %158, %157 : vector<2x128xf32>
      %160 = arith.divf %158, %159 : vector<2x128xf32>
      %161 = arith.mulf %152, %132 : vector<2x128xf32>
      %162 = arith.mulf %146, %154 : vector<2x128xf32>
      %163 = arith.addf %161, %162 : vector<2x128xf32>
      %164 = math.tanh %163 : vector<2x128xf32>
      %165 = arith.mulf %160, %164 : vector<2x128xf32>
      %166 = vector.extract_strided_slice %36 {offsets = [4, 0], sizes = [1, 512], strides = [1, 1]} : vector<8x512xf32> to vector<1x512xf32>
      %167 = vector.extract_strided_slice %41 {offsets = [4, 0], sizes = [1, 512], strides = [1, 1]} : vector<8x512xf32> to vector<1x512xf32>
      %168 = tpu.concatenate %166, %167 in 0 : vector<1x512xf32>, vector<1x512xf32> -> vector<2x512xf32>
      %169 = arith.truncf %165 : vector<2x128xf32> to vector<2x128xbf16>
      %cst_45 = arith.constant dense<0.000000e+00> : vector<2x512xf32>
      %170 = tpu.matmul %169, %3, %cst_45 {dimension_numbers = #tpu.dot_dimension_numbers<[1], [0], [0], [1], [0, 0, 1, 1], [], []>} : vector<2x128xbf16>, vector<128x512xbf16>, vector<2x512xf32> -> vector<2x512xf32>
      %171 = arith.addf %168, %170 : vector<2x512xf32>
      %172 = vector.extract_strided_slice %171 {offsets = [0, 0], sizes = [2, 128], strides = [1, 1]} : vector<2x512xf32> to vector<2x128xf32>
      %173 = arith.negf %172 : vector<2x128xf32>
      %174 = math.exp %173 : vector<2x128xf32>
      %cst_46 = arith.constant 1.000000e+00 : f32
      %175 = vector.broadcast %cst_46 : f32 to vector<2x128xf32>
      %176 = arith.addf %175, %174 : vector<2x128xf32>
      %177 = arith.divf %175, %176 : vector<2x128xf32>
      %178 = vector.extract_strided_slice %171 {offsets = [0, 128], sizes = [2, 128], strides = [1, 1]} : vector<2x512xf32> to vector<2x128xf32>
      %179 = arith.negf %178 : vector<2x128xf32>
      %180 = math.exp %179 : vector<2x128xf32>
      %cst_47 = arith.constant 1.000000e+00 : f32
      %181 = vector.broadcast %cst_47 : f32 to vector<2x128xf32>
      %182 = arith.addf %181, %180 : vector<2x128xf32>
      %183 = arith.divf %181, %182 : vector<2x128xf32>
      %184 = vector.extract_strided_slice %171 {offsets = [0, 256], sizes = [2, 128], strides = [1, 1]} : vector<2x512xf32> to vector<2x128xf32>
      %185 = math.tanh %184 : vector<2x128xf32>
      %186 = vector.extract_strided_slice %171 {offsets = [0, 384], sizes = [2, 128], strides = [1, 1]} : vector<2x512xf32> to vector<2x128xf32>
      %187 = arith.negf %186 : vector<2x128xf32>
      %188 = math.exp %187 : vector<2x128xf32>
      %cst_48 = arith.constant 1.000000e+00 : f32
      %189 = vector.broadcast %cst_48 : f32 to vector<2x128xf32>
      %190 = arith.addf %189, %188 : vector<2x128xf32>
      %191 = arith.divf %189, %190 : vector<2x128xf32>
      %192 = arith.mulf %183, %163 : vector<2x128xf32>
      %193 = arith.mulf %177, %185 : vector<2x128xf32>
      %194 = arith.addf %192, %193 : vector<2x128xf32>
      %195 = math.tanh %194 : vector<2x128xf32>
      %196 = arith.mulf %191, %195 : vector<2x128xf32>
      %197 = vector.extract_strided_slice %36 {offsets = [5, 0], sizes = [1, 512], strides = [1, 1]} : vector<8x512xf32> to vector<1x512xf32>
      %198 = vector.extract_strided_slice %41 {offsets = [5, 0], sizes = [1, 512], strides = [1, 1]} : vector<8x512xf32> to vector<1x512xf32>
      %199 = tpu.concatenate %197, %198 in 0 : vector<1x512xf32>, vector<1x512xf32> -> vector<2x512xf32>
      %200 = arith.truncf %196 : vector<2x128xf32> to vector<2x128xbf16>
      %cst_49 = arith.constant dense<0.000000e+00> : vector<2x512xf32>
      %201 = tpu.matmul %200, %3, %cst_49 {dimension_numbers = #tpu.dot_dimension_numbers<[1], [0], [0], [1], [0, 0, 1, 1], [], []>} : vector<2x128xbf16>, vector<128x512xbf16>, vector<2x512xf32> -> vector<2x512xf32>
      %202 = arith.addf %199, %201 : vector<2x512xf32>
      %203 = vector.extract_strided_slice %202 {offsets = [0, 0], sizes = [2, 128], strides = [1, 1]} : vector<2x512xf32> to vector<2x128xf32>
      %204 = arith.negf %203 : vector<2x128xf32>
      %205 = math.exp %204 : vector<2x128xf32>
      %cst_50 = arith.constant 1.000000e+00 : f32
      %206 = vector.broadcast %cst_50 : f32 to vector<2x128xf32>
      %207 = arith.addf %206, %205 : vector<2x128xf32>
      %208 = arith.divf %206, %207 : vector<2x128xf32>
      %209 = vector.extract_strided_slice %202 {offsets = [0, 128], sizes = [2, 128], strides = [1, 1]} : vector<2x512xf32> to vector<2x128xf32>
      %210 = arith.negf %209 : vector<2x128xf32>
      %211 = math.exp %210 : vector<2x128xf32>
      %cst_51 = arith.constant 1.000000e+00 : f32
      %212 = vector.broadcast %cst_51 : f32 to vector<2x128xf32>
      %213 = arith.addf %212, %211 : vector<2x128xf32>
      %214 = arith.divf %212, %213 : vector<2x128xf32>
      %215 = vector.extract_strided_slice %202 {offsets = [0, 256], sizes = [2, 128], strides = [1, 1]} : vector<2x512xf32> to vector<2x128xf32>
      %216 = math.tanh %215 : vector<2x128xf32>
      %217 = vector.extract_strided_slice %202 {offsets = [0, 384], sizes = [2, 128], strides = [1, 1]} : vector<2x512xf32> to vector<2x128xf32>
      %218 = arith.negf %217 : vector<2x128xf32>
      %219 = math.exp %218 : vector<2x128xf32>
      %cst_52 = arith.constant 1.000000e+00 : f32
      %220 = vector.broadcast %cst_52 : f32 to vector<2x128xf32>
      %221 = arith.addf %220, %219 : vector<2x128xf32>
      %222 = arith.divf %220, %221 : vector<2x128xf32>
      %223 = arith.mulf %214, %194 : vector<2x128xf32>
      %224 = arith.mulf %208, %216 : vector<2x128xf32>
      %225 = arith.addf %223, %224 : vector<2x128xf32>
      %226 = math.tanh %225 : vector<2x128xf32>
      %227 = arith.mulf %222, %226 : vector<2x128xf32>
      %228 = vector.extract_strided_slice %36 {offsets = [6, 0], sizes = [1, 512], strides = [1, 1]} : vector<8x512xf32> to vector<1x512xf32>
      %229 = vector.extract_strided_slice %41 {offsets = [6, 0], sizes = [1, 512], strides = [1, 1]} : vector<8x512xf32> to vector<1x512xf32>
      %230 = tpu.concatenate %228, %229 in 0 : vector<1x512xf32>, vector<1x512xf32> -> vector<2x512xf32>
      %231 = arith.truncf %227 : vector<2x128xf32> to vector<2x128xbf16>
      %cst_53 = arith.constant dense<0.000000e+00> : vector<2x512xf32>
      %232 = tpu.matmul %231, %3, %cst_53 {dimension_numbers = #tpu.dot_dimension_numbers<[1], [0], [0], [1], [0, 0, 1, 1], [], []>} : vector<2x128xbf16>, vector<128x512xbf16>, vector<2x512xf32> -> vector<2x512xf32>
      %233 = arith.addf %230, %232 : vector<2x512xf32>
      %234 = vector.extract_strided_slice %233 {offsets = [0, 0], sizes = [2, 128], strides = [1, 1]} : vector<2x512xf32> to vector<2x128xf32>
      %235 = arith.negf %234 : vector<2x128xf32>
      %236 = math.exp %235 : vector<2x128xf32>
      %cst_54 = arith.constant 1.000000e+00 : f32
      %237 = vector.broadcast %cst_54 : f32 to vector<2x128xf32>
      %238 = arith.addf %237, %236 : vector<2x128xf32>
      %239 = arith.divf %237, %238 : vector<2x128xf32>
      %240 = vector.extract_strided_slice %233 {offsets = [0, 128], sizes = [2, 128], strides = [1, 1]} : vector<2x512xf32> to vector<2x128xf32>
      %241 = arith.negf %240 : vector<2x128xf32>
      %242 = math.exp %241 : vector<2x128xf32>
      %cst_55 = arith.constant 1.000000e+00 : f32
      %243 = vector.broadcast %cst_55 : f32 to vector<2x128xf32>
      %244 = arith.addf %243, %242 : vector<2x128xf32>
      %245 = arith.divf %243, %244 : vector<2x128xf32>
      %246 = vector.extract_strided_slice %233 {offsets = [0, 256], sizes = [2, 128], strides = [1, 1]} : vector<2x512xf32> to vector<2x128xf32>
      %247 = math.tanh %246 : vector<2x128xf32>
      %248 = vector.extract_strided_slice %233 {offsets = [0, 384], sizes = [2, 128], strides = [1, 1]} : vector<2x512xf32> to vector<2x128xf32>
      %249 = arith.negf %248 : vector<2x128xf32>
      %250 = math.exp %249 : vector<2x128xf32>
      %cst_56 = arith.constant 1.000000e+00 : f32
      %251 = vector.broadcast %cst_56 : f32 to vector<2x128xf32>
      %252 = arith.addf %251, %250 : vector<2x128xf32>
      %253 = arith.divf %251, %252 : vector<2x128xf32>
      %254 = arith.mulf %245, %225 : vector<2x128xf32>
      %255 = arith.mulf %239, %247 : vector<2x128xf32>
      %256 = arith.addf %254, %255 : vector<2x128xf32>
      %257 = math.tanh %256 : vector<2x128xf32>
      %258 = arith.mulf %253, %257 : vector<2x128xf32>
      %259 = vector.extract_strided_slice %36 {offsets = [7, 0], sizes = [1, 512], strides = [1, 1]} : vector<8x512xf32> to vector<1x512xf32>
      %260 = vector.extract_strided_slice %41 {offsets = [7, 0], sizes = [1, 512], strides = [1, 1]} : vector<8x512xf32> to vector<1x512xf32>
      %261 = tpu.concatenate %259, %260 in 0 : vector<1x512xf32>, vector<1x512xf32> -> vector<2x512xf32>
      %262 = arith.truncf %258 : vector<2x128xf32> to vector<2x128xbf16>
      %cst_57 = arith.constant dense<0.000000e+00> : vector<2x512xf32>
      %263 = tpu.matmul %262, %3, %cst_57 {dimension_numbers = #tpu.dot_dimension_numbers<[1], [0], [0], [1], [0, 0, 1, 1], [], []>} : vector<2x128xbf16>, vector<128x512xbf16>, vector<2x512xf32> -> vector<2x512xf32>
      %264 = arith.addf %261, %263 : vector<2x512xf32>
      %265 = vector.extract_strided_slice %264 {offsets = [0, 0], sizes = [2, 128], strides = [1, 1]} : vector<2x512xf32> to vector<2x128xf32>
      %266 = arith.negf %265 : vector<2x128xf32>
      %267 = math.exp %266 : vector<2x128xf32>
      %cst_58 = arith.constant 1.000000e+00 : f32
      %268 = vector.broadcast %cst_58 : f32 to vector<2x128xf32>
      %269 = arith.addf %268, %267 : vector<2x128xf32>
      %270 = arith.divf %268, %269 : vector<2x128xf32>
      %271 = vector.extract_strided_slice %264 {offsets = [0, 128], sizes = [2, 128], strides = [1, 1]} : vector<2x512xf32> to vector<2x128xf32>
      %272 = arith.negf %271 : vector<2x128xf32>
      %273 = math.exp %272 : vector<2x128xf32>
      %cst_59 = arith.constant 1.000000e+00 : f32
      %274 = vector.broadcast %cst_59 : f32 to vector<2x128xf32>
      %275 = arith.addf %274, %273 : vector<2x128xf32>
      %276 = arith.divf %274, %275 : vector<2x128xf32>
      %277 = vector.extract_strided_slice %264 {offsets = [0, 256], sizes = [2, 128], strides = [1, 1]} : vector<2x512xf32> to vector<2x128xf32>
      %278 = math.tanh %277 : vector<2x128xf32>
      %279 = vector.extract_strided_slice %264 {offsets = [0, 384], sizes = [2, 128], strides = [1, 1]} : vector<2x512xf32> to vector<2x128xf32>
      %280 = arith.negf %279 : vector<2x128xf32>
      %281 = math.exp %280 : vector<2x128xf32>
      %cst_60 = arith.constant 1.000000e+00 : f32
      %282 = vector.broadcast %cst_60 : f32 to vector<2x128xf32>
      %283 = arith.addf %282, %281 : vector<2x128xf32>
      %284 = arith.divf %282, %283 : vector<2x128xf32>
      %285 = arith.mulf %276, %256 : vector<2x128xf32>
      %286 = arith.mulf %270, %278 : vector<2x128xf32>
      %287 = arith.addf %285, %286 : vector<2x128xf32>
      %288 = math.tanh %287 : vector<2x128xf32>
      %289 = arith.mulf %284, %288 : vector<2x128xf32>
      scf.yield %289, %287 : vector<2x128xf32>, vector<2x128xf32>
    }
    %c16_i32_21 = arith.constant 16 : i32
    %cst_22 = arith.constant dense<0.000000e+00> : vector<2x5xf32>
    %28 = tpu.matmul %27#0, %5, %cst_22 {dimension_numbers = #tpu.dot_dimension_numbers<[1], [0], [0], [1], [0, 0, 1, 1], [], []>} : vector<2x128xf32>, vector<128x5xf32>, vector<2x5xf32> -> vector<2x5xf32>
    %29 = vector.broadcast %6 : vector<1x5xf32> to vector<2x5xf32>
    %30 = arith.addf %28, %29 : vector<2x5xf32>
    %c0_23 = arith.constant 0 : index
    %c0_24 = arith.constant 0 : index
    %31 = vector.load %arg8[%c0_23, %c0_24] : memref<2x5xf32, #tpu.memory_space<vmem>>, vector<2x5xf32>
    tpu.vector_store %arg8[%c0_23, %c0_24], %30 {strides = array<i32>} : memref<2x5xf32, #tpu.memory_space<vmem>>, vector<2x5xf32>,
    return
  }
}

</mosaic_0001>

<bundles_post_ra>
// kernel: multi_conv_lstm_forward.1
= control target key start
LH: loop header
LB: loop body
LE: loop exit
PB: predicated region body
PF: predicated region fallthrough
CT: control target
= control target key end

     0   :  { %13 = vsyncpa [#allocation4], 0  ;;  %v4369_v8 = vmov 0   ;;  %vm300_vm0 = vcmask 1041408   ;;  %vm301_vm1 = vcmask 1042432   ;;  %v3076_v48 = vmov 65535   ;;  %s4360_s0 = inlined_call_operand.vmem [shape: bf16[21,512], index: 0, kind: input, shape index: {}]   ;;  %s4361_s1 = inlined_call_operand.vmem [shape: bf16[128,21], index: 1, kind: input, shape index: {}]   ;;  %s4362_s2 = inlined_call_operand.vmem [shape: f32[128,1], index: 2, kind: input, shape index: {}]   ;;  %s4363_s3 = inlined_call_operand.vmem [shape: bf16[18,512], index: 3, kind: input, shape index: {}]   ;;  %s4364_s4 = inlined_call_operand.vmem [shape: bf16[128,512], index: 4, kind: input, shape index: {}]   ;;  %s4365_s5 = inlined_call_operand.vmem [shape: f32[1,512], index: 5, kind: input, shape index: {}]   ;;  %s4366_s6 = inlined_call_operand.vmem [shape: f32[128,5], index: 6, kind: input, shape index: {}]   ;;  %s4367_s7 = inlined_call_operand.vmem [shape: f32[1,5], index: 7, kind: input, shape index: {}]   ;;  %s4368_s8 = inlined_call_operand.hbm [shape: f32[2,5], index: 8, kind: output, shape index: {}]  }
   0x1   :  { %v3130_v0 = vld [vmem:[%s4364_s4] sm:$0xff]  ;;  %v3135_v1 = vld [vmem:[%s4364_s4 + $0x8] sm:$0xff]  ;;  %v3140_v2 = vld [vmem:[%s4364_s4 + $0x10] sm:$0xff]  ;;  %348 = vmatprep.mubr.bf16.mxu0 %v4369_v8  ;;  %461 = vmatprep.mubr.bf16.mxu1 %v4369_v8  ;;  %v302_v49 = vsel %vm300_vm0, 4294967295, %v3076_v48  ;;  %vm275_vm2 = vcmask 171008   ;;  %vm754_vm3 = vcmask 1040384  }
   0x2   :  { %4407 = vst [vmem:[#allocation6_spill] sm:$0xff] %v3130_v0  ;;  %4408 = vst [vmem:[#allocation7_spill] sm:$0xff] %v3135_v1  ;;  %v3145_v3 = vld [vmem:[%s4364_s4 + $0x18] sm:$0xff]  ;;  %v3150_v4 = vld [vmem:[%s4364_s4 + $0x20] sm:$0xff]  ;;  %2861 = vset.pattern.permute.xlu0 %v4369_v8  ;;  %2862 = vset.pattern.permute.xlu1 %v4369_v8  ;;  %v303_v55 = vsel %vm301_vm1, %v302_v49, 0  ;;  %vm705_vm4 = vcmask 146432  }
   0x3   :  { %4409 = vst [vmem:[#allocation8_spill] sm:$0xff] %v3140_v2  ;;  %4410 = vst [vmem:[#allocation9_spill] sm:$0xff] %v3145_v3  ;;  %v3155_v5 = vld [vmem:[%s4364_s4 + $0x28] sm:$0xff]  ;;  %v3160_v6 = vld [vmem:[%s4364_s4 + $0x30] sm:$0xff] }
   0x4   :  { %4411 = vst [vmem:[#allocation10_spill] sm:$0xff] %v3150_v4  ;;  %4412 = vst [vmem:[#allocation11_spill] sm:$0xff] %v3155_v5  ;;  %v3165_v7 = vld [vmem:[%s4364_s4 + $0x38] sm:$0xff]  ;;  %v3172_v9 = vld [vmem:[%s4364_s4 + $0x40] sm:$0xff] }
   0x5   :  { %4413 = vst [vmem:[#allocation12_spill] sm:$0xff] %v3160_v6  ;;  %4414 = vst [vmem:[#allocation13_spill] sm:$0xff] %v3165_v7  ;;  %v3177_v10 = vld [vmem:[%s4364_s4 + $0x48] sm:$0xff]  ;;  %v3182_v11 = vld [vmem:[%s4364_s4 + $0x50] sm:$0xff] }
   0x6   :  { %4415 = vst [vmem:[#allocation14_spill] sm:$0xff] %v3172_v9  ;;  %4416 = vst [vmem:[#allocation15_spill] sm:$0xff] %v3177_v10  ;;  %v3189_v12 = vld [vmem:[%s4364_s4 + $0x58] sm:$0xff]  ;;  %v3194_v13 = vld [vmem:[%s4364_s4 + $0x60] sm:$0xff] }
   0x7   :  { %4417 = vst [vmem:[#allocation16_spill] sm:$0xff] %v3182_v11  ;;  %4418 = vst [vmem:[#allocation17_spill] sm:$0xff] %v3189_v12  ;;  %v3199_v14 = vld [vmem:[%s4364_s4 + $0x68] sm:$0xff]  ;;  %v3204_v15 = vld [vmem:[%s4364_s4 + $0x70] sm:$0xff] }
   0x8   :  { %4419 = vst [vmem:[#allocation18_spill] sm:$0xff] %v3194_v13  ;;  %4420 = vst [vmem:[#allocation19_spill] sm:$0xff] %v3199_v14  ;;  %v3209_v16 = vld [vmem:[%s4364_s4 + $0x78] sm:$0xff]  ;;  %v3214_v17 = vld [vmem:[%s4364_s4 + $0x80] sm:$0xff] }
   0x9   :  { %4421 = vst [vmem:[#allocation20_spill] sm:$0xff] %v3204_v15  ;;  %4422 = vst [vmem:[#allocation21_spill] sm:$0xff] %v3209_v16  ;;  %v3219_v18 = vld [vmem:[%s4364_s4 + $0x88] sm:$0xff]  ;;  %v3224_v19 = vld [vmem:[%s4364_s4 + $0x90] sm:$0xff] }
   0xa   :  { %4423 = vst [vmem:[#allocation22_spill] sm:$0xff] %v3214_v17  ;;  %4424 = vst [vmem:[#allocation23_spill] sm:$0xff] %v3219_v18  ;;  %v3229_v20 = vld [vmem:[%s4364_s4 + $0x98] sm:$0xff]  ;;  %v3234_v21 = vld [vmem:[%s4364_s4 + $0xa0] sm:$0xff] }
   0xb   :  { %4425 = vst [vmem:[#allocation24_spill] sm:$0xff] %v3224_v19  ;;  %4426 = vst [vmem:[#allocation25_spill] sm:$0xff] %v3229_v20  ;;  %v3239_v22 = vld [vmem:[%s4364_s4 + $0xa8] sm:$0xff]  ;;  %v3244_v23 = vld [vmem:[%s4364_s4 + $0xb0] sm:$0xff] }
   0xc   :  { %4427 = vst [vmem:[#allocation26_spill] sm:$0xff] %v3234_v21  ;;  %4428 = vst [vmem:[#allocation27_spill] sm:$0xff] %v3239_v22  ;;  %v3249_v24 = vld [vmem:[%s4364_s4 + $0xb8] sm:$0xff]  ;;  %v3254_v25 = vld [vmem:[%s4364_s4 + $0xc0] sm:$0xff] }
   0xd   :  { %4429 = vst [vmem:[#allocation28_spill] sm:$0xff] %v3244_v23  ;;  %4430 = vst [vmem:[#allocation29_spill] sm:$0xff] %v3249_v24  ;;  %v3259_v26 = vld [vmem:[%s4364_s4 + $0xc8] sm:$0xff]  ;;  %v3264_v27 = vld [vmem:[%s4364_s4 + $0xd0] sm:$0xff] }
   0xe   :  { %4431 = vst [vmem:[#allocation30_spill] sm:$0xff] %v3254_v25  ;;  %4432 = vst [vmem:[#allocation31_spill] sm:$0xff] %v3259_v26  ;;  %v3269_v28 = vld [vmem:[%s4364_s4 + $0xd8] sm:$0xff]  ;;  %v3274_v29 = vld [vmem:[%s4364_s4 + $0xe0] sm:$0xff] }
   0xf   :  { %4433 = vst [vmem:[#allocation32_spill] sm:$0xff] %v3264_v27  ;;  %4434 = vst [vmem:[#allocation33_spill] sm:$0xff] %v3269_v28  ;;  %v3279_v30 = vld [vmem:[%s4364_s4 + $0xe8] sm:$0xff]  ;;  %v3284_v31 = vld [vmem:[%s4364_s4 + $0xf0] sm:$0xff] }
  0x10   :  { %4435 = vst [vmem:[#allocation34_spill] sm:$0xff] %v3274_v29  ;;  %4436 = vst [vmem:[#allocation35_spill] sm:$0xff] %v3279_v30  ;;  %v3289_v32 = vld [vmem:[%s4364_s4 + $0xf8] sm:$0xff]  ;;  %v3294_v33 = vld [vmem:[%s4366_s6] sm:$0xff] }
  0x11   :  { %4437 = vst [vmem:[#allocation36_spill] sm:$0xff] %v3284_v31  ;;  %4438 = vst [vmem:[#allocation37_spill] sm:$0xff] %v3289_v32  ;;  %v3299_v34 = vld [vmem:[%s4366_s6 + $0x8] sm:$0xff]  ;;  %v3304_v35 = vld [vmem:[%s4366_s6 + $0x10] sm:$0xff] }
  0x12   :  { %4439 = vst [vmem:[#allocation38_spill] sm:$0xff] %v3294_v33  ;;  %4440 = vst [vmem:[#allocation39_spill] sm:$0xff] %v3299_v34  ;;  %v3309_v36 = vld [vmem:[%s4366_s6 + $0x18] sm:$0xff]  ;;  %v3314_v37 = vld [vmem:[%s4366_s6 + $0x20] sm:$0xff] }
  0x13   :  { %4441 = vst [vmem:[#allocation40_spill] sm:$0xff] %v3304_v35  ;;  %4442 = vst [vmem:[#allocation41_spill] sm:$0xff] %v3309_v36  ;;  %v3319_v38 = vld [vmem:[%s4366_s6 + $0x28] sm:$0xff]  ;;  %v3324_v39 = vld [vmem:[%s4366_s6 + $0x30] sm:$0xff] }
  0x14   :  { %4443 = vst [vmem:[#allocation42_spill] sm:$0xff] %v3314_v37  ;;  %4444 = vst [vmem:[#allocation43_spill] sm:$0xff] %v3319_v38  ;;  %v3329_v40 = vld [vmem:[%s4366_s6 + $0x38] sm:$0xff]  ;;  %v3334_v41 = vld [vmem:[%s4366_s6 + $0x40] sm:$0xff] }
  0x15   :  { %4445 = vst [vmem:[#allocation44_spill] sm:$0xff] %v3324_v39  ;;  %4446 = vst [vmem:[#allocation45_spill] sm:$0xff] %v3329_v40  ;;  %v3339_v42 = vld [vmem:[%s4366_s6 + $0x48] sm:$0xff]  ;;  %v3344_v43 = vld [vmem:[%s4366_s6 + $0x50] sm:$0xff] }
  0x16   :  { %4447 = vst [vmem:[#allocation46_spill] sm:$0xff] %v3334_v41  ;;  %4448 = vst [vmem:[#allocation47_spill] sm:$0xff] %v3339_v42  ;;  %v3349_v44 = vld [vmem:[%s4366_s6 + $0x58] sm:$0xff]  ;;  %v3354_v45 = vld [vmem:[%s4366_s6 + $0x60] sm:$0xff] }
  0x17   :  { %4449 = vst [vmem:[#allocation48_spill] sm:$0xff] %v3344_v43  ;;  %4450 = vst [vmem:[#allocation49_spill] sm:$0xff] %v3349_v44  ;;  %v3359_v46 = vld [vmem:[%s4366_s6 + $0x68] sm:$0xff]  ;;  %v3364_v47 = vld [vmem:[%s4366_s6 + $0x70] sm:$0xff] }
  0x18   :  { %4451 = vst [vmem:[#allocation50_spill] sm:$0xff] %v3354_v45  ;;  %4452 = vst [vmem:[#allocation51_spill] sm:$0xff] %v3359_v46  ;;  %v3369_v50 = vld [vmem:[%s4366_s6 + $0x78] sm:$0xff]  ;;  %v3374_v51 = vld [vmem:[%s4367_s7] ss:$0 sm:$0xff] }
  0x19   :  { %4453 = vst [vmem:[#allocation52_spill] sm:$0xff] %v3364_v47  ;;  %4454 = vst [vmem:[#allocation53_spill] sm:$0xff] %v3369_v50  ;;  %v2863_v52 = vld [vmem:[%s4360_s0 + $0x4] ss:$16 sps:$4 sm:$0xff]   ;;  %v2865_v53 = vld [vmem:[%s4360_s0 + $0xc] ss:$16 sps:$4 sm:$0xff]  }
  0x1a   :  { %4455 = vst [vmem:[#allocation54_spill] sm:$0xff] %v3374_v51  ;;  %v2867_v54 = vld [vmem:[%s4360_s0] ss:$16 sps:$4 sm:$0xff]   ;;  %316 = vmatprep.subr.bf16.mxu0 %v2863_v52  ;;  %v2868_v56 = vld [vmem:[%s4360_s0 + $0x8] ss:$16 sps:$4 sm:$0xff]   ;;  %429 = vmatprep.subr.bf16.mxu1 %v2865_v53 }
  0x1b   :  { %v123_v57 = vld [vmem:[%s4360_s0 + $0x20] sm:$0x77]  ;;  %v124_v58 = vld [vmem:[%s4360_s0 + $0x28] sm:$0x77]  ;;  %317 = vmatpush1.bf16.msra.mxu0 %v2867_v54  ;;  %430 = vmatpush1.bf16.msra.mxu1 %v2868_v56  ;;  %v49_v54 = vld [vmem:[%s4362_s2 + $0x10] sm:$0xff] }
  0x1c   :  { %v2629_v59 = vcombine.high %v123_v57, %v123_v57  ;;  %v2631_v60 = vcombine.high %v124_v58, %v124_v58  ;;  %v2628_v61 = vcombine.low %v123_v57, %v123_v57  ;;  %v2630_v62 = vcombine.low %v124_v58, %v124_v58  ;;  %v2873_v8 = vld [vmem:[%s4361_s1] sm:$0xff]   ;;  %137 = vperm.xlu1 %2862, %v49_v54   ;;  %v48_v56 = vld [vmem:[%s4362_s2 + $0x8] sm:$0xff]  ;;  %v50_v57 = vld [vmem:[%s4362_s2 + $0x18] sm:$0xff] }
  0x1d   :  { %v47_v53 = vld [vmem:[%s4362_s2] sm:$0xff]  ;;  %v53_v54 = vld [vmem:[%s4362_s2 + $0x30] sm:$0xff] }
  0x1e   :  { %v308_v63 = vand.u32 %v2629_v59, %v303_v55  ;;  %v314_v48 = vand.u32 %v2631_v60, %v303_v55  ;;  %v305_v49 = vand.u32 %v2628_v61, %v303_v55  ;;  %v311_v52 = vand.u32 %v2630_v62, %v303_v55  ;;  %127 = vperm.xlu0 %2861, %v47_v53   ;;  %v51_v58 = vld [vmem:[%s4362_s2 + $0x20] sm:$0xff]  ;;  %v52_v59 = vld [vmem:[%s4362_s2 + $0x28] sm:$0xff] }
  0x1f   :  { %v4456_v55 = vmov 0   ;;  %v2883_v60 = vld [vmem:[%s4363_s3 + $0x4] ss:$16 sps:$4 sm:$0xff]   ;;  %v2886_v61 = vld [vmem:[%s4363_s3 + $0xc] ss:$16 sps:$4 sm:$0xff]  }
  0x20   :  { %318 = vmatprep.subr.bf16.mxu0 %v308_v63  ;;  %431 = vmatprep.subr.bf16.mxu1 %v314_v48  ;;  %v2881_v62 = vld [vmem:[%s4363_s3] ss:$16 sps:$4 sm:$0xff]   ;;  %v2884_v63 = vld [vmem:[%s4363_s3 + $0x8] ss:$16 sps:$4 sm:$0xff]  }
  0x21   :  { %319 = vmatpush1.bf16.msra.mxu0 %v305_v49  ;;  %432 = vmatpush1.bf16.msra.mxu1 %v311_v52  ;;  %v67_v48 = vld [vmem:[%s4363_s3 + $0x20] sm:$0x11]  ;;  %v68_v49 = vld [vmem:[%s4363_s3 + $0x28] sm:$0x11] }
  0x22   :  { %132 = vperm.xlu0 %2861, %v48_v56   ;;  %142 = vperm.xlu1 %2862, %v50_v57   ;;  %v2653_v52 = vcombine.high %v67_v48, %v67_v48  ;;  %v2655_v53 = vcombine.high %v68_v49, %v68_v49  ;;  %v54_v56 = vld [vmem:[%s4362_s2 + $0x38] sm:$0xff]  ;;  %v2875_v57 = vld [vmem:[%s4361_s1 + $0x10] sm:$0xff]  }
  0x23   :  { %767 = vmatprep.subr.bf16.mxu0 %v2883_v60  ;;  %960 = vmatprep.subr.bf16.mxu1 %v2886_v61  ;;  %v56_v60 = vld [vmem:[%s4362_s2 + $0x48] sm:$0xff] }
  0x24   :  { %2632 = vmatmul.mubr.msk.bf16.vlgmr.msra.gmra.mrb[0].mxu0 %vm275_vm2, %v2873_v8  ;;  %2640 = vmatmul.mubr.msk.bf16.vlgmr.msra.gmra.mrb[0].mxu1 %vm275_vm2, %v2873_v8  ;;  %v2874_v8 = vld [vmem:[%s4361_s1 + $0x8] sm:$0xff]  }
  0x25   :  { %358 = vmatprep.mubr.bf16.mxu0 %v4456_v55  ;;  %471 = vmatprep.mubr.bf16.mxu1 %v4456_v55 }
  0x26   :  { %147 = vperm.xlu0 %2861, %v51_v58   ;;  %152 = vperm.xlu1 %2862, %v52_v59   ;;  %v2654_v58 = vcombine.low %v68_v49, %v68_v49  ;;  %v55_v59 = vld [vmem:[%s4362_s2 + $0x40] sm:$0xff]  ;;  %v2876_v49 = vld [vmem:[%s4361_s1 + $0x18] sm:$0xff]  }
  0x27   :  { %768 = vmatpush1.bf16.msra.mxu0 %v2881_v62  ;;  %961 = vmatpush1.bf16.msra.mxu1 %v2884_v63  ;;  %v57_v63 = vld [vmem:[%s4362_s2 + $0x50] sm:$0xff] }
  0x28   :  { %2656 = vmatprep.subr.msk.bf16.mxu0 %vm754_vm3, %v2653_v52  ;;  %2673 = vmatprep.subr.msk.bf16.mxu1 %vm754_vm3, %v2655_v53  ;;  %v762_v62 = vsel %vm754_vm3, %v2654_v58, 0  ;;  %v59_v52 = vld [vmem:[%s4362_s2 + $0x60] sm:$0xff]  ;;  %v60_v53 = vld [vmem:[%s4362_s2 + $0x68] sm:$0xff]  ;;  %v2879_v58 = vld [vmem:[%s4361_s1 + $0x30] sm:$0xff]  }
  0x2a   :  { %157 = vperm.xlu0 %2861, %v53_v54   ;;  %162 = vperm.xlu1 %2862, %v54_v56   ;;  %v61_v54 = vld [vmem:[%s4362_s2 + $0x70] sm:$0xff]  ;;  %v62_v56 = vld [vmem:[%s4362_s2 + $0x78] sm:$0xff] }
  0x2b   :  { %963 = vmatpush1.bf16.msra.mxu1 %v762_v62 }
  0x2c   :  { %2633 = vmatmul.mubr.msk.bf16.gmra.mrb[4].mxu0 %vm275_vm2, %v2874_v8  ;;  %2641 = vmatmul.mubr.msk.bf16.gmra.mrb[4].mxu1 %vm275_vm2, %v2874_v8  ;;  %v2652_v8 = vcombine.low %v67_v48, %v67_v48  ;;  %v58_v48 = vld [vmem:[%s4362_s2 + $0x58] sm:$0xff] }
  0x2d   :  { %368 = vmatprep.mubr.bf16.mxu0 %v4456_v55  ;;  %481 = vmatprep.mubr.bf16.mxu1 %v4456_v55 }
  0x2e   :  { %v756_v61 = vsel %vm754_vm3, %v2652_v8, 0  ;;  %167 = vperm.xlu0 %2861, %v55_v59   ;;  %172 = vperm.xlu1 %2862, %v56_v60   ;;  %v2878_v8 = vld [vmem:[%s4361_s1 + $0x28] sm:$0xff]   ;;  %v2880_v59 = vld [vmem:[%s4361_s1 + $0x38] sm:$0xff]  }
  0x2f   :  { %770 = vmatpush1.bf16.msra.mxu0 %v756_v61 }
  0x32   :  { %177 = vperm.xlu0 %2861, %v57_v63   ;;  %182 = vperm.xlu1 %2862, %v58_v48  }
  0x34   :  { %2634 = vmatmul.mubr.msk.bf16.gmra.mrb[8].mxu0 %vm275_vm2, %v2875_v57  ;;  %2642 = vmatmul.mubr.msk.bf16.gmra.mrb[8].mxu1 %vm275_vm2, %v2875_v57  ;;  %v2877_v57 = vld [vmem:[%s4361_s1 + $0x20] sm:$0xff]  }
  0x35   :  { %378 = vmatprep.mubr.bf16.mxu0 %v4456_v55  ;;  %491 = vmatprep.mubr.bf16.mxu1 %v4456_v55 }
  0x36   :  { %187 = vperm.xlu0 %2861, %v59_v52   ;;  %192 = vperm.xlu1 %2862, %v60_v53  }
  0x3a   :  { %197 = vperm.xlu0 %2861, %v61_v54   ;;  %202 = vperm.xlu1 %2862, %v62_v56  }
  0x3c   :  { %2635 = vmatmul.mubr.msk.bf16.gmra.mrb[12].mxu0 %vm275_vm2, %v2876_v49  ;;  %2643 = vmatmul.mubr.msk.bf16.gmra.mrb[12].mxu1 %vm275_vm2, %v2876_v49 }
  0x3d   :  { %388 = vmatprep.mubr.bf16.mxu0 %v4456_v55  ;;  %501 = vmatprep.mubr.bf16.mxu1 %v4456_v55 }
  0x44   :  { %2636 = vmatmul.mubr.msk.bf16.gmra.mrb[16].mxu0 %vm275_vm2, %v2877_v57  ;;  %2644 = vmatmul.mubr.msk.bf16.gmra.mrb[16].mxu1 %vm275_vm2, %v2877_v57 }
  0x45   :  { %398 = vmatprep.mubr.bf16.mxu0 %v4456_v55  ;;  %511 = vmatprep.mubr.bf16.mxu1 %v4456_v55 }
  0x4c   :  { %2637 = vmatmul.mubr.msk.bf16.gmra.mrb[20].mxu0 %vm275_vm2, %v2878_v8  ;;  %2645 = vmatmul.mubr.msk.bf16.gmra.mrb[20].mxu1 %vm275_vm2, %v2878_v8 }
  0x4d   :  { %408 = vmatprep.mubr.bf16.mxu0 %v4456_v55  ;;  %521 = vmatprep.mubr.bf16.mxu1 %v4456_v55 }
  0x54   :  { %2638 = vmatmul.mubr.msk.bf16.gmra.mrb[24].mxu0 %vm275_vm2, %v2879_v58  ;;  %2646 = vmatmul.mubr.msk.bf16.gmra.mrb[24].mxu1 %vm275_vm2, %v2879_v58 }
  0x55   :  { %418 = vmatprep.mubr.bf16.mxu0 %v4456_v55  ;;  %531 = vmatprep.mubr.bf16.mxu1 %v4456_v55 }
  0x5c   :  { %2639 = vmatmul.mubr.msk.bf16.gmra.mrb[28].mxu0 %vm275_vm2, %v2880_v59  ;;  %2647 = vmatmul.mubr.msk.bf16.gmra.mrb[28].mxu1 %vm275_vm2, %v2880_v59 }
  0x5d   :  { %799 = vmatprep.mubr.bf16.mxu0 %v4456_v55  ;;  %992 = vmatprep.mubr.bf16.mxu1 %v4456_v55 }
  0x9b   :  { %v138_v62 = vpop.permute.xlu1 %137 }
  0x9d   :  { %v128_v60 = vpop.permute.xlu0 %127 }
  0xa1   :  { %v133_v61 = vpop.permute.xlu0 %132 }
  0xf7   :  { %v350_v63 = vpop.f32.mrb[0].mxu0  ;;  %v463_v48 = vpop.f32.mrb[0].mxu1 }
  0xf8   :  { %v351_v49 = vadd.f32 %v350_v63, %v128_v60  ;;  %v464_v52 = vadd.f32 %v463_v48, %v128_v60  ;;  %v352_v53 = vpop.f32.mrb[1].mxu0  ;;  %v465_v54 = vpop.f32.mrb[1].mxu1 }
  0xf9   :  { %v353_v56 = vadd.f32 %v352_v53, %v128_v60  ;;  %v466_v57 = vadd.f32 %v465_v54, %v128_v60  ;;  %v354_v8 = vpop.f32.mrb[2].mxu0  ;;  %v467_v58 = vpop.f32.mrb[2].mxu1 }
  0xfa   :  { %v542_v51 = vmax.f32 %v351_v49, 0.0  ;;  %v544_v50 = vmax.f32 %v464_v52, 0.0  ;;  %v355_v59 = vadd.f32 %v354_v8, %v133_v61  ;;  %v468_v47 = vadd.f32 %v467_v58, %v133_v61  ;;  %v356_v46 = vpop.f32.mrb[3].mxu0  ;;  %v469_v45 = vpop.f32.mrb[3].mxu1 }
  0xfb   :  { %v543_v44 = vmax.f32 %v353_v56, 0.0  ;;  %v545_v43 = vmax.f32 %v466_v57, 0.0  ;;  %v357_v42 = vadd.f32 %v356_v46, %v133_v61  ;;  %v470_v41 = vadd.f32 %v469_v45, %v133_v61  ;;  %v143_v53 = vpop.permute.xlu1 %142 }
  0xfc   :  { %v606_v40 = vmax.f32 %v542_v51, %v544_v50  ;;  %v546_v39 = vmax.f32 %v355_v59, 0.0  ;;  %v548_v63 = vmax.f32 %v468_v47, 0.0 }
  0xfd   :  { %v607_v48 = vmax.f32 %v543_v44, %v545_v43  ;;  %v547_v38 = vmax.f32 %v357_v42, 0.0  ;;  %v549_v37 = vmax.f32 %v470_v41, 0.0 }
  0xfe   :  { %v608_v60 = vmax.f32 %v546_v39, %v548_v63 }
  0xff   :  { %v609_v54 = vmax.f32 %v547_v38, %v549_v37  ;;  %v360_v36 = vpop.f32.mrb[4].mxu0  ;;  %v473_v49 = vpop.f32.mrb[4].mxu1 }
 0x100   :  { %v638_v52 = vpack.c.bf16 %v608_v60, %v606_v40  ;;  %v361_v8 = vadd.f32 %v360_v36, %v138_v62  ;;  %v474_v58 = vadd.f32 %v473_v49, %v138_v62  ;;  %v362_v35 = vpop.f32.mrb[5].mxu0  ;;  %v475_v56 = vpop.f32.mrb[5].mxu1 }
 0x101   :  { %v3520_v57 = vpack.c.bf16 %v609_v54, %v607_v48  ;;  %v363_v45 = vadd.f32 %v362_v35, %v138_v62  ;;  %v476_v46 = vadd.f32 %v475_v56, %v138_v62  ;;  %v364_v50 = vpop.f32.mrb[6].mxu0  ;;  %v477_v47 = vpop.f32.mrb[6].mxu1 }
 0x102   :  { %v550_v43 = vmax.f32 %v361_v8, 0.0  ;;  %v552_v42 = vmax.f32 %v474_v58, 0.0  ;;  %v365_v41 = vadd.f32 %v364_v50, %v143_v53  ;;  %v478_v44 = vadd.f32 %v477_v47, %v143_v53  ;;  %v366_v39 = vpop.f32.mrb[7].mxu0  ;;  %v479_v37 = vpop.f32.mrb[7].mxu1  ;;  %2657 = vmatmul.mubr.msk.bf16.vlgmr.msra.gmra.mrb[32].mxu0 %vm705_vm4, %v638_v52  ;;  %2674 = vmatmul.mubr.msk.bf16.vlgmr.msra.gmra.mrb[32].mxu1 %vm705_vm4, %v638_v52 }
 0x103   :  { %v551_v36 = vmax.f32 %v363_v45, 0.0  ;;  %v553_v38 = vmax.f32 %v476_v46, 0.0  ;;  %v367_v40 = vadd.f32 %v366_v39, %v143_v53  ;;  %v480_v51 = vadd.f32 %v479_v37, %v143_v53  ;;  %809 = vmatprep.mubr.bf16.mxu0 %v4456_v55  ;;  %1002 = vmatprep.mubr.bf16.mxu1 %v4456_v55  ;;  %v148_v60 = vpop.permute.xlu0 %147  ;;  %v153_v54 = vpop.permute.xlu1 %152 }
 0x104   :  { %v610_v35 = vmax.f32 %v550_v43, %v552_v42  ;;  %v554_v61 = vmax.f32 %v365_v41, 0.0  ;;  %v556_v62 = vmax.f32 %v478_v44, 0.0 }
 0x105   :  { %v611_v59 = vmax.f32 %v551_v36, %v553_v38  ;;  %v555_v63 = vmax.f32 %v367_v40, 0.0  ;;  %v557_v48 = vmax.f32 %v480_v51, 0.0 }
 0x106   :  { %v612_v49 = vmax.f32 %v554_v61, %v556_v62 }
 0x107   :  { %v613_v8 = vmax.f32 %v555_v63, %v557_v48  ;;  %v370_v58 = vpop.f32.mrb[8].mxu0  ;;  %v483_v52 = vpop.f32.mrb[8].mxu1 }
 0x108   :  { %v639_v56 = vpack.c.bf16 %v612_v49, %v610_v35  ;;  %v371_v45 = vadd.f32 %v370_v58, %v148_v60  ;;  %v484_v46 = vadd.f32 %v483_v52, %v148_v60  ;;  %v372_v53 = vpop.f32.mrb[9].mxu0  ;;  %v485_v50 = vpop.f32.mrb[9].mxu1 }
 0x109   :  { %v3526_v47 = vpack.c.bf16 %v613_v8, %v611_v59  ;;  %v373_v39 = vadd.f32 %v372_v53, %v148_v60  ;;  %v486_v43 = vadd.f32 %v485_v50, %v148_v60  ;;  %v374_v42 = vpop.f32.mrb[10].mxu0  ;;  %v487_v41 = vpop.f32.mrb[10].mxu1 }
 0x10a   :  { %v558_v44 = vmax.f32 %v371_v45, 0.0  ;;  %v560_v37 = vmax.f32 %v484_v46, 0.0  ;;  %v375_v36 = vadd.f32 %v374_v42, %v153_v54  ;;  %v488_v38 = vadd.f32 %v487_v41, %v153_v54  ;;  %v376_v40 = vpop.f32.mrb[11].mxu0  ;;  %v489_v51 = vpop.f32.mrb[11].mxu1  ;;  %2658 = vmatmul.mubr.msk.bf16.gmra.mrb[36].mxu0 %vm705_vm4, %v639_v56  ;;  %2675 = vmatmul.mubr.msk.bf16.gmra.mrb[36].mxu1 %vm705_vm4, %v639_v56 }
 0x10b   :  { %v559_v35 = vmax.f32 %v373_v39, 0.0  ;;  %v561_v61 = vmax.f32 %v486_v43, 0.0  ;;  %v377_v62 = vadd.f32 %v376_v40, %v153_v54  ;;  %v490_v63 = vadd.f32 %v489_v51, %v153_v54  ;;  %819 = vmatprep.mubr.bf16.mxu0 %v4456_v55  ;;  %1012 = vmatprep.mubr.bf16.mxu1 %v4456_v55  ;;  %v158_v52 = vpop.permute.xlu0 %157  ;;  %v163_v45 = vpop.permute.xlu1 %162 }
 0x10c   :  { %v614_v59 = vmax.f32 %v558_v44, %v560_v37  ;;  %v562_v48 = vmax.f32 %v375_v36, 0.0  ;;  %v564_v60 = vmax.f32 %v488_v38, 0.0 }
 0x10d   :  { %v615_v49 = vmax.f32 %v559_v35, %v561_v61  ;;  %v563_v8 = vmax.f32 %v377_v62, 0.0  ;;  %v565_v58 = vmax.f32 %v490_v63, 0.0 }
 0x10e   :  { %v616_v46 = vmax.f32 %v562_v48, %v564_v60 }
 0x10f   :  { %v617_v53 = vmax.f32 %v563_v8, %v565_v58  ;;  %v380_v50 = vpop.f32.mrb[12].mxu0  ;;  %v493_v56 = vpop.f32.mrb[12].mxu1 }
 0x110   :  { %v640_v39 = vpack.c.bf16 %v616_v46, %v614_v59  ;;  %v381_v43 = vadd.f32 %v380_v50, %v158_v52  ;;  %v494_v42 = vadd.f32 %v493_v56, %v158_v52  ;;  %v382_v54 = vpop.f32.mrb[13].mxu0  ;;  %v495_v41 = vpop.f32.mrb[13].mxu1 }
 0x111   :  { %v3532_v40 = vpack.c.bf16 %v617_v53, %v615_v49  ;;  %v383_v51 = vadd.f32 %v382_v54, %v158_v52  ;;  %v496_v44 = vadd.f32 %v495_v41, %v158_v52  ;;  %v384_v37 = vpop.f32.mrb[14].mxu0  ;;  %v497_v36 = vpop.f32.mrb[14].mxu1 }
 0x112   :  { %v566_v38 = vmax.f32 %v381_v43, 0.0  ;;  %v568_v35 = vmax.f32 %v494_v42, 0.0  ;;  %v385_v61 = vadd.f32 %v384_v37, %v163_v45  ;;  %v498_v62 = vadd.f32 %v497_v36, %v163_v45  ;;  %v386_v63 = vpop.f32.mrb[15].mxu0  ;;  %v499_v48 = vpop.f32.mrb[15].mxu1  ;;  %2659 = vmatmul.mubr.msk.bf16.gmra.mrb[40].mxu0 %vm705_vm4, %v640_v39  ;;  %2676 = vmatmul.mubr.msk.bf16.gmra.mrb[40].mxu1 %vm705_vm4, %v640_v39 }
 0x113   :  { %v567_v59 = vmax.f32 %v383_v51, 0.0  ;;  %v569_v60 = vmax.f32 %v496_v44, 0.0  ;;  %v387_v8 = vadd.f32 %v386_v63, %v163_v45  ;;  %v500_v58 = vadd.f32 %v499_v48, %v163_v45  ;;  %829 = vmatprep.mubr.bf16.mxu0 %v4456_v55  ;;  %1022 = vmatprep.mubr.bf16.mxu1 %v4456_v55  ;;  %v168_v43 = vpop.permute.xlu0 %167  ;;  %v173_v42 = vpop.permute.xlu1 %172 }
 0x114   :  { %v618_v49 = vmax.f32 %v566_v38, %v568_v35  ;;  %v570_v52 = vmax.f32 %v385_v61, 0.0  ;;  %v572_v46 = vmax.f32 %v498_v62, 0.0 }
 0x115   :  { %v619_v53 = vmax.f32 %v567_v59, %v569_v60  ;;  %v571_v50 = vmax.f32 %v387_v8, 0.0  ;;  %v573_v56 = vmax.f32 %v500_v58, 0.0 }
 0x116   :  { %v620_v54 = vmax.f32 %v570_v52, %v572_v46 }
 0x117   :  { %v621_v41 = vmax.f32 %v571_v50, %v573_v56  ;;  %v390_v37 = vpop.f32.mrb[16].mxu0  ;;  %v503_v39 = vpop.f32.mrb[16].mxu1 }
 0x118   :  { %v641_v51 = vpack.c.bf16 %v620_v54, %v618_v49  ;;  %v391_v44 = vadd.f32 %v390_v37, %v168_v43  ;;  %v504_v36 = vadd.f32 %v503_v39, %v168_v43  ;;  %v392_v45 = vpop.f32.mrb[17].mxu0  ;;  %v505_v63 = vpop.f32.mrb[17].mxu1 }
 0x119   :  { %v3538_v48 = vpack.c.bf16 %v621_v41, %v619_v53  ;;  %v393_v34 = vadd.f32 %v392_v45, %v168_v43  ;;  %v506_v38 = vadd.f32 %v505_v63, %v168_v43  ;;  %v394_v35 = vpop.f32.mrb[18].mxu0  ;;  %v507_v61 = vpop.f32.mrb[18].mxu1 }
 0x11a   :  { %v574_v62 = vmax.f32 %v391_v44, 0.0  ;;  %v576_v59 = vmax.f32 %v504_v36, 0.0  ;;  %v395_v60 = vadd.f32 %v394_v35, %v173_v42  ;;  %v508_v8 = vadd.f32 %v507_v61, %v173_v42  ;;  %v396_v58 = vpop.f32.mrb[19].mxu0  ;;  %v509_v52 = vpop.f32.mrb[19].mxu1  ;;  %2660 = vmatmul.mubr.msk.bf16.gmra.mrb[44].mxu0 %vm705_vm4, %v641_v51  ;;  %2677 = vmatmul.mubr.msk.bf16.gmra.mrb[44].mxu1 %vm705_vm4, %v641_v51 }
 0x11b   :  { %v575_v49 = vmax.f32 %v393_v34, 0.0  ;;  %v577_v46 = vmax.f32 %v506_v38, 0.0  ;;  %v397_v50 = vadd.f32 %v396_v58, %v173_v42  ;;  %v510_v56 = vadd.f32 %v509_v52, %v173_v42  ;;  %839 = vmatprep.mubr.bf16.mxu0 %v4456_v55  ;;  %1032 = vmatprep.mubr.bf16.mxu1 %v4456_v55  ;;  %v178_v44 = vpop.permute.xlu0 %177  ;;  %v183_v36 = vpop.permute.xlu1 %182 }
 0x11c   :  { %v622_v53 = vmax.f32 %v574_v62, %v576_v59  ;;  %v578_v43 = vmax.f32 %v395_v60, 0.0  ;;  %v580_v54 = vmax.f32 %v508_v8, 0.0 }
 0x11d   :  { %v623_v41 = vmax.f32 %v575_v49, %v577_v46  ;;  %v579_v37 = vmax.f32 %v397_v50, 0.0  ;;  %v581_v39 = vmax.f32 %v510_v56, 0.0 }
 0x11e   :  { %v624_v45 = vmax.f32 %v578_v43, %v580_v54 }
 0x11f   :  { %v625_v63 = vmax.f32 %v579_v37, %v581_v39  ;;  %v400_v35 = vpop.f32.mrb[20].mxu0  ;;  %v513_v51 = vpop.f32.mrb[20].mxu1 }
 0x120   :  { %v642_v34 = vpack.c.bf16 %v624_v45, %v622_v53  ;;  %v401_v38 = vadd.f32 %v400_v35, %v178_v44  ;;  %v514_v61 = vadd.f32 %v513_v51, %v178_v44  ;;  %v402_v42 = vpop.f32.mrb[21].mxu0  ;;  %v515_v58 = vpop.f32.mrb[21].mxu1 }
 0x121   :  { %v3544_v52 = vpack.c.bf16 %v625_v63, %v623_v41  ;;  %v403_v33 = vadd.f32 %v402_v42, %v178_v44  ;;  %v516_v62 = vadd.f32 %v515_v58, %v178_v44  ;;  %v404_v59 = vpop.f32.mrb[22].mxu0  ;;  %v517_v60 = vpop.f32.mrb[22].mxu1 }
 0x122   :  { %v582_v8 = vmax.f32 %v401_v38, 0.0  ;;  %v584_v49 = vmax.f32 %v514_v61, 0.0  ;;  %v405_v46 = vadd.f32 %v404_v59, %v183_v36  ;;  %v518_v50 = vadd.f32 %v517_v60, %v183_v36  ;;  %v406_v56 = vpop.f32.mrb[23].mxu0  ;;  %v519_v43 = vpop.f32.mrb[23].mxu1  ;;  %2661 = vmatmul.mubr.msk.bf16.gmra.mrb[48].mxu0 %vm705_vm4, %v642_v34  ;;  %2678 = vmatmul.mubr.msk.bf16.gmra.mrb[48].mxu1 %vm705_vm4, %v642_v34 }
 0x123   :  { %v583_v53 = vmax.f32 %v403_v33, 0.0  ;;  %v585_v54 = vmax.f32 %v516_v62, 0.0  ;;  %v407_v37 = vadd.f32 %v406_v56, %v183_v36  ;;  %v520_v39 = vadd.f32 %v519_v43, %v183_v36  ;;  %849 = vmatprep.mubr.bf16.mxu0 %v4456_v55  ;;  %1042 = vmatprep.mubr.bf16.mxu1 %v4456_v55  ;;  %v188_v38 = vpop.permute.xlu0 %187  ;;  %v193_v61 = vpop.permute.xlu1 %192 }
 0x124   :  { %v626_v41 = vmax.f32 %v582_v8, %v584_v49  ;;  %v586_v44 = vmax.f32 %v405_v46, 0.0  ;;  %v588_v45 = vmax.f32 %v518_v50, 0.0 }
 0x125   :  { %v627_v63 = vmax.f32 %v583_v53, %v585_v54  ;;  %v587_v35 = vmax.f32 %v407_v37, 0.0  ;;  %v589_v51 = vmax.f32 %v520_v39, 0.0 }
 0x126   :  { %v628_v42 = vmax.f32 %v586_v44, %v588_v45 }
 0x127   :  { %v629_v58 = vmax.f32 %v587_v35, %v589_v51  ;;  %v410_v59 = vpop.f32.mrb[24].mxu0  ;;  %v523_v34 = vpop.f32.mrb[24].mxu1 }
 0x128   :  { %v643_v33 = vpack.c.bf16 %v628_v42, %v626_v41  ;;  %v411_v62 = vadd.f32 %v410_v59, %v188_v38  ;;  %v524_v60 = vadd.f32 %v523_v34, %v188_v38  ;;  %v412_v36 = vpop.f32.mrb[25].mxu0  ;;  %v525_v56 = vpop.f32.mrb[25].mxu1 }
 0x129   :  { %v3550_v43 = vpack.c.bf16 %v629_v58, %v627_v63  ;;  %v413_v30 = vadd.f32 %v412_v36, %v188_v38  ;;  %v526_v8 = vadd.f32 %v525_v56, %v188_v38  ;;  %v414_v49 = vpop.f32.mrb[26].mxu0  ;;  %v527_v46 = vpop.f32.mrb[26].mxu1 }
 0x12a   :  { %v590_v50 = vmax.f32 %v411_v62, 0.0  ;;  %v592_v53 = vmax.f32 %v524_v60, 0.0  ;;  %v415_v54 = vadd.f32 %v414_v49, %v193_v61  ;;  %v528_v37 = vadd.f32 %v527_v46, %v193_v61  ;;  %v416_v39 = vpop.f32.mrb[27].mxu0  ;;  %v529_v44 = vpop.f32.mrb[27].mxu1  ;;  %2662 = vmatmul.mubr.msk.bf16.gmra.mrb[52].mxu0 %vm705_vm4, %v643_v33  ;;  %2679 = vmatmul.mubr.msk.bf16.gmra.mrb[52].mxu1 %vm705_vm4, %v643_v33 }
 0x12b   :  { %v591_v41 = vmax.f32 %v413_v30, 0.0  ;;  %v593_v45 = vmax.f32 %v526_v8, 0.0  ;;  %v417_v35 = vadd.f32 %v416_v39, %v193_v61  ;;  %v530_v51 = vadd.f32 %v529_v44, %v193_v61  ;;  %859 = vmatprep.mubr.bf16.mxu0 %v4456_v55  ;;  %1052 = vmatprep.mubr.bf16.mxu1 %v4456_v55  ;;  %v198_v62 = vpop.permute.xlu0 %197  ;;  %v203_v60 = vpop.permute.xlu1 %202 }
 0x12c   :  { %v630_v63 = vmax.f32 %v590_v50, %v592_v53  ;;  %v594_v38 = vmax.f32 %v415_v54, 0.0  ;;  %v596_v42 = vmax.f32 %v528_v37, 0.0 }
 0x12d   :  { %v631_v58 = vmax.f32 %v591_v41, %v593_v45  ;;  %v595_v59 = vmax.f32 %v417_v35, 0.0  ;;  %v597_v34 = vmax.f32 %v530_v51, 0.0 }
 0x12e   :  { %v632_v36 = vmax.f32 %v594_v38, %v596_v42 }
 0x12f   :  { %v633_v56 = vmax.f32 %v595_v59, %v597_v34  ;;  %v420_v49 = vpop.f32.mrb[28].mxu0  ;;  %v533_v33 = vpop.f32.mrb[28].mxu1 }
 0x130   :  { %v644_v30 = vpack.c.bf16 %v632_v36, %v630_v63  ;;  %v421_v8 = vadd.f32 %v420_v49, %v198_v62  ;;  %v534_v46 = vadd.f32 %v533_v33, %v198_v62  ;;  %v422_v61 = vpop.f32.mrb[29].mxu0  ;;  %v535_v39 = vpop.f32.mrb[29].mxu1 }
 0x131   :  { %v652_v44 = vpack.c.bf16 %v633_v56, %v631_v58  ;;  %v423_v32 = vadd.f32 %v422_v61, %v198_v62  ;;  %v536_v29 = vadd.f32 %v535_v39, %v198_v62  ;;  %v424_v50 = vpop.f32.mrb[30].mxu0  ;;  %v537_v53 = vpop.f32.mrb[30].mxu1 }
 0x132   :  { %v598_v54 = vmax.f32 %v421_v8, 0.0  ;;  %v600_v37 = vmax.f32 %v534_v46, 0.0  ;;  %v425_v41 = vadd.f32 %v424_v50, %v203_v60  ;;  %v538_v45 = vadd.f32 %v537_v53, %v203_v60  ;;  %v426_v35 = vpop.f32.mrb[31].mxu0  ;;  %v539_v51 = vpop.f32.mrb[31].mxu1  ;;  %2663 = vmatmul.mubr.msk.bf16.gmra.mrb[56].mxu0 %vm705_vm4, %v644_v30  ;;  %2680 = vmatmul.mubr.msk.bf16.gmra.mrb[56].mxu1 %vm705_vm4, %v644_v30 }
 0x133   :  { %v599_v63 = vmax.f32 %v423_v32, 0.0  ;;  %v601_v38 = vmax.f32 %v536_v29, 0.0  ;;  %v427_v42 = vadd.f32 %v426_v35, %v203_v60  ;;  %v540_v59 = vadd.f32 %v539_v51, %v203_v60  ;;  %869 = vmatprep.mubr.bf16.mxu0 %v4456_v55  ;;  %1062 = vmatprep.mubr.bf16.mxu1 %v4456_v55 }
 0x134   :  { %v634_v58 = vmax.f32 %v598_v54, %v600_v37  ;;  %v602_v34 = vmax.f32 %v425_v41, 0.0  ;;  %v604_v62 = vmax.f32 %v538_v45, 0.0  ;;  %v655_v29 = vlaneseq }
 0x135   :  { %v635_v36 = vmax.f32 %v599_v63, %v601_v38  ;;  %v603_v56 = vmax.f32 %v427_v42, 0.0  ;;  %v605_v49 = vmax.f32 %v540_v59, 0.0 }
 0x136   :  { %v636_v33 = vmax.f32 %v602_v34, %v604_v62  ;;  %v656_v32 = vshrl.u32 %v655_v29, 7 }
 0x137   :  { %v637_v8 = vmax.f32 %v603_v56, %v605_v49 }
 0x138   :  { %v645_v46 = vpack.c.bf16 %v636_v33, %v634_v58 }
 0x139   :  { %v653_v61 = vpack.c.bf16 %v637_v8, %v635_v36 }
 0x13a   :  { %2664 = vmatmul.mubr.msk.bf16.gmra.mrb[60].mxu0 %vm705_vm4, %v645_v46  ;;  %2681 = vmatmul.mubr.msk.bf16.gmra.mrb[60].mxu1 %vm705_vm4, %v645_v46 }
 0x13b   :  { %879 = vmatprep.mubr.bf16.mxu0 %v4456_v55  ;;  %1072 = vmatprep.mubr.bf16.mxu1 %v4456_v55 }
 0x142   :  { %2665 = vmatmul.mubr.msk.bf16.gmra.mrb[64].mxu0 %vm705_vm4, %v3520_v57  ;;  %2682 = vmatmul.mubr.msk.bf16.gmra.mrb[64].mxu1 %vm705_vm4, %v3520_v57  ;;  %v657_v57 = vsub.s32 0, %v656_v32 }
 0x143   :  { %889 = vmatprep.mubr.bf16.mxu0 %v4456_v55  ;;  %1082 = vmatprep.mubr.bf16.mxu1 %v4456_v55 }
 0x14a   :  { %2666 = vmatmul.mubr.msk.bf16.gmra.mrb[68].mxu0 %vm705_vm4, %v3526_v47  ;;  %2683 = vmatmul.mubr.msk.bf16.gmra.mrb[68].mxu1 %vm705_vm4, %v3526_v47  ;;  %v665_v47 = vsub.s32 2, %v656_v32 }
 0x14b   :  { %899 = vmatprep.mubr.bf16.mxu0 %v4456_v55  ;;  %1092 = vmatprep.mubr.bf16.mxu1 %v4456_v55 }
 0x152   :  { %2667 = vmatmul.mubr.msk.bf16.gmra.mrb[72].mxu0 %vm705_vm4, %v3532_v40  ;;  %2684 = vmatmul.mubr.msk.bf16.gmra.mrb[72].mxu1 %vm705_vm4, %v3532_v40  ;;  %v101_v40 = vld [vmem:[%s4365_s5] sm:$0xf]  ;;  %s3749_s5 = smov 0  }
 0x153   :  { %909 = vmatprep.mubr.bf16.mxu0 %v4456_v55  ;;  %1102 = vmatprep.mubr.bf16.mxu1 %v4456_v55  ;;  %v3611_v60 = vrot.slane %v101_v40, %v665_v47 }
 0x15a   :  { %2668 = vmatmul.mubr.msk.bf16.gmra.mrb[76].mxu0 %vm705_vm4, %v3538_v48  ;;  %2685 = vmatmul.mubr.msk.bf16.gmra.mrb[76].mxu1 %vm705_vm4, %v3538_v48  ;;  %v661_v48 = vsub.s32 1, %v656_v32 }
 0x15b   :  { %919 = vmatprep.mubr.bf16.mxu0 %v4456_v55  ;;  %1112 = vmatprep.mubr.bf16.mxu1 %v4456_v55 }
 0x15c   :  { %v3613_v30 = vrot.slane %v101_v40, %v661_v48 }
 0x162   :  { %2669 = vmatmul.mubr.msk.bf16.gmra.mrb[80].mxu0 %vm705_vm4, %v3544_v52  ;;  %2686 = vmatmul.mubr.msk.bf16.gmra.mrb[80].mxu1 %vm705_vm4, %v3544_v52  ;;  %v669_v52 = vsub.s32 3, %v656_v32 }
 0x163   :  { %929 = vmatprep.mubr.bf16.mxu0 %v4456_v55  ;;  %1122 = vmatprep.mubr.bf16.mxu1 %v4456_v55 }
 0x16a   :  { %2670 = vmatmul.mubr.msk.bf16.gmra.mrb[84].mxu0 %vm705_vm4, %v3550_v43  ;;  %2687 = vmatmul.mubr.msk.bf16.gmra.mrb[84].mxu1 %vm705_vm4, %v3550_v43  ;;  %v3609_v43 = vrot.slane %v101_v40, %v657_v57 }
 0x16b   :  { %939 = vmatprep.mubr.bf16.mxu0 %v4456_v55  ;;  %1132 = vmatprep.mubr.bf16.mxu1 %v4456_v55 }
 0x172   :  { %2671 = vmatmul.mubr.msk.bf16.gmra.mrb[88].mxu0 %vm705_vm4, %v652_v44  ;;  %2688 = vmatmul.mubr.msk.bf16.gmra.mrb[88].mxu1 %vm705_vm4, %v652_v44 }
 0x173   :  { %949 = vmatprep.mubr.bf16.mxu0 %v4456_v55  ;;  %1142 = vmatprep.mubr.bf16.mxu1 %v4456_v55  ;;  %v3615_v55 = vrot.slane %v101_v40, %v669_v52 }
 0x17a   :  { %2672 = vmatmul.mubr.msk.bf16.gmra.mrb[92].mxu0 %vm705_vm4, %v653_v61  ;;  %2689 = vmatmul.mubr.msk.bf16.gmra.mrb[92].mxu1 %vm705_vm4, %v653_v61 }
 0x1d5   :  { %v801_v39 = vpop.f32.mrb[32].mxu0  ;;  %v994_v44 = vpop.f32.mrb[32].mxu1 }
 0x1d6   :  { %v802_v50 = vadd.f32 %v801_v39, %v3609_v43  ;;  %v995_v53 = vadd.f32 %v994_v44, %v3611_v60  ;;  %v803_v54 = vpop.f32.mrb[33].mxu0  ;;  %v996_v37 = vpop.f32.mrb[33].mxu1 }
 0x1d7   :  { %v804_v41 = vadd.f32 %v803_v54, %v3613_v30  ;;  %v997_v45 = vadd.f32 %v996_v37, %v3615_v55  ;;  %v805_v35 = vpop.f32.mrb[34].mxu0  ;;  %v998_v51 = vpop.f32.mrb[34].mxu1 }
 0x1d8   :  { %1153 = vst [vmem:[#allocation2] sm:$0xff] %v802_v50  ;;  %1155 = vst [vmem:[#allocation2 + $0x10] sm:$0xff] %v995_v53  ;;  %v806_v63 = vadd.f32 %v805_v35, %v3609_v43  ;;  %v999_v38 = vadd.f32 %v998_v51, %v3611_v60  ;;  %v807_v42 = vpop.f32.mrb[35].mxu0  ;;  %v1000_v59 = vpop.f32.mrb[35].mxu1 }
 0x1d9   :  { %1154 = vst [vmem:[#allocation2 + $0x8] sm:$0xff] %v804_v41  ;;  %1156 = vst [vmem:[#allocation2 + $0x18] sm:$0xff] %v997_v45  ;;  %v808_v58 = vadd.f32 %v807_v42, %v3613_v30  ;;  %v1001_v34 = vadd.f32 %v1000_v59, %v3615_v55 }
 0x1da   :  { %1157 = vst [vmem:[#allocation2 + $0x20] sm:$0xff] %v806_v63  ;;  %1159 = vst [vmem:[#allocation2 + $0x30] sm:$0xff] %v999_v38 }
 0x1db   :  { %1158 = vst [vmem:[#allocation2 + $0x28] sm:$0xff] %v808_v58  ;;  %1160 = vst [vmem:[#allocation2 + $0x38] sm:$0xff] %v1001_v34 }
 0x1dd   :  { %v811_v62 = vpop.f32.mrb[36].mxu0  ;;  %v1004_v36 = vpop.f32.mrb[36].mxu1 }
 0x1de   :  { %v812_v56 = vadd.f32 %v811_v62, %v3609_v43  ;;  %v1005_v49 = vadd.f32 %v1004_v36, %v3611_v60  ;;  %v813_v33 = vpop.f32.mrb[37].mxu0  ;;  %v1006_v8 = vpop.f32.mrb[37].mxu1 }
 0x1df   :  { %v814_v46 = vadd.f32 %v813_v33, %v3613_v30  ;;  %v1007_v61 = vadd.f32 %v1006_v8, %v3615_v55  ;;  %v815_v29 = vpop.f32.mrb[38].mxu0  ;;  %v1008_v32 = vpop.f32.mrb[38].mxu1 }
 0x1e0   :  { %1161 = vst [vmem:[#allocation2 + $0x40] sm:$0xff] %v812_v56  ;;  %1163 = vst [vmem:[#allocation2 + $0x50] sm:$0xff] %v1005_v49  ;;  %v816_v57 = vadd.f32 %v815_v29, %v3609_v43  ;;  %v1009_v47 = vadd.f32 %v1008_v32, %v3611_v60  ;;  %v817_v40 = vpop.f32.mrb[39].mxu0  ;;  %v1010_v48 = vpop.f32.mrb[39].mxu1 }
 0x1e1   :  { %1162 = vst [vmem:[#allocation2 + $0x48] sm:$0xff] %v814_v46  ;;  %1164 = vst [vmem:[#allocation2 + $0x58] sm:$0xff] %v1007_v61  ;;  %v818_v52 = vadd.f32 %v817_v40, %v3613_v30  ;;  %v1011_v39 = vadd.f32 %v1010_v48, %v3615_v55 }
 0x1e2   :  { %1165 = vst [vmem:[#allocation2 + $0x60] sm:$0xff] %v816_v57  ;;  %1167 = vst [vmem:[#allocation2 + $0x70] sm:$0xff] %v1009_v47 }
 0x1e3   :  { %1166 = vst [vmem:[#allocation2 + $0x68] sm:$0xff] %v818_v52  ;;  %1168 = vst [vmem:[#allocation2 + $0x78] sm:$0xff] %v1011_v39 }
 0x1e5   :  { %v821_v44 = vpop.f32.mrb[40].mxu0  ;;  %v1014_v50 = vpop.f32.mrb[40].mxu1 }
 0x1e6   :  { %v822_v53 = vadd.f32 %v821_v44, %v3609_v43  ;;  %v1015_v54 = vadd.f32 %v1014_v50, %v3611_v60  ;;  %v823_v37 = vpop.f32.mrb[41].mxu0  ;;  %v1016_v41 = vpop.f32.mrb[41].mxu1 }
 0x1e7   :  { %v824_v45 = vadd.f32 %v823_v37, %v3613_v30  ;;  %v1017_v35 = vadd.f32 %v1016_v41, %v3615_v55  ;;  %v825_v51 = vpop.f32.mrb[42].mxu0  ;;  %v1018_v63 = vpop.f32.mrb[42].mxu1 }
 0x1e8   :  { %1169 = vst [vmem:[#allocation2 + $0x80] sm:$0xff] %v822_v53  ;;  %1171 = vst [vmem:[#allocation2 + $0x90] sm:$0xff] %v1015_v54  ;;  %v826_v38 = vadd.f32 %v825_v51, %v3609_v43  ;;  %v1019_v42 = vadd.f32 %v1018_v63, %v3611_v60  ;;  %v827_v59 = vpop.f32.mrb[43].mxu0  ;;  %v1020_v58 = vpop.f32.mrb[43].mxu1 }
 0x1e9   :  { %1170 = vst [vmem:[#allocation2 + $0x88] sm:$0xff] %v824_v45  ;;  %1172 = vst [vmem:[#allocation2 + $0x98] sm:$0xff] %v1017_v35  ;;  %v828_v34 = vadd.f32 %v827_v59, %v3613_v30  ;;  %v1021_v62 = vadd.f32 %v1020_v58, %v3615_v55 }
 0x1ea   :  { %1173 = vst [vmem:[#allocation2 + $0xa0] sm:$0xff] %v826_v38  ;;  %1175 = vst [vmem:[#allocation2 + $0xb0] sm:$0xff] %v1019_v42 }
 0x1eb   :  { %1174 = vst [vmem:[#allocation2 + $0xa8] sm:$0xff] %v828_v34  ;;  %1176 = vst [vmem:[#allocation2 + $0xb8] sm:$0xff] %v1021_v62 }
 0x1ed   :  { %v831_v36 = vpop.f32.mrb[44].mxu0  ;;  %v1024_v56 = vpop.f32.mrb[44].mxu1 }
 0x1ee   :  { %v832_v49 = vadd.f32 %v831_v36, %v3609_v43  ;;  %v1025_v33 = vadd.f32 %v1024_v56, %v3611_v60  ;;  %v833_v8 = vpop.f32.mrb[45].mxu0  ;;  %v1026_v46 = vpop.f32.mrb[45].mxu1 }
 0x1ef   :  { %v834_v61 = vadd.f32 %v833_v8, %v3613_v30  ;;  %v1027_v29 = vadd.f32 %v1026_v46, %v3615_v55  ;;  %v835_v32 = vpop.f32.mrb[46].mxu0  ;;  %v1028_v57 = vpop.f32.mrb[46].mxu1 }
 0x1f0   :  { %1177 = vst [vmem:[#allocation2 + $0xc0] sm:$0xff] %v832_v49  ;;  %1179 = vst [vmem:[#allocation2 + $0xd0] sm:$0xff] %v1025_v33  ;;  %v836_v47 = vadd.f32 %v835_v32, %v3609_v43  ;;  %v1029_v40 = vadd.f32 %v1028_v57, %v3611_v60  ;;  %v837_v48 = vpop.f32.mrb[47].mxu0  ;;  %v1030_v52 = vpop.f32.mrb[47].mxu1 }
 0x1f1   :  { %1178 = vst [vmem:[#allocation2 + $0xc8] sm:$0xff] %v834_v61  ;;  %1180 = vst [vmem:[#allocation2 + $0xd8] sm:$0xff] %v1027_v29  ;;  %v838_v39 = vadd.f32 %v837_v48, %v3613_v30  ;;  %v1031_v44 = vadd.f32 %v1030_v52, %v3615_v55 }
 0x1f2   :  { %1181 = vst [vmem:[#allocation2 + $0xe0] sm:$0xff] %v836_v47  ;;  %1183 = vst [vmem:[#allocation2 + $0xf0] sm:$0xff] %v1029_v40 }
 0x1f3   :  { %1182 = vst [vmem:[#allocation2 + $0xe8] sm:$0xff] %v838_v39  ;;  %1184 = vst [vmem:[#allocation2 + $0xf8] sm:$0xff] %v1031_v44 }
 0x1f5   :  { %v841_v50 = vpop.f32.mrb[48].mxu0  ;;  %v1034_v53 = vpop.f32.mrb[48].mxu1 }
 0x1f6   :  { %v842_v54 = vadd.f32 %v841_v50, %v3609_v43  ;;  %v1035_v37 = vadd.f32 %v1034_v53, %v3611_v60  ;;  %v843_v41 = vpop.f32.mrb[49].mxu0  ;;  %v1036_v45 = vpop.f32.mrb[49].mxu1 }
 0x1f7   :  { %v844_v35 = vadd.f32 %v843_v41, %v3613_v30  ;;  %v1037_v51 = vadd.f32 %v1036_v45, %v3615_v55  ;;  %v845_v63 = vpop.f32.mrb[50].mxu0  ;;  %v1038_v38 = vpop.f32.mrb[50].mxu1 }
 0x1f8   :  { %1185 = vst [vmem:[#allocation2 + $0x100] sm:$0xff] %v842_v54  ;;  %1187 = vst [vmem:[#allocation2 + $0x110] sm:$0xff] %v1035_v37  ;;  %v846_v42 = vadd.f32 %v845_v63, %v3609_v43  ;;  %v1039_v59 = vadd.f32 %v1038_v38, %v3611_v60  ;;  %v847_v58 = vpop.f32.mrb[51].mxu0  ;;  %v1040_v34 = vpop.f32.mrb[51].mxu1 }
 0x1f9   :  { %1186 = vst [vmem:[#allocation2 + $0x108] sm:$0xff] %v844_v35  ;;  %1188 = vst [vmem:[#allocation2 + $0x118] sm:$0xff] %v1037_v51  ;;  %v848_v62 = vadd.f32 %v847_v58, %v3613_v30  ;;  %v1041_v36 = vadd.f32 %v1040_v34, %v3615_v55 }
 0x1fa   :  { %1189 = vst [vmem:[#allocation2 + $0x120] sm:$0xff] %v846_v42  ;;  %1191 = vst [vmem:[#allocation2 + $0x130] sm:$0xff] %v1039_v59 }
 0x1fb   :  { %1190 = vst [vmem:[#allocation2 + $0x128] sm:$0xff] %v848_v62  ;;  %1192 = vst [vmem:[#allocation2 + $0x138] sm:$0xff] %v1041_v36 }
 0x1fd   :  { %v851_v56 = vpop.f32.mrb[52].mxu0  ;;  %v1044_v49 = vpop.f32.mrb[52].mxu1 }
 0x1fe   :  { %v852_v33 = vadd.f32 %v851_v56, %v3609_v43  ;;  %v1045_v8 = vadd.f32 %v1044_v49, %v3611_v60  ;;  %v853_v46 = vpop.f32.mrb[53].mxu0  ;;  %v1046_v61 = vpop.f32.mrb[53].mxu1 }
 0x1ff   :  { %v854_v29 = vadd.f32 %v853_v46, %v3613_v30  ;;  %v1047_v32 = vadd.f32 %v1046_v61, %v3615_v55  ;;  %v855_v57 = vpop.f32.mrb[54].mxu0  ;;  %v1048_v47 = vpop.f32.mrb[54].mxu1 }
 0x200   :  { %1193 = vst [vmem:[#allocation2 + $0x140] sm:$0xff] %v852_v33  ;;  %1195 = vst [vmem:[#allocation2 + $0x150] sm:$0xff] %v1045_v8  ;;  %v856_v40 = vadd.f32 %v855_v57, %v3609_v43  ;;  %v1049_v48 = vadd.f32 %v1048_v47, %v3611_v60  ;;  %v857_v52 = vpop.f32.mrb[55].mxu0  ;;  %v1050_v39 = vpop.f32.mrb[55].mxu1 }
 0x201   :  { %1194 = vst [vmem:[#allocation2 + $0x148] sm:$0xff] %v854_v29  ;;  %1196 = vst [vmem:[#allocation2 + $0x158] sm:$0xff] %v1047_v32  ;;  %v858_v44 = vadd.f32 %v857_v52, %v3613_v30  ;;  %v1051_v50 = vadd.f32 %v1050_v39, %v3615_v55 }
 0x202   :  { %1197 = vst [vmem:[#allocation2 + $0x160] sm:$0xff] %v856_v40  ;;  %1199 = vst [vmem:[#allocation2 + $0x170] sm:$0xff] %v1049_v48 }
 0x203   :  { %1198 = vst [vmem:[#allocation2 + $0x168] sm:$0xff] %v858_v44  ;;  %1200 = vst [vmem:[#allocation2 + $0x178] sm:$0xff] %v1051_v50 }
 0x205   :  { %v861_v53 = vpop.f32.mrb[56].mxu0  ;;  %v1054_v54 = vpop.f32.mrb[56].mxu1 }
 0x206   :  { %v862_v37 = vadd.f32 %v861_v53, %v3609_v43  ;;  %v1055_v41 = vadd.f32 %v1054_v54, %v3611_v60  ;;  %v863_v45 = vpop.f32.mrb[57].mxu0  ;;  %v1056_v35 = vpop.f32.mrb[57].mxu1 }
 0x207   :  { %v864_v51 = vadd.f32 %v863_v45, %v3613_v30  ;;  %v1057_v63 = vadd.f32 %v1056_v35, %v3615_v55  ;;  %v865_v38 = vpop.f32.mrb[58].mxu0  ;;  %v1058_v42 = vpop.f32.mrb[58].mxu1 }
 0x208   :  { %1201 = vst [vmem:[#allocation2 + $0x180] sm:$0xff] %v862_v37  ;;  %1203 = vst [vmem:[#allocation2 + $0x190] sm:$0xff] %v1055_v41  ;;  %v866_v59 = vadd.f32 %v865_v38, %v3609_v43  ;;  %v1059_v58 = vadd.f32 %v1058_v42, %v3611_v60  ;;  %v867_v34 = vpop.f32.mrb[59].mxu0  ;;  %v1060_v62 = vpop.f32.mrb[59].mxu1 }
 0x209   :  { %1202 = vst [vmem:[#allocation2 + $0x188] sm:$0xff] %v864_v51  ;;  %1204 = vst [vmem:[#allocation2 + $0x198] sm:$0xff] %v1057_v63  ;;  %v868_v36 = vadd.f32 %v867_v34, %v3613_v30  ;;  %v1061_v56 = vadd.f32 %v1060_v62, %v3615_v55 }
 0x20a   :  { %1205 = vst [vmem:[#allocation2 + $0x1a0] sm:$0xff] %v866_v59  ;;  %1207 = vst [vmem:[#allocation2 + $0x1b0] sm:$0xff] %v1059_v58 }
 0x20b   :  { %1206 = vst [vmem:[#allocation2 + $0x1a8] sm:$0xff] %v868_v36  ;;  %1208 = vst [vmem:[#allocation2 + $0x1b8] sm:$0xff] %v1061_v56 }
 0x20d   :  { %v871_v49 = vpop.f32.mrb[60].mxu0  ;;  %v1064_v33 = vpop.f32.mrb[60].mxu1 }
 0x20e   :  { %v872_v8 = vadd.f32 %v871_v49, %v3609_v43  ;;  %v1065_v46 = vadd.f32 %v1064_v33, %v3611_v60  ;;  %v873_v61 = vpop.f32.mrb[61].mxu0  ;;  %v1066_v29 = vpop.f32.mrb[61].mxu1 }
 0x20f   :  { %v874_v32 = vadd.f32 %v873_v61, %v3613_v30  ;;  %v1067_v57 = vadd.f32 %v1066_v29, %v3615_v55  ;;  %v875_v47 = vpop.f32.mrb[62].mxu0  ;;  %v1068_v40 = vpop.f32.mrb[62].mxu1 }
 0x210   :  { %1209 = vst [vmem:[#allocation2 + $0x1c0] sm:$0xff] %v872_v8  ;;  %1211 = vst [vmem:[#allocation2 + $0x1d0] sm:$0xff] %v1065_v46  ;;  %v876_v48 = vadd.f32 %v875_v47, %v3609_v43  ;;  %v1069_v52 = vadd.f32 %v1068_v40, %v3611_v60  ;;  %v877_v39 = vpop.f32.mrb[63].mxu0  ;;  %v1070_v44 = vpop.f32.mrb[63].mxu1 }
 0x211   :  { %1210 = vst [vmem:[#allocation2 + $0x1c8] sm:$0xff] %v874_v32  ;;  %1212 = vst [vmem:[#allocation2 + $0x1d8] sm:$0xff] %v1067_v57  ;;  %v878_v50 = vadd.f32 %v877_v39, %v3613_v30  ;;  %v1071_v53 = vadd.f32 %v1070_v44, %v3615_v55 }
 0x212   :  { %1213 = vst [vmem:[#allocation2 + $0x1e0] sm:$0xff] %v876_v48  ;;  %1215 = vst [vmem:[#allocation2 + $0x1f0] sm:$0xff] %v1069_v52 }
 0x213   :  { %1214 = vst [vmem:[#allocation2 + $0x1e8] sm:$0xff] %v878_v50  ;;  %1216 = vst [vmem:[#allocation2 + $0x1f8] sm:$0xff] %v1071_v53 }
 0x215   :  { %v881_v54 = vpop.f32.mrb[64].mxu0  ;;  %v1074_v37 = vpop.f32.mrb[64].mxu1 }
 0x216   :  { %v882_v41 = vadd.f32 %v881_v54, %v3609_v43  ;;  %v1075_v45 = vadd.f32 %v1074_v37, %v3611_v60  ;;  %v883_v35 = vpop.f32.mrb[65].mxu0  ;;  %v1076_v51 = vpop.f32.mrb[65].mxu1 }
 0x217   :  { %v884_v63 = vadd.f32 %v883_v35, %v3613_v30  ;;  %v1077_v38 = vadd.f32 %v1076_v51, %v3615_v55  ;;  %v885_v42 = vpop.f32.mrb[66].mxu0  ;;  %v1078_v59 = vpop.f32.mrb[66].mxu1 }
 0x218   :  { %1217 = vst [vmem:[#allocation2 + $0x200] sm:$0xff] %v882_v41  ;;  %1219 = vst [vmem:[#allocation2 + $0x210] sm:$0xff] %v1075_v45  ;;  %v886_v58 = vadd.f32 %v885_v42, %v3609_v43  ;;  %v1079_v34 = vadd.f32 %v1078_v59, %v3611_v60  ;;  %v887_v62 = vpop.f32.mrb[67].mxu0  ;;  %v1080_v36 = vpop.f32.mrb[67].mxu1 }
 0x219   :  { %1218 = vst [vmem:[#allocation2 + $0x208] sm:$0xff] %v884_v63  ;;  %1220 = vst [vmem:[#allocation2 + $0x218] sm:$0xff] %v1077_v38  ;;  %v888_v56 = vadd.f32 %v887_v62, %v3613_v30  ;;  %v1081_v49 = vadd.f32 %v1080_v36, %v3615_v55 }
 0x21a   :  { %1221 = vst [vmem:[#allocation2 + $0x220] sm:$0xff] %v886_v58  ;;  %1223 = vst [vmem:[#allocation2 + $0x230] sm:$0xff] %v1079_v34 }
 0x21b   :  { %1222 = vst [vmem:[#allocation2 + $0x228] sm:$0xff] %v888_v56  ;;  %1224 = vst [vmem:[#allocation2 + $0x238] sm:$0xff] %v1081_v49 }
 0x21d   :  { %v891_v33 = vpop.f32.mrb[68].mxu0  ;;  %v1084_v8 = vpop.f32.mrb[68].mxu1 }
 0x21e   :  { %v892_v46 = vadd.f32 %v891_v33, %v3609_v43  ;;  %v1085_v61 = vadd.f32 %v1084_v8, %v3611_v60  ;;  %v893_v29 = vpop.f32.mrb[69].mxu0  ;;  %v1086_v32 = vpop.f32.mrb[69].mxu1 }
 0x21f   :  { %v894_v57 = vadd.f32 %v893_v29, %v3613_v30  ;;  %v1087_v47 = vadd.f32 %v1086_v32, %v3615_v55  ;;  %v895_v40 = vpop.f32.mrb[70].mxu0  ;;  %v1088_v48 = vpop.f32.mrb[70].mxu1 }
 0x220   :  { %1225 = vst [vmem:[#allocation2 + $0x240] sm:$0xff] %v892_v46  ;;  %1227 = vst [vmem:[#allocation2 + $0x250] sm:$0xff] %v1085_v61  ;;  %v896_v52 = vadd.f32 %v895_v40, %v3609_v43  ;;  %v1089_v39 = vadd.f32 %v1088_v48, %v3611_v60  ;;  %v897_v44 = vpop.f32.mrb[71].mxu0  ;;  %v1090_v50 = vpop.f32.mrb[71].mxu1 }
 0x221   :  { %1226 = vst [vmem:[#allocation2 + $0x248] sm:$0xff] %v894_v57  ;;  %1228 = vst [vmem:[#allocation2 + $0x258] sm:$0xff] %v1087_v47  ;;  %v898_v53 = vadd.f32 %v897_v44, %v3613_v30  ;;  %v1091_v54 = vadd.f32 %v1090_v50, %v3615_v55 }
 0x222   :  { %1229 = vst [vmem:[#allocation2 + $0x260] sm:$0xff] %v896_v52  ;;  %1231 = vst [vmem:[#allocation2 + $0x270] sm:$0xff] %v1089_v39 }
 0x223   :  { %1230 = vst [vmem:[#allocation2 + $0x268] sm:$0xff] %v898_v53  ;;  %1232 = vst [vmem:[#allocation2 + $0x278] sm:$0xff] %v1091_v54 }
 0x225   :  { %v901_v37 = vpop.f32.mrb[72].mxu0  ;;  %v1094_v41 = vpop.f32.mrb[72].mxu1 }
 0x226   :  { %v902_v45 = vadd.f32 %v901_v37, %v3609_v43  ;;  %v1095_v35 = vadd.f32 %v1094_v41, %v3611_v60  ;;  %v903_v51 = vpop.f32.mrb[73].mxu0  ;;  %v1096_v63 = vpop.f32.mrb[73].mxu1 }
 0x227   :  { %v904_v38 = vadd.f32 %v903_v51, %v3613_v30  ;;  %v1097_v42 = vadd.f32 %v1096_v63, %v3615_v55  ;;  %v905_v59 = vpop.f32.mrb[74].mxu0  ;;  %v1098_v58 = vpop.f32.mrb[74].mxu1 }
 0x228   :  { %1233 = vst [vmem:[#allocation2 + $0x280] sm:$0xff] %v902_v45  ;;  %1235 = vst [vmem:[#allocation2 + $0x290] sm:$0xff] %v1095_v35  ;;  %v906_v34 = vadd.f32 %v905_v59, %v3609_v43  ;;  %v1099_v62 = vadd.f32 %v1098_v58, %v3611_v60  ;;  %v907_v36 = vpop.f32.mrb[75].mxu0  ;;  %v1100_v56 = vpop.f32.mrb[75].mxu1 }
 0x229   :  { %1234 = vst [vmem:[#allocation2 + $0x288] sm:$0xff] %v904_v38  ;;  %1236 = vst [vmem:[#allocation2 + $0x298] sm:$0xff] %v1097_v42  ;;  %v908_v49 = vadd.f32 %v907_v36, %v3613_v30  ;;  %v1101_v33 = vadd.f32 %v1100_v56, %v3615_v55 }
 0x22a   :  { %1237 = vst [vmem:[#allocation2 + $0x2a0] sm:$0xff] %v906_v34  ;;  %1239 = vst [vmem:[#allocation2 + $0x2b0] sm:$0xff] %v1099_v62 }
 0x22b   :  { %1238 = vst [vmem:[#allocation2 + $0x2a8] sm:$0xff] %v908_v49  ;;  %1240 = vst [vmem:[#allocation2 + $0x2b8] sm:$0xff] %v1101_v33 }
 0x22d   :  { %v911_v8 = vpop.f32.mrb[76].mxu0  ;;  %v1104_v46 = vpop.f32.mrb[76].mxu1 }
 0x22e   :  { %v912_v61 = vadd.f32 %v911_v8, %v3609_v43  ;;  %v1105_v29 = vadd.f32 %v1104_v46, %v3611_v60  ;;  %v913_v32 = vpop.f32.mrb[77].mxu0  ;;  %v1106_v57 = vpop.f32.mrb[77].mxu1 }
 0x22f   :  { %v914_v47 = vadd.f32 %v913_v32, %v3613_v30  ;;  %v1107_v40 = vadd.f32 %v1106_v57, %v3615_v55  ;;  %v915_v48 = vpop.f32.mrb[78].mxu0  ;;  %v1108_v52 = vpop.f32.mrb[78].mxu1 }
 0x230   :  { %1241 = vst [vmem:[#allocation2 + $0x2c0] sm:$0xff] %v912_v61  ;;  %1243 = vst [vmem:[#allocation2 + $0x2d0] sm:$0xff] %v1105_v29  ;;  %v916_v39 = vadd.f32 %v915_v48, %v3609_v43  ;;  %v1109_v44 = vadd.f32 %v1108_v52, %v3611_v60  ;;  %v917_v50 = vpop.f32.mrb[79].mxu0  ;;  %v1110_v53 = vpop.f32.mrb[79].mxu1 }
 0x231   :  { %1242 = vst [vmem:[#allocation2 + $0x2c8] sm:$0xff] %v914_v47  ;;  %1244 = vst [vmem:[#allocation2 + $0x2d8] sm:$0xff] %v1107_v40  ;;  %v918_v54 = vadd.f32 %v917_v50, %v3613_v30  ;;  %v1111_v37 = vadd.f32 %v1110_v53, %v3615_v55 }
 0x232   :  { %1245 = vst [vmem:[#allocation2 + $0x2e0] sm:$0xff] %v916_v39  ;;  %1247 = vst [vmem:[#allocation2 + $0x2f0] sm:$0xff] %v1109_v44 }
 0x233   :  { %1246 = vst [vmem:[#allocation2 + $0x2e8] sm:$0xff] %v918_v54  ;;  %1248 = vst [vmem:[#allocation2 + $0x2f8] sm:$0xff] %v1111_v37 }
 0x235   :  { %v921_v41 = vpop.f32.mrb[80].mxu0  ;;  %v1114_v45 = vpop.f32.mrb[80].mxu1 }
 0x236   :  { %v922_v35 = vadd.f32 %v921_v41, %v3609_v43  ;;  %v1115_v51 = vadd.f32 %v1114_v45, %v3611_v60  ;;  %v923_v63 = vpop.f32.mrb[81].mxu0  ;;  %v1116_v38 = vpop.f32.mrb[81].mxu1 }
 0x237   :  { %v924_v42 = vadd.f32 %v923_v63, %v3613_v30  ;;  %v1117_v59 = vadd.f32 %v1116_v38, %v3615_v55  ;;  %v925_v58 = vpop.f32.mrb[82].mxu0  ;;  %v1118_v34 = vpop.f32.mrb[82].mxu1 }
 0x238   :  { %1249 = vst [vmem:[#allocation2 + $0x300] sm:$0xff] %v922_v35  ;;  %1251 = vst [vmem:[#allocation2 + $0x310] sm:$0xff] %v1115_v51  ;;  %v926_v62 = vadd.f32 %v925_v58, %v3609_v43  ;;  %v1119_v36 = vadd.f32 %v1118_v34, %v3611_v60  ;;  %v927_v56 = vpop.f32.mrb[83].mxu0  ;;  %v1120_v49 = vpop.f32.mrb[83].mxu1 }
 0x239   :  { %1250 = vst [vmem:[#allocation2 + $0x308] sm:$0xff] %v924_v42  ;;  %1252 = vst [vmem:[#allocation2 + $0x318] sm:$0xff] %v1117_v59  ;;  %v928_v33 = vadd.f32 %v927_v56, %v3613_v30  ;;  %v1121_v8 = vadd.f32 %v1120_v49, %v3615_v55 }
 0x23a   :  { %1253 = vst [vmem:[#allocation2 + $0x320] sm:$0xff] %v926_v62  ;;  %1255 = vst [vmem:[#allocation2 + $0x330] sm:$0xff] %v1119_v36 }
 0x23b   :  { %1254 = vst [vmem:[#allocation2 + $0x328] sm:$0xff] %v928_v33  ;;  %1256 = vst [vmem:[#allocation2 + $0x338] sm:$0xff] %v1121_v8 }
 0x23d   :  { %v931_v46 = vpop.f32.mrb[84].mxu0  ;;  %v1124_v61 = vpop.f32.mrb[84].mxu1 }
 0x23e   :  { %v932_v29 = vadd.f32 %v931_v46, %v3609_v43  ;;  %v1125_v32 = vadd.f32 %v1124_v61, %v3611_v60  ;;  %v933_v57 = vpop.f32.mrb[85].mxu0  ;;  %v1126_v47 = vpop.f32.mrb[85].mxu1 }
 0x23f   :  { %v934_v40 = vadd.f32 %v933_v57, %v3613_v30  ;;  %v1127_v48 = vadd.f32 %v1126_v47, %v3615_v55  ;;  %v935_v52 = vpop.f32.mrb[86].mxu0  ;;  %v1128_v39 = vpop.f32.mrb[86].mxu1 }
 0x240   :  { %1257 = vst [vmem:[#allocation2 + $0x340] sm:$0xff] %v932_v29  ;;  %1259 = vst [vmem:[#allocation2 + $0x350] sm:$0xff] %v1125_v32  ;;  %v936_v44 = vadd.f32 %v935_v52, %v3609_v43  ;;  %v1129_v50 = vadd.f32 %v1128_v39, %v3611_v60  ;;  %v937_v53 = vpop.f32.mrb[87].mxu0  ;;  %v1130_v54 = vpop.f32.mrb[87].mxu1 }
 0x241   :  { %1258 = vst [vmem:[#allocation2 + $0x348] sm:$0xff] %v934_v40  ;;  %1260 = vst [vmem:[#allocation2 + $0x358] sm:$0xff] %v1127_v48  ;;  %v938_v37 = vadd.f32 %v937_v53, %v3613_v30  ;;  %v1131_v41 = vadd.f32 %v1130_v54, %v3615_v55 }
 0x242   :  { %1261 = vst [vmem:[#allocation2 + $0x360] sm:$0xff] %v936_v44  ;;  %1263 = vst [vmem:[#allocation2 + $0x370] sm:$0xff] %v1129_v50 }
 0x243   :  { %1262 = vst [vmem:[#allocation2 + $0x368] sm:$0xff] %v938_v37  ;;  %1264 = vst [vmem:[#allocation2 + $0x378] sm:$0xff] %v1131_v41 }
 0x245   :  { %v941_v45 = vpop.f32.mrb[88].mxu0  ;;  %v1134_v35 = vpop.f32.mrb[88].mxu1 }
 0x246   :  { %v942_v51 = vadd.f32 %v941_v45, %v3609_v43  ;;  %v1135_v63 = vadd.f32 %v1134_v35, %v3611_v60  ;;  %v943_v38 = vpop.f32.mrb[89].mxu0  ;;  %v1136_v42 = vpop.f32.mrb[89].mxu1  ;;  %v3745_v35 = vmov 0.0  }
 0x247   :  { %v944_v59 = vadd.f32 %v943_v38, %v3613_v30  ;;  %v1137_v58 = vadd.f32 %v1136_v42, %v3615_v55  ;;  %v945_v34 = vpop.f32.mrb[90].mxu0  ;;  %v1138_v62 = vpop.f32.mrb[90].mxu1 }
 0x248   :  { %1265 = vst [vmem:[#allocation2 + $0x380] sm:$0xff] %v942_v51  ;;  %1267 = vst [vmem:[#allocation2 + $0x390] sm:$0xff] %v1135_v63  ;;  %v946_v36 = vadd.f32 %v945_v34, %v3609_v43  ;;  %v1139_v56 = vadd.f32 %v1138_v62, %v3611_v60  ;;  %v947_v49 = vpop.f32.mrb[91].mxu0  ;;  %v1140_v33 = vpop.f32.mrb[91].mxu1  ;;  %v3747_v51 = vmov 0.0  }
 0x249   :  { %1266 = vst [vmem:[#allocation2 + $0x388] sm:$0xff] %v944_v59  ;;  %1268 = vst [vmem:[#allocation2 + $0x398] sm:$0xff] %v1137_v58  ;;  %v948_v8 = vadd.f32 %v947_v49, %v3613_v30  ;;  %v1141_v46 = vadd.f32 %v1140_v33, %v3615_v55 }
 0x24a   :  { %1269 = vst [vmem:[#allocation2 + $0x3a0] sm:$0xff] %v946_v36  ;;  %1271 = vst [vmem:[#allocation2 + $0x3b0] sm:$0xff] %v1139_v56 }
 0x24b   :  { %1270 = vst [vmem:[#allocation2 + $0x3a8] sm:$0xff] %v948_v8  ;;  %1272 = vst [vmem:[#allocation2 + $0x3b8] sm:$0xff] %v1141_v46 }
 0x24d   :  { %v951_v61 = vpop.f32.mrb[92].mxu0  ;;  %v1144_v29 = vpop.f32.mrb[92].mxu1 }
 0x24e   :  { %v952_v32 = vadd.f32 %v951_v61, %v3609_v43  ;;  %v1145_v57 = vadd.f32 %v1144_v29, %v3611_v60  ;;  %v953_v47 = vpop.f32.mrb[93].mxu0  ;;  %v1146_v40 = vpop.f32.mrb[93].mxu1 }
 0x24f   :  { %v954_v48 = vadd.f32 %v953_v47, %v3613_v30  ;;  %v1147_v52 = vadd.f32 %v1146_v40, %v3615_v55  ;;  %v955_v39 = vpop.f32.mrb[94].mxu0  ;;  %v1148_v44 = vpop.f32.mrb[94].mxu1 }
 0x250   :  { %1273 = vst [vmem:[#allocation2 + $0x3c0] sm:$0xff] %v952_v32  ;;  %1275 = vst [vmem:[#allocation2 + $0x3d0] sm:$0xff] %v1145_v57  ;;  %v956_v50 = vadd.f32 %v955_v39, %v3609_v43  ;;  %v1149_v53 = vadd.f32 %v1148_v44, %v3611_v60  ;;  %v957_v54 = vpop.f32.mrb[95].mxu0  ;;  %v1150_v37 = vpop.f32.mrb[95].mxu1 }
 0x251   :  { %1274 = vst [vmem:[#allocation2 + $0x3c8] sm:$0xff] %v954_v48  ;;  %1276 = vst [vmem:[#allocation2 + $0x3d8] sm:$0xff] %v1147_v52  ;;  %v958_v41 = vadd.f32 %v957_v54, %v3613_v30  ;;  %v1151_v45 = vadd.f32 %v1150_v37, %v3615_v55 }
 0x252   :  { %1277 = vst [vmem:[#allocation2 + $0x3e0] sm:$0xff] %v956_v50  ;;  %1279 = vst [vmem:[#allocation2 + $0x3f0] sm:$0xff] %v1149_v53 }
 0x253   :  { %1278 = vst [vmem:[#allocation2 + $0x3e8] sm:$0xff] %v958_v41  ;;  %1280 = vst [vmem:[#allocation2 + $0x3f8] sm:$0xff] %v1151_v45 }
 0x254 LB: > { %v4457_v31 = vld [vmem:[#allocation36_spill] sm:$0xff]  ;;  %v4458_v28 = vld [vmem:[#allocation33_spill] sm:$0xff]  ;;  %v4460_v26 = vld [vmem:[#allocation31_spill] sm:$0xff]  ;;  %v4374_v62 = vmov 0   ;;  %s2690_s29 = sshll.u32 %s3073_s5, 3  ;;  %s1286_s5 = sadd.s32 1, %s3073_s5   ;;  %v3069_v51 = vphi %v3747_v51, %v4490_v51   ;;  %v3065_v35 = vphi %v3745_v35, %v2506_v35   ;;  %s3073_s5 = sphi %s3749_s5, %s1286_s5  }
 0x255   : > { %v4459_v27 = vld [vmem:[#allocation32_spill] sm:$0xff]  ;;  %v4461_v25 = vld [vmem:[#allocation30_spill] sm:$0xff]  ;;  %v4462_v24 = vld [vmem:[#allocation29_spill] sm:$0xff]  ;;  %1518 = vmatprep.mubr.bf16.mxu0 %v4374_v62  ;;  %1559 = vmatprep.mubr.bf16.mxu1 %v4374_v62  ;;  %v3886_v44 = vcombine.high %v4460_v26, %v4458_v28  ;;  %v3901_v37 = vcombine.low %v4460_v26, %v4458_v28  ;;  %s1299_s3 = sadd.s32 128, %s2690_s29  ;;  %s1290_s10 = sshra.s32 %s2690_s29, 3 }
 0x256   : > { %v4463_v23 = vld [vmem:[#allocation28_spill] sm:$0xff]  ;;  %v4464_v22 = vld [vmem:[#allocation27_spill] sm:$0xff]  ;;  %v4465_v21 = vld [vmem:[#allocation26_spill] sm:$0xff]  ;;  %v3876_v52 = vcombine.high %v4461_v25, %v4459_v27  ;;  %v3891_v50 = vcombine.low %v4461_v25, %v4459_v27  ;;  %s1300_s30 = sshra.s32 %s1299_s3, 3  ;;  %s2752_s4 = sshll.u32 %s1290_s10, 5 }
 0x257   : > { %v4466_v20 = vld [vmem:[#allocation25_spill] sm:$0xff]  ;;  %v4467_v19 = vld [vmem:[#allocation24_spill] sm:$0xff]  ;;  %v4468_v18 = vld [vmem:[#allocation23_spill] sm:$0xff]  ;;  %v3856_v57 = vcombine.high %v4465_v21, %v4463_v23  ;;  %v3866_v40 = vcombine.high %v4464_v22, %v4462_v24  ;;  %v3871_v48 = vcombine.low %v4465_v21, %v4463_v23  ;;  %v3881_v39 = vcombine.low %v4464_v22, %v4462_v24  ;;  %s2753_s9 = sshll.u32 %s1300_s30, 5  ;;  %s3970_s12 = scalar_lea.vmem [#allocation2], %s2752_s4 }
 0x258   : > { %v4469_v17 = vld [vmem:[#allocation22_spill] sm:$0xff]  ;;  %v4470_v16 = vld [vmem:[#allocation21_spill] sm:$0xff]  ;;  %v4471_v15 = vld [vmem:[#allocation20_spill] sm:$0xff]  ;;  %v3846_v29 = vcombine.high %v4468_v18, %v4466_v20  ;;  %v3861_v47 = vcombine.low %v4468_v18, %v4466_v20  ;;  %s3961_s11 = scalar_lea.vmem [#allocation2], %s2753_s9  ;;  %p1283_p0 = scmp.ge.s32.totalorder %s1286_s5, 16  }
 0x259   : > { %v4472_v14 = vld [vmem:[#allocation19_spill] sm:$0xff]  ;;  %v4473_v13 = vld [vmem:[#allocation18_spill] sm:$0xff]  ;;  %v4474_v12 = vld [vmem:[#allocation17_spill] sm:$0xff]  ;;  %v3836_v46 = vcombine.high %v4469_v17, %v4467_v19  ;;  %v3851_v32 = vcombine.low %v4469_v17, %v4467_v19  ;;  %vm3079_vm5 = vmmov (%p1283_p0), 0   ;;  %s3081_s13 = smov (%p1283_p0), [#allocation3]   ;;  %vm2585_vm6 = vcmask (%p1283_p0), 33792  }
 0x25a   : > { %v4475_v11 = vld [vmem:[#allocation16_spill] sm:$0xff]  ;;  %v4476_v10 = vld [vmem:[#allocation15_spill] sm:$0xff]  ;;  %v4477_v9 = vld [vmem:[#allocation14_spill] sm:$0xff]  ;;  %v3816_v56 = vcombine.high %v4473_v13, %v4471_v15  ;;  %v3826_v33 = vcombine.high %v4472_v14, %v4470_v16  ;;  %v3831_v8 = vcombine.low %v4473_v13, %v4471_v15  ;;  %v3841_v61 = vcombine.low %v4472_v14, %v4470_v16  ;;  %s2593_s14 = sshll.u32 (%p1283_p0), %s3081_s13, 4  ;;  %s2594_s14 = int_to_ptr.vmem [resolvable:$true] %s2593_s14 }
 0x25b   : > { %v4478_v7 = vld [vmem:[#allocation13_spill] sm:$0xff]  ;;  %v4479_v6 = vld [vmem:[#allocation12_spill] sm:$0xff]  ;;  %v4480_v5 = vld [vmem:[#allocation11_spill] sm:$0xff]  ;;  %v3794_v59 = vcombine.high %v4477_v9, %v4475_v11  ;;  %v3804_v34 = vcombine.high %v4476_v10, %v4474_v12  ;;  %v3810_v36 = vcombine.low %v4477_v9, %v4475_v11  ;;  %v3821_v49 = vcombine.low %v4476_v10, %v4474_v12  ;;  %s3027_s15 = scalar_lea.vmem (%p1283_p0), %s2594_s14, 32  ;;  %p3032_p2 = scmp.lt.s32.totalorder (%p1283_p0), %s2594_s14, %s2594_s14 }
 0x25c   : > { %v4481_v4 = vld [vmem:[#allocation10_spill] sm:$0xff]  ;;  %v4482_v3 = vld [vmem:[#allocation9_spill] sm:$0xff]  ;;  %v4483_v2 = vld [vmem:[#allocation8_spill] sm:$0xff]  ;;  %v3783_v38 = vcombine.high %v4480_v5, %v4478_v7  ;;  %v3799_v58 = vcombine.low %v4480_v5, %v4478_v7  ;;  %p3028_p1 = scmp.ne.s32.totalorder (%p1283_p0), %s2594_s14, %s3027_s15  ;;  %p3033_p3 = scmp.lt.s32.totalorder (%p1283_p0), %s3027_s15, %s3027_s15 }
 0x25d   : > { %v4484_v1 = vld [vmem:[#allocation7_spill] sm:$0xff]  ;;  %v4485_v0 = vld [vmem:[#allocation6_spill] sm:$0xff]  ;;  %v3770_v30 = vcombine.high %v4481_v4, %v4479_v6  ;;  %v3788_v42 = vcombine.low %v4481_v4, %v4479_v6  ;;  %v4487_v41 = vld [vmem:[#allocation37_spill] sm:$0xff] }
 0x25e   : > { %v3762_v43 = vcombine.high %v4485_v0, %v4483_v2  ;;  %v3766_v60 = vcombine.low %v4485_v0, %v4483_v2  ;;  %v3774_v55 = vcombine.high %v4484_v1, %v4482_v3  ;;  %v3779_v63 = vcombine.low %v4484_v1, %v4482_v3  ;;  %v4486_v53 = vld [vmem:[#allocation34_spill] sm:$0xff]  ;;  %v4488_v45 = vld [vmem:[#allocation35_spill] sm:$0xff]  ;;  %v3980_v9 = vld [vmem:[%s3961_s11 + $0x18] sm:$0xff]  ;;  %p3034_p4 = por (%p1283_p0), %p3033_p3, %p3032_p2 }
 0x25f   : > { %v3896_v54 = vcombine.high %v4486_v53, %v4457_v31  ;;  %v3906_v62 = vcombine.high %v4488_v45, %v4487_v41  ;;  %v3911_v0 = vcombine.low %v4486_v53, %v4457_v31  ;;  %v3917_v1 = vcombine.low %v4488_v45, %v4487_v41  ;;  %v3973_v5 = vld [vmem:[%s3970_s12] sm:$0xff]  ;;  %v3977_v7 = vld [vmem:[%s3970_s12 + $0x8] sm:$0xff]  ;;  %v3988_v17 = vld [vmem:[%s3970_s12 + $0x18] sm:$0xff] }
 0x260   : > { %1486 = vmatprep.subr.bf16.mxu0 %v3762_v43  ;;  %1527 = vmatprep.subr.bf16.mxu1 %v3774_v55  ;;  %v1325_v2 = vpack.c.bf16 %v3069_v51, %v3069_v51  ;;  %v4489_v3 = vmov 0   ;;  %v3967_v51 = vld [vmem:[%s3961_s11 + $0x8] sm:$0xff]  ;;  %v1316_v13 = vrot.slane %v3980_v9, 7  ;;  %v3991_v20 = vld [vmem:[%s3961_s11 + $0x10] sm:$0xff]  ;;  %v4498_v53 = vld [vmem:[#allocation45_spill] sm:$0xff] (%p1283_p0)  ;;  %p3035_p5 = pnand (%p1283_p0), %p3034_p4, %p3028_p1 }
 0x261   : > { %1487 = vmatpush1.bf16.msra.mxu0 %v3766_v60  ;;  %1528 = vmatpush1.bf16.msra.mxu1 %v3779_v63  ;;  %v1314_v6 = vrot.slane %v3967_v51, 7 }
 0x262   : > { %1488 = vmatprep.subr.bf16.mxu0 %v3770_v30  ;;  %1529 = vmatprep.subr.bf16.mxu1 %v3783_v38 }
 0x263   : > { %v1322_v11 = vsel %vm754_vm3, %v3977_v7, %v1314_v6  ;;  %v1324_v6 = vsel %vm754_vm3, %v3988_v17, %v1316_v13 }
 0x265   : > { %1489 = vmatpush1.bf16.msra.mxu0 %v3788_v42  ;;  %1530 = vmatpush1.bf16.msra.mxu1 %v3799_v58 }
 0x266   : > { %1490 = vmatprep.subr.bf16.mxu0 %v3794_v59  ;;  %1531 = vmatprep.subr.bf16.mxu1 %v3804_v34 }
 0x269   : > { %1491 = vmatpush1.bf16.msra.mxu0 %v3810_v36  ;;  %1532 = vmatpush1.bf16.msra.mxu1 %v3821_v49 }
 0x26a   : > { %1492 = vmatprep.subr.bf16.mxu0 %v3816_v56  ;;  %1533 = vmatprep.subr.bf16.mxu1 %v3826_v33 }
 0x26d   : > { %1493 = vmatpush1.bf16.msra.mxu0 %v3831_v8  ;;  %1534 = vmatpush1.bf16.msra.mxu1 %v3841_v61 }
 0x26e   : > { %1494 = vmatprep.subr.bf16.mxu0 %v3836_v46  ;;  %1535 = vmatprep.subr.bf16.mxu1 %v3846_v29 }
 0x271   : > { %1495 = vmatpush1.bf16.msra.mxu0 %v3851_v32  ;;  %1536 = vmatpush1.bf16.msra.mxu1 %v3861_v47 }
 0x272   : > { %1496 = vmatprep.subr.bf16.mxu0 %v3856_v57  ;;  %1537 = vmatprep.subr.bf16.mxu1 %v3866_v40 }
 0x275   : > { %1497 = vmatpush1.bf16.msra.mxu0 %v3871_v48  ;;  %1538 = vmatpush1.bf16.msra.mxu1 %v3881_v39 }
 0x276   : > { %1498 = vmatprep.subr.bf16.mxu0 %v3876_v52  ;;  %1539 = vmatprep.subr.bf16.mxu1 %v3886_v44 }
 0x279   : > { %1499 = vmatpush1.bf16.msra.mxu0 %v3891_v50  ;;  %1540 = vmatpush1.bf16.msra.mxu1 %v3901_v37 }
 0x27a   : > { %1500 = vmatprep.subr.bf16.mxu0 %v3896_v54  ;;  %1541 = vmatprep.subr.bf16.mxu1 %v3906_v62 }
 0x27d   : > { %1501 = vmatpush1.bf16.msra.mxu0 %v3911_v0  ;;  %1542 = vmatpush1.bf16.msra.mxu1 %v3917_v1 }
 0x27e   : > { %1613 = vmatprep.subr.bf16.mxu0 %v3762_v43  ;;  %1654 = vmatprep.subr.bf16.mxu1 %v3774_v55 }
 0x280   : > { %1519 = vmatmul.mubr.bf16.vlgmr.msra.gmra.mrb[0].mxu0 %v1325_v2  ;;  %1560 = vmatmul.mubr.bf16.vlgmr.msra.gmra.mrb[0].mxu1 %v1325_v2  ;;  %v3964_v2 = vld [vmem:[%s3961_s11] sm:$0xff] }
 0x281   : > { %1614 = vmatpush1.bf16.msra.mxu0 %v3766_v60  ;;  %1655 = vmatpush1.bf16.msra.mxu1 %v3779_v63  ;;  %v1313_v4 = vrot.slane %v3964_v2, 7 }
 0x282   : > { %1615 = vmatprep.subr.bf16.mxu0 %v3770_v30  ;;  %1656 = vmatprep.subr.bf16.mxu1 %v3783_v38 }
 0x283   : > { %1645 = vmatprep.mubr.bf16.mxu0 %v4489_v3  ;;  %1686 = vmatprep.mubr.bf16.mxu1 %v4489_v3  ;;  %v1321_v10 = vsel %vm754_vm3, %v3973_v5, %v1313_v4 }
 0x285   : > { %1616 = vmatpush1.bf16.msra.mxu0 %v3788_v42  ;;  %1657 = vmatpush1.bf16.msra.mxu1 %v3799_v58 }
 0x286   : > { %1617 = vmatprep.subr.bf16.mxu0 %v3794_v59  ;;  %1658 = vmatprep.subr.bf16.mxu1 %v3804_v34 }
 0x289   : > { %1618 = vmatpush1.bf16.msra.mxu0 %v3810_v36  ;;  %1659 = vmatpush1.bf16.msra.mxu1 %v3821_v49 }
 0x28a   : > { %1619 = vmatprep.subr.bf16.mxu0 %v3816_v56  ;;  %1660 = vmatprep.subr.bf16.mxu1 %v3826_v33 }
 0x28d   : > { %1620 = vmatpush1.bf16.msra.mxu0 %v3831_v8  ;;  %1661 = vmatpush1.bf16.msra.mxu1 %v3841_v61 }
 0x28e   : > { %1621 = vmatprep.subr.bf16.mxu0 %v3836_v46  ;;  %1662 = vmatprep.subr.bf16.mxu1 %v3846_v29 }
 0x291   : > { %1622 = vmatpush1.bf16.msra.mxu0 %v3851_v32  ;;  %1663 = vmatpush1.bf16.msra.mxu1 %v3861_v47 }
 0x292   : > { %1623 = vmatprep.subr.bf16.mxu0 %v3856_v57  ;;  %1664 = vmatprep.subr.bf16.mxu1 %v3866_v40 }
 0x295   : > { %1624 = vmatpush1.bf16.msra.mxu0 %v3871_v48  ;;  %1665 = vmatpush1.bf16.msra.mxu1 %v3881_v39 }
 0x296   : > { %1625 = vmatprep.subr.bf16.mxu0 %v3876_v52  ;;  %1666 = vmatprep.subr.bf16.mxu1 %v3886_v44 }
 0x299   : > { %1626 = vmatpush1.bf16.msra.mxu0 %v3891_v50  ;;  %1667 = vmatpush1.bf16.msra.mxu1 %v3901_v37 }
 0x29a   : > { %1627 = vmatprep.subr.bf16.mxu0 %v3896_v54  ;;  %1668 = vmatprep.subr.bf16.mxu1 %v3906_v62 }
 0x29d   : > { %1628 = vmatpush1.bf16.msra.mxu0 %v3911_v0  ;;  %1669 = vmatpush1.bf16.msra.mxu1 %v3917_v1 }
 0x29e   : > { %1744 = vmatprep.subr.bf16.mxu0 %v3762_v43  ;;  %1785 = vmatprep.subr.bf16.mxu1 %v3774_v55 }
 0x353   : > { %v1520_v12 = vpop.f32.mrb[0].mxu0  ;;  %v1561_v16 = vpop.f32.mrb[0].mxu1 }
 0x354   : > { %v1568_v14 = vadd.f32 %v1520_v12, %v1321_v10  ;;  %v1522_v15 = vpop.f32.mrb[1].mxu0  ;;  %v1563_v21 = vpop.f32.mrb[1].mxu1  ;;  %v1315_v10 = vrot.slane %v3991_v20, 7  ;;  %v3997_v12 = vld [vmem:[%s3970_s12 + $0x10] sm:$0xff] }
 0x355   : > { %v1569_v18 = vadd.f32 %v1522_v15, %v1322_v11  ;;  %v1524_v19 = vpop.f32.mrb[2].mxu0  ;;  %v1565_v4 = vpop.f32.mrb[2].mxu1  ;;  %v1571_v26 = vadd.f32 %v1563_v21, %v1324_v6 }
 0x356   : > { %v2727_v22 = vmul.f32 -1.442695, %v1568_v14  ;;  %v1525_v23 = vpop.f32.mrb[3].mxu0  ;;  %v1566_v25 = vpop.f32.mrb[3].mxu1  ;;  %v1323_v11 = vsel %vm754_vm3, %v3997_v12, %v1315_v10 }
 0x357   : > { %v2728_v24 = vmul.f32 -1.442695, %v1569_v18  ;;  %v2729_v15 = vmul.f32 -1.442695, %v1571_v26  ;;  %v1570_v19 = vadd.f32 %v1561_v16, %v1323_v11 }
 0x358   : > { %2891 = vpow2.f32 %v2727_v22 }
 0x359   : > { %2893 = vpow2.f32 %v2728_v24 }
 0x35a   : > { %2895 = vpow2.f32 %v2729_v15 }
 0x35b   : > { %2897 = vtanh.f32 %v1570_v19 }
 0x362   : > { %v2892_v14 = vpop.eup %2891 }
 0x363   : > { %v2894_v23 = vpop.eup %2893  ;;  %v1575_v18 = vadd.f32 1.0, %v2892_v14 }
 0x364   : > { %v1581_v4 = vadd.f32 1.0, %v2894_v23  ;;  %v2896_v13 = vpop.eup %2895 }
 0x365   : > { %2899 = vrcp.f32 %v1575_v18  ;;  %v2898_v22 = vpop.eup %2897  ;;  %v1588_v24 = vadd.f32 1.0, %v2896_v13 }
 0x366   : > { %2901 = vrcp.f32 %v1581_v4  ;;  %v1603_v4 = vrot.slane %v3988_v17, 1 }
 0x367   : > { %2903 = vrcp.f32 %v1588_v24 }
 0x36f   : > { %v2900_v25 = vpop.eup %2899 }
 0x370   : > { %v2902_v27 = vpop.eup %2901  ;;  %v1592_v28 = vmul.f32 %v2900_v25, %v2898_v22 }
 0x371   : > { %v1591_v21 = vmul.f32 %v3065_v35, %v2902_v27  ;;  %v2904_v16 = vpop.eup %2903  ;;  %v1600_v27 = vrot.slane %v3973_v5, 1 }
 0x373   : > { %v4002_v6 = vadd.f32 %v1592_v28, %v1591_v21  ;;  %v1601_v28 = vrot.slane %v3977_v7, 1  ;;  %v1608_v35 = vsel %vm754_vm3, %v1600_v27, %v3964_v2  ;;  %v1602_v27 = vrot.slane %v3997_v12, 1 }
 0x375   : > { %2905 = vtanh.f32 %v4002_v6  ;;  %v1609_v15 = vsel %vm754_vm3, %v1601_v28, %v3967_v51 }
 0x37f   : > { %v2906_v26 = vpop.eup %2905 }
 0x380   : > { %v1595_v10 = vmul.f32 %v2906_v26, %v2904_v16 }
 0x382   : > { %v1612_v11 = vpack.c.bf16 %v1595_v10, %v1595_v10 }
 0x384   : > { %1646 = vmatmul.mubr.bf16.vlgmr.msra.gmra.mrb[4].mxu0 %v1612_v11  ;;  %1687 = vmatmul.mubr.bf16.vlgmr.msra.gmra.mrb[4].mxu1 %v1612_v11  ;;  %v1611_v11 = vsel %vm754_vm3, %v1603_v4, %v3980_v9 }
 0x385   : > { %1745 = vmatpush1.bf16.msra.mxu0 %v3766_v60  ;;  %1786 = vmatpush1.bf16.msra.mxu1 %v3779_v63 }
 0x386   : > { %1746 = vmatprep.subr.bf16.mxu0 %v3770_v30  ;;  %1787 = vmatprep.subr.bf16.mxu1 %v3783_v38 }
 0x387   : > { %1776 = vmatprep.mubr.bf16.mxu0 %v4489_v3  ;;  %1817 = vmatprep.mubr.bf16.mxu1 %v4489_v3 }
 0x389   : > { %1747 = vmatpush1.bf16.msra.mxu0 %v3788_v42  ;;  %1788 = vmatpush1.bf16.msra.mxu1 %v3799_v58 }
 0x38a   : > { %1748 = vmatprep.subr.bf16.mxu0 %v3794_v59  ;;  %1789 = vmatprep.subr.bf16.mxu1 %v3804_v34 }
 0x38d   : > { %1749 = vmatpush1.bf16.msra.mxu0 %v3810_v36  ;;  %1790 = vmatpush1.bf16.msra.mxu1 %v3821_v49 }
 0x38e   : > { %1750 = vmatprep.subr.bf16.mxu0 %v3816_v56  ;;  %1791 = vmatprep.subr.bf16.mxu1 %v3826_v33 }
 0x391   : > { %1751 = vmatpush1.bf16.msra.mxu0 %v3831_v8  ;;  %1792 = vmatpush1.bf16.msra.mxu1 %v3841_v61 }
 0x392   : > { %1752 = vmatprep.subr.bf16.mxu0 %v3836_v46  ;;  %1793 = vmatprep.subr.bf16.mxu1 %v3846_v29 }
 0x395   : > { %1753 = vmatpush1.bf16.msra.mxu0 %v3851_v32  ;;  %1794 = vmatpush1.bf16.msra.mxu1 %v3861_v47 }
 0x396   : > { %1754 = vmatprep.subr.bf16.mxu0 %v3856_v57  ;;  %1795 = vmatprep.subr.bf16.mxu1 %v3866_v40 }
 0x399   : > { %1755 = vmatpush1.bf16.msra.mxu0 %v3871_v48  ;;  %1796 = vmatpush1.bf16.msra.mxu1 %v3881_v39 }
 0x39a   : > { %1756 = vmatprep.subr.bf16.mxu0 %v3876_v52  ;;  %1797 = vmatprep.subr.bf16.mxu1 %v3886_v44 }
 0x39d   : > { %1757 = vmatpush1.bf16.msra.mxu0 %v3891_v50  ;;  %1798 = vmatpush1.bf16.msra.mxu1 %v3901_v37 }
 0x39e   : > { %1758 = vmatprep.subr.bf16.mxu0 %v3896_v54  ;;  %1799 = vmatprep.subr.bf16.mxu1 %v3906_v62 }
 0x3a1   : > { %1759 = vmatpush1.bf16.msra.mxu0 %v3911_v0  ;;  %1800 = vmatpush1.bf16.msra.mxu1 %v3917_v1 }
 0x3a2   : > { %1875 = vmatprep.subr.bf16.mxu0 %v3762_v43  ;;  %1916 = vmatprep.subr.bf16.mxu1 %v3774_v55 }
 0x457   : > { %v1647_v19 = vpop.f32.mrb[4].mxu0  ;;  %v1688_v14 = vpop.f32.mrb[4].mxu1 }
 0x458   : > { %v1695_v23 = vadd.f32 %v1647_v19, %v1608_v35  ;;  %v1649_v18 = vpop.f32.mrb[5].mxu0  ;;  %v1690_v13 = vpop.f32.mrb[5].mxu1  ;;  %v1610_v35 = vsel %vm754_vm3, %v1602_v27, %v3991_v20 }
 0x459   : > { %v1696_v22 = vadd.f32 %v1649_v18, %v1609_v15  ;;  %v1651_v25 = vpop.f32.mrb[6].mxu0  ;;  %v1692_v24 = vpop.f32.mrb[6].mxu1  ;;  %v1698_v28 = vadd.f32 %v1690_v13, %v1611_v11  ;;  %v1697_v31 = vadd.f32 %v1688_v14, %v1610_v35  ;;  %v1724_v35 = vrot.slane %v3977_v7, 2 }
 0x45a   : > { %v2730_v21 = vmul.f32 -1.442695, %v1695_v23  ;;  %v1652_v16 = vpop.f32.mrb[7].mxu0  ;;  %v1693_v26 = vpop.f32.mrb[7].mxu1 }
 0x45b   : > { %v2731_v10 = vmul.f32 -1.442695, %v1696_v22  ;;  %v2732_v19 = vmul.f32 -1.442695, %v1698_v28  ;;  %v1731_v28 = vrot.slane %v3964_v2, 1 }
 0x45c   : > { %2907 = vpow2.f32 %v2730_v21 }
 0x45d   : > { %2909 = vpow2.f32 %v2731_v10 }
 0x45e   : > { %2911 = vpow2.f32 %v2732_v19  ;;  %v1732_v19 = vrot.slane %v3967_v51, 1 }
 0x45f   : > { %2913 = vtanh.f32 %v1697_v31 }
 0x466   : > { %v2908_v15 = vpop.eup %2907 }
 0x467   : > { %v2910_v18 = vpop.eup %2909  ;;  %v1702_v25 = vadd.f32 1.0, %v2908_v15 }
 0x468   : > { %v1708_v23 = vadd.f32 1.0, %v2910_v18  ;;  %v2912_v22 = vpop.eup %2911  ;;  %v1740_v18 = vsel %vm754_vm3, %v1724_v35, %v1732_v19  ;;  %v1733_v35 = vrot.slane %v3991_v20, 1 }
 0x469   : > { %2915 = vrcp.f32 %v1702_v25  ;;  %v2914_v24 = vpop.eup %2913  ;;  %v1715_v26 = vadd.f32 1.0, %v2912_v22 }
 0x46a   : > { %2917 = vrcp.f32 %v1708_v23 }
 0x46b   : > { %2919 = vrcp.f32 %v1715_v26 }
 0x473   : > { %v2916_v4 = vpop.eup %2915 }
 0x474   : > { %v2918_v21 = vpop.eup %2917  ;;  %v1719_v16 = vmul.f32 %v2916_v4, %v2914_v24  ;;  %v1726_v4 = vrot.slane %v3988_v17, 2 }
 0x475   : > { %v1718_v13 = vmul.f32 %v2918_v21, %v4002_v6  ;;  %v2920_v14 = vpop.eup %2919  ;;  %v1723_v6 = vrot.slane %v3973_v5, 2  ;;  %v1734_v21 = vrot.slane %v3980_v9, 1 }
 0x477   : > { %v4052_v10 = vadd.f32 %v1719_v16, %v1718_v13  ;;  %v1739_v15 = vsel %vm754_vm3, %v1723_v6, %v1731_v28  ;;  %v1742_v6 = vsel %vm754_vm3, %v1726_v4, %v1734_v21  ;;  %v1725_v28 = vrot.slane %v3997_v12, 2 }
 0x479   : > { %2921 = vtanh.f32 %v4052_v10 }
 0x483   : > { %v2922_v11 = vpop.eup %2921 }
 0x484   : > { %v1722_v27 = vmul.f32 %v2922_v11, %v2920_v14 }
 0x486   : > { %v1743_v31 = vpack.c.bf16 %v1722_v27, %v1722_v27 }
 0x488   : > { %1777 = vmatmul.mubr.bf16.vlgmr.msra.gmra.mrb[8].mxu0 %v1743_v31  ;;  %1818 = vmatmul.mubr.bf16.vlgmr.msra.gmra.mrb[8].mxu1 %v1743_v31 }
 0x489   : > { %1876 = vmatpush1.bf16.msra.mxu0 %v3766_v60  ;;  %1917 = vmatpush1.bf16.msra.mxu1 %v3779_v63 }
 0x48a   : > { %1877 = vmatprep.subr.bf16.mxu0 %v3770_v30  ;;  %1918 = vmatprep.subr.bf16.mxu1 %v3783_v38 }
 0x48b   : > { %1907 = vmatprep.mubr.bf16.mxu0 %v4489_v3  ;;  %1948 = vmatprep.mubr.bf16.mxu1 %v4489_v3 }
 0x48d   : > { %1878 = vmatpush1.bf16.msra.mxu0 %v3788_v42  ;;  %1919 = vmatpush1.bf16.msra.mxu1 %v3799_v58 }
 0x48e   : > { %1879 = vmatprep.subr.bf16.mxu0 %v3794_v59  ;;  %1920 = vmatprep.subr.bf16.mxu1 %v3804_v34 }
 0x491   : > { %1880 = vmatpush1.bf16.msra.mxu0 %v3810_v36  ;;  %1921 = vmatpush1.bf16.msra.mxu1 %v3821_v49 }
 0x492   : > { %1881 = vmatprep.subr.bf16.mxu0 %v3816_v56  ;;  %1922 = vmatprep.subr.bf16.mxu1 %v3826_v33 }
 0x495   : > { %1882 = vmatpush1.bf16.msra.mxu0 %v3831_v8  ;;  %1923 = vmatpush1.bf16.msra.mxu1 %v3841_v61 }
 0x496   : > { %1883 = vmatprep.subr.bf16.mxu0 %v3836_v46  ;;  %1924 = vmatprep.subr.bf16.mxu1 %v3846_v29 }
 0x499   : > { %1884 = vmatpush1.bf16.msra.mxu0 %v3851_v32  ;;  %1925 = vmatpush1.bf16.msra.mxu1 %v3861_v47 }
 0x49a   : > { %1885 = vmatprep.subr.bf16.mxu0 %v3856_v57  ;;  %1926 = vmatprep.subr.bf16.mxu1 %v3866_v40 }
 0x49d   : > { %1886 = vmatpush1.bf16.msra.mxu0 %v3871_v48  ;;  %1927 = vmatpush1.bf16.msra.mxu1 %v3881_v39 }
 0x49e   : > { %1887 = vmatprep.subr.bf16.mxu0 %v3876_v52  ;;  %1928 = vmatprep.subr.bf16.mxu1 %v3886_v44 }
 0x4a1   : > { %1888 = vmatpush1.bf16.msra.mxu0 %v3891_v50  ;;  %1929 = vmatpush1.bf16.msra.mxu1 %v3901_v37 }
 0x4a2   : > { %1889 = vmatprep.subr.bf16.mxu0 %v3896_v54  ;;  %1930 = vmatprep.subr.bf16.mxu1 %v3906_v62 }
 0x4a5   : > { %1890 = vmatpush1.bf16.msra.mxu0 %v3911_v0  ;;  %1931 = vmatpush1.bf16.msra.mxu1 %v3917_v1 }
 0x4a6   : > { %2006 = vmatprep.subr.bf16.mxu0 %v3762_v43  ;;  %2047 = vmatprep.subr.bf16.mxu1 %v3774_v55 }
 0x55b   : > { %v1778_v25 = vpop.f32.mrb[8].mxu0  ;;  %v1819_v23 = vpop.f32.mrb[8].mxu1 }
 0x55c   : > { %v1826_v22 = vadd.f32 %v1778_v25, %v1739_v15  ;;  %v1780_v24 = vpop.f32.mrb[9].mxu0  ;;  %v1821_v16 = vpop.f32.mrb[9].mxu1  ;;  %v1741_v15 = vsel %vm754_vm3, %v1725_v28, %v1733_v35  ;;  %v1862_v28 = vrot.slane %v3964_v2, 2  ;;  %v1855_v35 = vrot.slane %v3977_v7, 3 }
 0x55d   : > { %v1827_v26 = vadd.f32 %v1780_v24, %v1740_v18  ;;  %v1782_v13 = vpop.f32.mrb[10].mxu0  ;;  %v1823_v14 = vpop.f32.mrb[10].mxu1  ;;  %v1829_v19 = vadd.f32 %v1821_v16, %v1742_v6  ;;  %v1828_v45 = vadd.f32 %v1819_v23, %v1741_v15 }
 0x55e   : > { %v2733_v11 = vmul.f32 -1.442695, %v1826_v22  ;;  %v1783_v27 = vpop.f32.mrb[11].mxu0  ;;  %v1824_v31 = vpop.f32.mrb[11].mxu1 }
 0x55f   : > { %v2734_v41 = vmul.f32 -1.442695, %v1827_v26  ;;  %v2735_v25 = vmul.f32 -1.442695, %v1829_v19  ;;  %v1863_v19 = vrot.slane %v3967_v51, 2 }
 0x560   : > { %2923 = vpow2.f32 %v2733_v11 }
 0x561   : > { %2925 = vpow2.f32 %v2734_v41 }
 0x562   : > { %2927 = vpow2.f32 %v2735_v25  ;;  %v1871_v25 = vsel %vm754_vm3, %v1855_v35, %v1863_v19 }
 0x563   : > { %2929 = vtanh.f32 %v1828_v45 }
 0x56a   : > { %v2924_v18 = vpop.eup %2923 }
 0x56b   : > { %v2926_v24 = vpop.eup %2925  ;;  %v1833_v13 = vadd.f32 1.0, %v2924_v18 }
 0x56c   : > { %v1839_v22 = vadd.f32 1.0, %v2926_v24  ;;  %v2928_v26 = vpop.eup %2927 }
 0x56d   : > { %2931 = vrcp.f32 %v1833_v13  ;;  %v2930_v4 = vpop.eup %2929  ;;  %v1846_v27 = vadd.f32 1.0, %v2928_v26  ;;  %v1857_v26 = vrot.slane %v3988_v17, 3 }
 0x56e   : > { %2933 = vrcp.f32 %v1839_v22 }
 0x56f   : > { %2935 = vrcp.f32 %v1846_v27 }
 0x577   : > { %v2932_v21 = vpop.eup %2931 }
 0x578   : > { %v2934_v14 = vpop.eup %2933  ;;  %v1850_v11 = vmul.f32 %v2932_v21, %v2930_v4  ;;  %v1865_v4 = vrot.slane %v3980_v9, 2 }
 0x579   : > { %v1849_v41 = vmul.f32 %v2934_v14, %v4052_v10  ;;  %v2936_v23 = vpop.eup %2935  ;;  %v1854_v10 = vrot.slane %v3973_v5, 3 }
 0x57b   : > { %v4102_v16 = vadd.f32 %v1850_v11, %v1849_v41  ;;  %v1870_v15 = vsel %vm754_vm3, %v1854_v10, %v1862_v28  ;;  %v1856_v10 = vrot.slane %v3997_v12, 3  ;;  %v1864_v28 = vrot.slane %v3991_v20, 2 }
 0x57d   : > { %2937 = vtanh.f32 %v4102_v16  ;;  %v1872_v19 = vsel %vm754_vm3, %v1856_v10, %v1864_v28  ;;  %v1993_v28 = vrot.slane %v3964_v2, 3 }
 0x587   : > { %v2938_v31 = vpop.eup %2937 }
 0x588   : > { %v1853_v6 = vmul.f32 %v2938_v31, %v2936_v23 }
 0x58a   : > { %v1874_v45 = vpack.c.bf16 %v1853_v6, %v1853_v6 }
 0x58c   : > { %1908 = vmatmul.mubr.bf16.vlgmr.msra.gmra.mrb[12].mxu0 %v1874_v45  ;;  %1949 = vmatmul.mubr.bf16.vlgmr.msra.gmra.mrb[12].mxu1 %v1874_v45  ;;  %v1873_v45 = vsel %vm754_vm3, %v1857_v26, %v1865_v4 }
 0x58d   : > { %2007 = vmatpush1.bf16.msra.mxu0 %v3766_v60  ;;  %2048 = vmatpush1.bf16.msra.mxu1 %v3779_v63 }
 0x58e   : > { %2008 = vmatprep.subr.bf16.mxu0 %v3770_v30  ;;  %2049 = vmatprep.subr.bf16.mxu1 %v3783_v38 }
 0x58f   : > { %2038 = vmatprep.mubr.bf16.mxu0 %v4489_v3  ;;  %2079 = vmatprep.mubr.bf16.mxu1 %v4489_v3 }
 0x591   : > { %2009 = vmatpush1.bf16.msra.mxu0 %v3788_v42  ;;  %2050 = vmatpush1.bf16.msra.mxu1 %v3799_v58 }
 0x592   : > { %2010 = vmatprep.subr.bf16.mxu0 %v3794_v59  ;;  %2051 = vmatprep.subr.bf16.mxu1 %v3804_v34 }
 0x595   : > { %2011 = vmatpush1.bf16.msra.mxu0 %v3810_v36  ;;  %2052 = vmatpush1.bf16.msra.mxu1 %v3821_v49 }
 0x596   : > { %2012 = vmatprep.subr.bf16.mxu0 %v3816_v56  ;;  %2053 = vmatprep.subr.bf16.mxu1 %v3826_v33 }
 0x599   : > { %2013 = vmatpush1.bf16.msra.mxu0 %v3831_v8  ;;  %2054 = vmatpush1.bf16.msra.mxu1 %v3841_v61 }
 0x59a   : > { %2014 = vmatprep.subr.bf16.mxu0 %v3836_v46  ;;  %2055 = vmatprep.subr.bf16.mxu1 %v3846_v29 }
 0x59d   : > { %2015 = vmatpush1.bf16.msra.mxu0 %v3851_v32  ;;  %2056 = vmatpush1.bf16.msra.mxu1 %v3861_v47 }
 0x59e   : > { %2016 = vmatprep.subr.bf16.mxu0 %v3856_v57  ;;  %2057 = vmatprep.subr.bf16.mxu1 %v3866_v40 }
 0x5a1   : > { %2017 = vmatpush1.bf16.msra.mxu0 %v3871_v48  ;;  %2058 = vmatpush1.bf16.msra.mxu1 %v3881_v39 }
 0x5a2   : > { %2018 = vmatprep.subr.bf16.mxu0 %v3876_v52  ;;  %2059 = vmatprep.subr.bf16.mxu1 %v3886_v44 }
 0x5a5   : > { %2019 = vmatpush1.bf16.msra.mxu0 %v3891_v50  ;;  %2060 = vmatpush1.bf16.msra.mxu1 %v3901_v37 }
 0x5a6   : > { %2020 = vmatprep.subr.bf16.mxu0 %v3896_v54  ;;  %2061 = vmatprep.subr.bf16.mxu1 %v3906_v62 }
 0x5a9   : > { %2021 = vmatpush1.bf16.msra.mxu0 %v3911_v0  ;;  %2062 = vmatpush1.bf16.msra.mxu1 %v3917_v1 }
 0x5aa   : > { %2137 = vmatprep.subr.bf16.mxu0 %v3762_v43  ;;  %2178 = vmatprep.subr.bf16.mxu1 %v3774_v55 }
 0x65f   : > { %v1909_v18 = vpop.f32.mrb[12].mxu0  ;;  %v1950_v24 = vpop.f32.mrb[12].mxu1 }
 0x660   : > { %v1957_v13 = vadd.f32 %v1909_v18, %v1870_v15  ;;  %v1911_v22 = vpop.f32.mrb[13].mxu0  ;;  %v1952_v21 = vpop.f32.mrb[13].mxu1  ;;  %v1959_v18 = vadd.f32 %v1950_v24, %v1872_v19  ;;  %v1994_v19 = vrot.slane %v3967_v51, 3 }
 0x661   : > { %v1958_v14 = vadd.f32 %v1911_v22, %v1871_v25  ;;  %v1913_v11 = vpop.f32.mrb[14].mxu0  ;;  %v1954_v27 = vpop.f32.mrb[14].mxu1  ;;  %v1960_v35 = vadd.f32 %v1952_v21, %v1873_v45 }
 0x662   : > { %v2736_v41 = vmul.f32 -1.442695, %v1957_v13  ;;  %v1914_v23 = vpop.f32.mrb[15].mxu0  ;;  %v1955_v31 = vpop.f32.mrb[15].mxu1 }
 0x663   : > { %v2737_v6 = vmul.f32 -1.442695, %v1958_v14  ;;  %v2738_v15 = vmul.f32 -1.442695, %v1960_v35  ;;  %v1986_v35 = vrot.slane %v3977_v7, 4 }
 0x664   : > { %2939 = vpow2.f32 %v2736_v41 }
 0x665   : > { %2941 = vpow2.f32 %v2737_v6 }
 0x666   : > { %2943 = vpow2.f32 %v2738_v15 }
 0x667   : > { %2945 = vtanh.f32 %v1959_v18  ;;  %v2002_v18 = vsel %vm754_vm3, %v1986_v35, %v1994_v19 }
 0x66e   : > { %v2940_v25 = vpop.eup %2939 }
 0x66f   : > { %v2942_v22 = vpop.eup %2941  ;;  %v1964_v11 = vadd.f32 1.0, %v2940_v25 }
 0x670   : > { %v1970_v13 = vadd.f32 1.0, %v2942_v22  ;;  %v2944_v14 = vpop.eup %2943 }
 0x671   : > { %2947 = vrcp.f32 %v1964_v11  ;;  %v2946_v26 = vpop.eup %2945  ;;  %v1977_v23 = vadd.f32 1.0, %v2944_v14  ;;  %v1988_v14 = vrot.slane %v3988_v17, 4 }
 0x672   : > { %2949 = vrcp.f32 %v1970_v13 }
 0x673   : > { %2951 = vrcp.f32 %v1977_v23 }
 0x67b   : > { %v2948_v4 = vpop.eup %2947 }
 0x67c   : > { %v2950_v27 = vpop.eup %2949  ;;  %v1981_v41 = vmul.f32 %v2948_v4, %v2946_v26  ;;  %v1996_v26 = vrot.slane %v3980_v9, 3 }
 0x67d   : > { %v1980_v21 = vmul.f32 %v2950_v27, %v4102_v16  ;;  %v2952_v24 = vpop.eup %2951  ;;  %v1985_v16 = vrot.slane %v3973_v5, 4 }
 0x67f   : > { %v4152_v31 = vadd.f32 %v1981_v41, %v1980_v21  ;;  %v2001_v15 = vsel %vm754_vm3, %v1985_v16, %v1993_v28  ;;  %v1987_v16 = vrot.slane %v3997_v12, 4  ;;  %v1995_v28 = vrot.slane %v3991_v20, 3 }
 0x681   : > { %2953 = vtanh.f32 %v4152_v31  ;;  %v2003_v19 = vsel %vm754_vm3, %v1987_v16, %v1995_v28  ;;  %v2124_v28 = vrot.slane %v3964_v2, 4 }
 0x68b   : > { %v2954_v6 = vpop.eup %2953 }
 0x68c   : > { %v1984_v45 = vmul.f32 %v2954_v6, %v2952_v24 }
 0x68e   : > { %v2005_v10 = vpack.c.bf16 %v1984_v45, %v1984_v45 }
 0x690   : > { %2039 = vmatmul.mubr.bf16.vlgmr.msra.gmra.mrb[16].mxu0 %v2005_v10  ;;  %2080 = vmatmul.mubr.bf16.vlgmr.msra.gmra.mrb[16].mxu1 %v2005_v10  ;;  %v2004_v10 = vsel %vm754_vm3, %v1988_v14, %v1996_v26 }
 0x691   : > { %2138 = vmatpush1.bf16.msra.mxu0 %v3766_v60  ;;  %2179 = vmatpush1.bf16.msra.mxu1 %v3779_v63 }
 0x692   : > { %2139 = vmatprep.subr.bf16.mxu0 %v3770_v30  ;;  %2180 = vmatprep.subr.bf16.mxu1 %v3783_v38 }
 0x693   : > { %2169 = vmatprep.mubr.bf16.mxu0 %v4489_v3  ;;  %2210 = vmatprep.mubr.bf16.mxu1 %v4489_v3 }
 0x695   : > { %2140 = vmatpush1.bf16.msra.mxu0 %v3788_v42  ;;  %2181 = vmatpush1.bf16.msra.mxu1 %v3799_v58 }
 0x696   : > { %2141 = vmatprep.subr.bf16.mxu0 %v3794_v59  ;;  %2182 = vmatprep.subr.bf16.mxu1 %v3804_v34 }
 0x699   : > { %2142 = vmatpush1.bf16.msra.mxu0 %v3810_v36  ;;  %2183 = vmatpush1.bf16.msra.mxu1 %v3821_v49 }
 0x69a   : > { %2143 = vmatprep.subr.bf16.mxu0 %v3816_v56  ;;  %2184 = vmatprep.subr.bf16.mxu1 %v3826_v33 }
 0x69d   : > { %2144 = vmatpush1.bf16.msra.mxu0 %v3831_v8  ;;  %2185 = vmatpush1.bf16.msra.mxu1 %v3841_v61 }
 0x69e   : > { %2145 = vmatprep.subr.bf16.mxu0 %v3836_v46  ;;  %2186 = vmatprep.subr.bf16.mxu1 %v3846_v29 }
 0x6a1   : > { %2146 = vmatpush1.bf16.msra.mxu0 %v3851_v32  ;;  %2187 = vmatpush1.bf16.msra.mxu1 %v3861_v47 }
 0x6a2   : > { %2147 = vmatprep.subr.bf16.mxu0 %v3856_v57  ;;  %2188 = vmatprep.subr.bf16.mxu1 %v3866_v40 }
 0x6a5   : > { %2148 = vmatpush1.bf16.msra.mxu0 %v3871_v48  ;;  %2189 = vmatpush1.bf16.msra.mxu1 %v3881_v39 }
 0x6a6   : > { %2149 = vmatprep.subr.bf16.mxu0 %v3876_v52  ;;  %2190 = vmatprep.subr.bf16.mxu1 %v3886_v44 }
 0x6a9   : > { %2150 = vmatpush1.bf16.msra.mxu0 %v3891_v50  ;;  %2191 = vmatpush1.bf16.msra.mxu1 %v3901_v37 }
 0x6aa   : > { %2151 = vmatprep.subr.bf16.mxu0 %v3896_v54  ;;  %2192 = vmatprep.subr.bf16.mxu1 %v3906_v62 }
 0x6ad   : > { %2152 = vmatpush1.bf16.msra.mxu0 %v3911_v0  ;;  %2193 = vmatpush1.bf16.msra.mxu1 %v3917_v1 }
 0x6ae   : > { %2268 = vmatprep.subr.bf16.mxu0 %v3762_v43  ;;  %2309 = vmatprep.subr.bf16.mxu1 %v3774_v55 }
 0x763   : > { %v2040_v25 = vpop.f32.mrb[16].mxu0  ;;  %v2081_v22 = vpop.f32.mrb[16].mxu1 }
 0x764   : > { %v2088_v11 = vadd.f32 %v2040_v25, %v2001_v15  ;;  %v2042_v13 = vpop.f32.mrb[17].mxu0  ;;  %v2083_v4 = vpop.f32.mrb[17].mxu1  ;;  %v2090_v25 = vadd.f32 %v2081_v22, %v2003_v19  ;;  %v2125_v19 = vrot.slane %v3967_v51, 4 }
 0x765   : > { %v2089_v27 = vadd.f32 %v2042_v13, %v2002_v18  ;;  %v2044_v41 = vpop.f32.mrb[18].mxu0  ;;  %v2085_v23 = vpop.f32.mrb[18].mxu1  ;;  %v2091_v35 = vadd.f32 %v2083_v4, %v2004_v10 }
 0x766   : > { %v2739_v21 = vmul.f32 -1.442695, %v2088_v11  ;;  %v2045_v24 = vpop.f32.mrb[19].mxu0  ;;  %v2086_v6 = vpop.f32.mrb[19].mxu1 }
 0x767   : > { %v2740_v45 = vmul.f32 -1.442695, %v2089_v27  ;;  %v2741_v15 = vmul.f32 -1.442695, %v2091_v35  ;;  %v2117_v35 = vrot.slane %v3977_v7, 5 }
 0x768   : > { %2955 = vpow2.f32 %v2739_v21 }
 0x769   : > { %2957 = vpow2.f32 %v2740_v45 }
 0x76a   : > { %2959 = vpow2.f32 %v2741_v15 }
 0x76b   : > { %2961 = vtanh.f32 %v2090_v25  ;;  %v2133_v25 = vsel %vm754_vm3, %v2117_v35, %v2125_v19 }
 0x772   : > { %v2956_v18 = vpop.eup %2955 }
 0x773   : > { %v2958_v13 = vpop.eup %2957  ;;  %v2095_v41 = vadd.f32 1.0, %v2956_v18 }
 0x774   : > { %v2101_v11 = vadd.f32 1.0, %v2958_v13  ;;  %v2960_v27 = vpop.eup %2959 }
 0x775   : > { %2963 = vrcp.f32 %v2095_v41  ;;  %v2962_v14 = vpop.eup %2961  ;;  %v2108_v24 = vadd.f32 1.0, %v2960_v27 }
 0x776   : > { %2965 = vrcp.f32 %v2101_v11 }
 0x777   : > { %2967 = vrcp.f32 %v2108_v24  ;;  %v2118_v24 = vrot.slane %v3997_v12, 5 }
 0x77f   : > { %v2964_v26 = vpop.eup %2963 }
 0x780   : > { %v2966_v23 = vpop.eup %2965  ;;  %v2112_v21 = vmul.f32 %v2964_v26, %v2962_v14 }
 0x781   : > { %v2111_v4 = vmul.f32 %v2966_v23, %v4152_v31  ;;  %v2968_v22 = vpop.eup %2967  ;;  %v2116_v31 = vrot.slane %v3973_v5, 5 }
 0x783   : > { %v4202_v6 = vadd.f32 %v2112_v21, %v2111_v4  ;;  %v2132_v15 = vsel %vm754_vm3, %v2116_v31, %v2124_v28  ;;  %v2126_v4 = vrot.slane %v3991_v20, 4 }
 0x785   : > { %2969 = vtanh.f32 %v4202_v6 }
 0x78f   : > { %v2970_v45 = vpop.eup %2969 }
 0x790   : > { %v2115_v10 = vmul.f32 %v2970_v45, %v2968_v22 }
 0x792   : > { %v2136_v16 = vpack.c.bf16 %v2115_v10, %v2115_v10 }
 0x794   : > { %2170 = vmatmul.mubr.bf16.vlgmr.msra.gmra.mrb[20].mxu0 %v2136_v16  ;;  %2211 = vmatmul.mubr.bf16.vlgmr.msra.gmra.mrb[20].mxu1 %v2136_v16 }
 0x795   : > { %2269 = vmatpush1.bf16.msra.mxu0 %v3766_v60  ;;  %2310 = vmatpush1.bf16.msra.mxu1 %v3779_v63 }
 0x796   : > { %2270 = vmatprep.subr.bf16.mxu0 %v3770_v30  ;;  %2311 = vmatprep.subr.bf16.mxu1 %v3783_v38 }
 0x797   : > { %2300 = vmatprep.mubr.bf16.mxu0 %v4489_v3  ;;  %2341 = vmatprep.mubr.bf16.mxu1 %v4489_v3 }
 0x799   : > { %2271 = vmatpush1.bf16.msra.mxu0 %v3788_v42  ;;  %2312 = vmatpush1.bf16.msra.mxu1 %v3799_v58 }
 0x79a   : > { %2272 = vmatprep.subr.bf16.mxu0 %v3794_v59  ;;  %2313 = vmatprep.subr.bf16.mxu1 %v3804_v34 }
 0x79d   : > { %2273 = vmatpush1.bf16.msra.mxu0 %v3810_v36  ;;  %2314 = vmatpush1.bf16.msra.mxu1 %v3821_v49 }
 0x79e   : > { %2274 = vmatprep.subr.bf16.mxu0 %v3816_v56  ;;  %2315 = vmatprep.subr.bf16.mxu1 %v3826_v33 }
 0x7a1   : > { %2275 = vmatpush1.bf16.msra.mxu0 %v3831_v8  ;;  %2316 = vmatpush1.bf16.msra.mxu1 %v3841_v61 }
 0x7a2   : > { %2276 = vmatprep.subr.bf16.mxu0 %v3836_v46  ;;  %2317 = vmatprep.subr.bf16.mxu1 %v3846_v29 }
 0x7a5   : > { %2277 = vmatpush1.bf16.msra.mxu0 %v3851_v32  ;;  %2318 = vmatpush1.bf16.msra.mxu1 %v3861_v47 }
 0x7a6   : > { %2278 = vmatprep.subr.bf16.mxu0 %v3856_v57  ;;  %2319 = vmatprep.subr.bf16.mxu1 %v3866_v40 }
 0x7a9   : > { %2279 = vmatpush1.bf16.msra.mxu0 %v3871_v48  ;;  %2320 = vmatpush1.bf16.msra.mxu1 %v3881_v39 }
 0x7aa   : > { %2280 = vmatprep.subr.bf16.mxu0 %v3876_v52  ;;  %2321 = vmatprep.subr.bf16.mxu1 %v3886_v44 }
 0x7ad   : > { %2281 = vmatpush1.bf16.msra.mxu0 %v3891_v50  ;;  %2322 = vmatpush1.bf16.msra.mxu1 %v3901_v37 }
 0x7ae   : > { %2282 = vmatprep.subr.bf16.mxu0 %v3896_v54  ;;  %2323 = vmatprep.subr.bf16.mxu1 %v3906_v62 }
 0x7b1   : > { %2283 = vmatpush1.bf16.msra.mxu0 %v3911_v0  ;;  %2324 = vmatpush1.bf16.msra.mxu1 %v3917_v1 }
 0x7b2   : > { %2399 = vmatprep.subr.bf16.mxu0 %v3762_v43  ;;  %2440 = vmatprep.subr.bf16.mxu1 %v3774_v55  ;;  %v2119_v43 = vrot.slane %v3988_v17, 5  ;;  %v2127_v55 = vrot.slane %v3980_v9, 4  ;;  %v2134_v17 = vsel %vm754_vm3, %v2118_v24, %v2126_v4 }
 0x7b4   : > { %v2135_v21 = vsel %vm754_vm3, %v2119_v43, %v2127_v55 }
 0x867   : > { %v2171_v18 = vpop.f32.mrb[20].mxu0  ;;  %v2212_v13 = vpop.f32.mrb[20].mxu1 }
 0x868   : > { %v2219_v41 = vadd.f32 %v2171_v18, %v2132_v15  ;;  %v2173_v11 = vpop.f32.mrb[21].mxu0  ;;  %v2214_v27 = vpop.f32.mrb[21].mxu1  ;;  %v2221_v45 = vadd.f32 %v2212_v13, %v2134_v17 }
 0x869   : > { %v2220_v5 = vadd.f32 %v2173_v11, %v2133_v25  ;;  %v2175_v14 = vpop.f32.mrb[22].mxu0  ;;  %v2216_v2 = vpop.f32.mrb[22].mxu1  ;;  %v2222_v22 = vadd.f32 %v2214_v27, %v2135_v21 }
 0x86a   : > { %v2742_v26 = vmul.f32 -1.442695, %v2219_v41  ;;  %v2176_v7 = vpop.f32.mrb[23].mxu0  ;;  %v2217_v23 = vpop.f32.mrb[23].mxu1 }
 0x86b   : > { %v2743_v51 = vmul.f32 -1.442695, %v2220_v5  ;;  %v2744_v9 = vmul.f32 -1.442695, %v2222_v22 }
 0x86c   : > { %2971 = vpow2.f32 %v2742_v26 }
 0x86d   : > { %2973 = vpow2.f32 %v2743_v51 }
 0x86e   : > { %2975 = vpow2.f32 %v2744_v9 }
 0x86f   : > { %2977 = vtanh.f32 %v2221_v45 }
 0x876   : > { %v2972_v10 = vpop.eup %2971 }
 0x877   : > { %v2974_v16 = vpop.eup %2973  ;;  %v2226_v31 = vadd.f32 1.0, %v2972_v10 }
 0x878   : > { %v2232_v28 = vadd.f32 1.0, %v2974_v16  ;;  %v2976_v35 = vpop.eup %2975 }
 0x879   : > { %2979 = vrcp.f32 %v2226_v31  ;;  %v2978_v19 = vpop.eup %2977  ;;  %v2239_v20 = vadd.f32 1.0, %v2976_v35 }
 0x87a   : > { %2981 = vrcp.f32 %v2232_v28 }
 0x87b   : > { %2983 = vrcp.f32 %v2239_v20 }
 0x883   : > { %v2980_v15 = vpop.eup %2979 }
 0x884   : > { %v2982_v12 = vpop.eup %2981  ;;  %v2243_v25 = vmul.f32 %v2980_v15, %v2978_v19 }
 0x885   : > { %v2242_v18 = vmul.f32 %v2982_v12, %v4202_v6  ;;  %v2984_v13 = vpop.eup %2983 }
 0x887   : > { %v4252_v41 = vadd.f32 %v2243_v25, %v2242_v18 }
 0x889   : > { %2985 = vtanh.f32 %v4252_v41 }
 0x893   : > { %v2986_v11 = vpop.eup %2985 }
 0x894   : > { %v2246_v43 = vmul.f32 %v2986_v11, %v2984_v13 }
 0x896   : > { %v2267_v55 = vpack.c.bf16 %v2246_v43, %v2246_v43 }
 0x898   : > { %2301 = vmatmul.mubr.bf16.vlgmr.msra.gmra.mrb[24].mxu0 %v2267_v55  ;;  %2342 = vmatmul.mubr.bf16.vlgmr.msra.gmra.mrb[24].mxu1 %v2267_v55 }
 0x899   : > { %2400 = vmatpush1.bf16.msra.mxu0 %v3766_v60  ;;  %2441 = vmatpush1.bf16.msra.mxu1 %v3779_v63 }
 0x89a   : > { %2401 = vmatprep.subr.bf16.mxu0 %v3770_v30  ;;  %2442 = vmatprep.subr.bf16.mxu1 %v3783_v38  ;;  %v4292_v30 = vld [vmem:[%s3961_s11] sm:$0xff]  ;;  %v4296_v38 = vld [vmem:[%s3970_s12 + $0x8] sm:$0xff] }
 0x89b   : > { %2431 = vmatprep.mubr.bf16.mxu0 %v4489_v3  ;;  %2472 = vmatprep.mubr.bf16.mxu1 %v4489_v3  ;;  %v4288_v3 = vld [vmem:[%s3970_s12] sm:$0xff]  ;;  %v2255_v63 = vrot.slane %v4292_v30, 5  ;;  %v2386_v19 = vrot.slane %v4292_v30, 6  ;;  %v2379_v15 = vrot.slane %v4296_v38, 7 }
 0x89c   : > { %v2247_v60 = vrot.slane %v4288_v3, 6  ;;  %v2378_v35 = vrot.slane %v4288_v3, 7 }
 0x89d   : > { %2402 = vmatpush1.bf16.msra.mxu0 %v3788_v42  ;;  %2443 = vmatpush1.bf16.msra.mxu1 %v3799_v58  ;;  %v2248_v42 = vrot.slane %v4296_v38, 6 }
 0x89e   : > { %2403 = vmatprep.subr.bf16.mxu0 %v3794_v59  ;;  %2444 = vmatprep.subr.bf16.mxu1 %v3804_v34  ;;  %v3022_v59 = vld [vmem:[%s3961_s11 + $0x8] sm:$0xff]  ;;  %v2394_v25 = vsel %vm754_vm3, %v2378_v35, %v2386_v19  ;;  %v4506_v19 = vld [vmem:[#allocation53_spill] sm:$0xff] (%p1283_p0) }
 0x89f   : > { %v2256_v58 = vrot.slane %v3022_v59, 5  ;;  %v2387_v12 = vrot.slane %v3022_v59, 6 }
 0x8a1   : > { %2404 = vmatpush1.bf16.msra.mxu0 %v3810_v36  ;;  %2445 = vmatpush1.bf16.msra.mxu1 %v3821_v49  ;;  %v2264_v34 = vsel %vm754_vm3, %v2248_v42, %v2256_v58  ;;  %v4303_v49 = vld [vmem:[%s3970_s12 + $0x18] sm:$0xff]  ;;  %v2395_v20 = vsel %vm754_vm3, %v2379_v15, %v2387_v12 }
 0x8a2   : > { %2405 = vmatprep.subr.bf16.mxu0 %v3816_v56  ;;  %2446 = vmatprep.subr.bf16.mxu1 %v3826_v33  ;;  %v2250_v33 = vrot.slane %v4303_v49, 6  ;;  %v2381_v43 = vrot.slane %v4303_v49, 7 }
 0x8a5   : > { %2406 = vmatpush1.bf16.msra.mxu0 %v3831_v8  ;;  %2447 = vmatpush1.bf16.msra.mxu1 %v3841_v61  ;;  %v4307_v8 = vld [vmem:[%s3961_s11 + $0x18] sm:$0xff] }
 0x8a6   : > { %2407 = vmatprep.subr.bf16.mxu0 %v3836_v46  ;;  %2448 = vmatprep.subr.bf16.mxu1 %v3846_v29  ;;  %v2258_v46 = vrot.slane %v4307_v8, 5  ;;  %v2389_v55 = vrot.slane %v4307_v8, 6 }
 0x8a9   : > { %2408 = vmatpush1.bf16.msra.mxu0 %v3851_v32  ;;  %2449 = vmatpush1.bf16.msra.mxu1 %v3861_v47 }
 0x8aa   : > { %2409 = vmatprep.subr.bf16.mxu0 %v3856_v57  ;;  %2450 = vmatprep.subr.bf16.mxu1 %v3866_v40 }
 0x8ad   : > { %2410 = vmatpush1.bf16.msra.mxu0 %v3871_v48  ;;  %2451 = vmatpush1.bf16.msra.mxu1 %v3881_v39  ;;  %v2266_v39 = vsel %vm754_vm3, %v2250_v33, %v2258_v46 }
 0x8ae   : > { %2411 = vmatprep.subr.bf16.mxu0 %v3876_v52  ;;  %2452 = vmatprep.subr.bf16.mxu1 %v3886_v44  ;;  %v3025_v44 = vld [vmem:[%s3970_s12 + $0x10] sm:$0xff] }
 0x8b1   : > { %2412 = vmatpush1.bf16.msra.mxu0 %v3891_v50  ;;  %2453 = vmatpush1.bf16.msra.mxu1 %v3901_v37  ;;  %v2249_v50 = vrot.slane %v3025_v44, 6 }
 0x8b2   : > { %2413 = vmatprep.subr.bf16.mxu0 %v3896_v54  ;;  %2454 = vmatprep.subr.bf16.mxu1 %v3906_v62  ;;  %v3026_v54 = vld [vmem:[%s3961_s11 + $0x10] sm:$0xff] }
 0x8b3   : > { %v2257_v37 = vrot.slane %v3026_v54, 5 }
 0x8b5   : > { %2414 = vmatpush1.bf16.msra.mxu0 %v3911_v0  ;;  %2455 = vmatpush1.bf16.msra.mxu1 %v3917_v1  ;;  %v2263_v0 = vsel %vm754_vm3, %v2247_v60, %v2255_v63  ;;  %v2265_v27 = vsel %vm754_vm3, %v2249_v50, %v2257_v37  ;;  %v4492_v37 = vld [vmem:[#allocation39_spill] sm:$0xff] (%p1283_p0) }
 0x96b   : > { %v2302_v1 = vpop.f32.mrb[24].mxu0  ;;  %v2343_v62 = vpop.f32.mrb[24].mxu1 }
 0x96c   : > { %v2350_v36 = vadd.f32 %v2302_v1, %v2263_v0  ;;  %v2304_v56 = vpop.f32.mrb[25].mxu0  ;;  %v2345_v61 = vpop.f32.mrb[25].mxu1  ;;  %v2352_v14 = vadd.f32 %v2343_v62, %v2265_v27  ;;  %v2397_v0 = vsel %vm754_vm3, %v2381_v43, %v2389_v55  ;;  %v2388_v1 = vrot.slane %v3026_v54, 6  ;;  %v4491_v54 = vld [vmem:[#allocation38_spill] sm:$0xff] (%p1283_p0) }
 0x96d   : > { %v2351_v29 = vadd.f32 %v2304_v56, %v2264_v34  ;;  %v2306_v32 = vpop.f32.mrb[26].mxu0  ;;  %v2347_v57 = vpop.f32.mrb[26].mxu1  ;;  %v2353_v6 = vadd.f32 %v2345_v61, %v2266_v39  ;;  %v2380_v34 = vrot.slane %v3025_v44, 7  ;;  %v3078_v27 = vmov (%p1283_p0), 0.0|0.0  }
 0x96e   : > { %v2745_v47 = vmul.f32 -1.442695, %v2350_v36  ;;  %v2307_v40 = vpop.f32.mrb[27].mxu0  ;;  %v2348_v48 = vpop.f32.mrb[27].mxu1  ;;  %2806 = vmatprep.subr.bf16.mxu0 (%p1283_p0), %v3078_v27 }
 0x96f   : > { %v2746_v52 = vmul.f32 -1.442695, %v2351_v29  ;;  %v2747_v5 = vmul.f32 -1.442695, %v2353_v6  ;;  %v2396_v36 = vsel %vm754_vm3, %v2380_v34, %v2388_v1  ;;  %v2807_v6 = vpack.c.bf16 (%p1283_p0), %v4492_v37, %v4491_v54 }
 0x970   : > { %2987 = vpow2.f32 %v2745_v47 }
 0x971   : > { %2989 = vpow2.f32 %v2746_v52 }
 0x972   : > { %2991 = vpow2.f32 %v2747_v5  ;;  %v4493_v5 = vld [vmem:[#allocation40_spill] sm:$0xff] (%p1283_p0) }
 0x973   : > { %2993 = vtanh.f32 %v2352_v14  ;;  %v4494_v14 = vld [vmem:[#allocation41_spill] sm:$0xff] (%p1283_p0) }
 0x97a   : > { %v2988_v2 = vpop.eup %2987 }
 0x97b   : > { %v2990_v26 = vpop.eup %2989  ;;  %v2357_v7 = vadd.f32 1.0, %v2988_v2  ;;  %v2810_v2 = vpack.c.bf16 (%p1283_p0), %v4494_v14, %v4493_v5 }
 0x97c   : > { %v2363_v23 = vadd.f32 1.0, %v2990_v26  ;;  %v2992_v51 = vpop.eup %2991  ;;  %v3080_v26 = vmov (%p1283_p0), 0.0  }
 0x97d   : > { %2995 = vrcp.f32 %v2357_v7  ;;  %v2994_v21 = vpop.eup %2993  ;;  %v2370_v17 = vadd.f32 1.0, %v2992_v51  ;;  %v4495_v7 = vld [vmem:[#allocation42_spill] sm:$0xff] (%p1283_p0) }
 0x97e   : > { %2997 = vrcp.f32 %v2363_v23  ;;  %v4496_v23 = vld [vmem:[#allocation43_spill] sm:$0xff] (%p1283_p0) }
 0x97f   : > { %2999 = vrcp.f32 %v2370_v17 }
 0x987   : > { %v2996_v24 = vpop.eup %2995 }
 0x988   : > { %v2998_v4 = vpop.eup %2997  ;;  %v2374_v22 = vmul.f32 %v2996_v24, %v2994_v21  ;;  %v4497_v21 = vld [vmem:[#allocation44_spill] sm:$0xff] (%p1283_p0) }
 0x989   : > { %v2373_v9 = vmul.f32 %v2998_v4, %v4252_v41  ;;  %v3000_v10 = vpop.eup %2999  ;;  %v2816_v24 = vpack.c.bf16 (%p1283_p0), %v4498_v53, %v4497_v21  ;;  %v4499_v4 = vld [vmem:[#allocation46_spill] sm:$0xff] (%p1283_p0) }
 0x98b   : > { %v2375_v45 = vadd.f32 %v2374_v22, %v2373_v9  ;;  %v4500_v22 = vld [vmem:[#allocation47_spill] sm:$0xff] (%p1283_p0)  ;;  %v4501_v9 = vld [vmem:[#allocation48_spill] sm:$0xff] (%p1283_p0) }
 0x98c   :  { %v2819_v17 = vpack.c.bf16 (%p1283_p0), %v4500_v22, %v4499_v4 }
 0x98d   : > { %3001 = vtanh.f32 %v2375_v45 }
 0x997   : > { %v3002_v16 = vpop.eup %3001 }
 0x998   : > { %v2377_v31 = vmul.f32 %v3002_v16, %v3000_v10  ;;  %v4503_v16 = vld [vmem:[#allocation50_spill] sm:$0xff] (%p1283_p0) }
 0x99a   : > { %v2398_v28 = vpack.c.bf16 %v2377_v31, %v2377_v31  ;;  %v4504_v31 = vld [vmem:[#allocation51_spill] sm:$0xff] (%p1283_p0) }
 0x99c   : > { %2432 = vmatmul.mubr.bf16.vlgmr.msra.gmra.mrb[28].mxu0 %v2398_v28  ;;  %2473 = vmatmul.mubr.bf16.vlgmr.msra.gmra.mrb[28].mxu1 %v2398_v28  ;;  %v2825_v28 = vpack.c.bf16 (%p1283_p0), %v4504_v31, %v4503_v16 }
 0x99d   :  { %2808 = vmatpush3.bf16.msra.mxu0 (%p1283_p0), %v2807_v6  ;;  %2803 = vmatprep.mubr.msk.f32.mxu0 (%p1283_p0), %vm3079_vm5, %v3080_v26 }
 0x99e   :  { %2809 = vmatprep.subr.bf16.mxu0 (%p1283_p0), %v3078_v27 }
 0x9a1   :  { %2811 = vmatpush3.bf16.msra.mxu0 (%p1283_p0), %v2810_v2 }
 0x9a2   :  { %2812 = vmatprep.subr.bf16.mxu0 (%p1283_p0), %v3078_v27 }
 0xa6f   : > { %v2433_v18 = vpop.f32.mrb[28].mxu0  ;;  %v2474_v41 = vpop.f32.mrb[28].mxu1 }
 0xa70   : > { %v2481_v13 = vadd.f32 %v2433_v18, %v2394_v25  ;;  %v2435_v11 = vpop.f32.mrb[29].mxu0  ;;  %v2476_v60 = vpop.f32.mrb[29].mxu1  ;;  %v2483_v49 = vadd.f32 %v2474_v41, %v2396_v36  ;;  %v4507_v25 = vld [vmem:[#allocation54_spill] sm:$0xff] (%p1283_p0) }
 0xa71   : > { %v2482_v63 = vadd.f32 %v2435_v11, %v2395_v20  ;;  %v2437_v3 = vpop.f32.mrb[30].mxu0  ;;  %v2478_v42 = vpop.f32.mrb[30].mxu1  ;;  %v2484_v62 = vadd.f32 %v2476_v60, %v2397_v0 }
 0xa72   : > { %v2748_v30 = vmul.f32 -1.442695, %v2481_v13  ;;  %v2438_v58 = vpop.f32.mrb[31].mxu0  ;;  %v2479_v38 = vpop.f32.mrb[31].mxu1 }
 0xa73   : > { %v2749_v59 = vmul.f32 -1.442695, %v2482_v63  ;;  %v2750_v56 = vmul.f32 -1.442695, %v2484_v62 }
 0xa74   : > { %3003 = vpow2.f32 %v2748_v30 }
 0xa75   : > { %3005 = vpow2.f32 %v2749_v59 }
 0xa76   : > { %3007 = vpow2.f32 %v2750_v56 }
 0xa77   : > { %3009 = vtanh.f32 %v2483_v49 }
 0xa7e   : > { %v3004_v33 = vpop.eup %3003 }
 0xa7f   : > { %v3006_v8 = vpop.eup %3005  ;;  %v2488_v46 = vadd.f32 1.0, %v3004_v33 }
 0xa80   : > { %v2494_v61 = vadd.f32 1.0, %v3006_v8  ;;  %v3008_v29 = vpop.eup %3007 }
 0xa81   : > { %3011 = vrcp.f32 %v2488_v46  ;;  %v3010_v32 = vpop.eup %3009  ;;  %v2501_v48 = vadd.f32 1.0, %v3008_v29 }
 0xa82   : > { %3013 = vrcp.f32 %v2494_v61 }
 0xa83   : > { %3015 = vrcp.f32 %v2501_v48 }
 0xa8b   : > { %v3012_v57 = vpop.eup %3011 }
 0xa8c   : > { %v3014_v47 = vpop.eup %3013  ;;  %v2505_v40 = vmul.f32 %v3012_v57, %v3010_v32 }
 0xa8d   : > { %v2504_v52 = vmul.f32 %v3014_v47, %v2375_v45  ;;  %v3016_v39 = vpop.eup %3015  ;;  %v4502_v45 = vld [vmem:[#allocation49_spill] sm:$0xff] (%p1283_p0) }
 0xa8e   :  { %v2822_v10 = vpack.c.bf16 (%p1283_p0), %v4502_v45, %v4501_v9 }
 0xa8f   : > { %v2506_v35 = vadd.f32 %v2505_v40, %v2504_v52  }
 0xa91   : > { %3017 = vtanh.f32 %v2506_v35  ;;  %v4505_v35 = vld [vmem:[#allocation52_spill] sm:$0xff] (%p1283_p0) }
 0xa92   :  { %v2828_v15 = vpack.c.bf16 (%p1283_p0), %v4506_v19, %v4505_v35 }
 0xa98   :  { %1285 = sbr.rel (!%p1283_p0) target bundleno = 596 (0x254), region = 61 }
 0xa9b   : > { %v3018_v44 = vpop.eup %3017 }
 0xa9c   : > { %v2508_v50 = vmul.f32 %v3018_v44, %v3016_v39  }
 0xa9e   : > { %v4490_v51 = vmov %v2508_v50 }
 0xa9f   :  { %v2813_v51 = vpack.c.bf16 %v4496_v23, %v4495_v7 }
 0xaa1   :  { %2814 = vmatpush3.bf16.msra.mxu0 %v2813_v51 }
 0xaa2   :  { %2815 = vmatprep.subr.bf16.mxu0 %v3078_v27 }
 0xaa5   :  { %2817 = vmatpush3.bf16.msra.mxu0 %v2816_v24 }
 0xaa6   :  { %2818 = vmatprep.subr.bf16.mxu0 %v3078_v27 }
 0xaa9   :  { %2820 = vmatpush3.bf16.msra.mxu0 %v2819_v17 }
 0xaaa   :  { %2821 = vmatprep.subr.bf16.mxu0 %v3078_v27 }
 0xaad   :  { %2823 = vmatpush3.bf16.msra.mxu0 %v2822_v10 }
 0xaae   :  { %2824 = vmatprep.subr.bf16.mxu0 %v3078_v27 }
 0xab1   :  { %2826 = vmatpush3.bf16.msra.mxu0 %v2825_v28 }
 0xab2   :  { %2827 = vmatprep.subr.bf16.mxu0 %v3078_v27 }
 0xab5   :  { %2829 = vmatpush3.bf16.msra.mxu0 %v2828_v15 }
 0xab8   :  { %2804 = vmatmul.mubr.f32.vlgmr.msra.gmra.mrb[0].mxu0 %v2508_v50 }
 0xb8b   :  { %v2581_v12 = vpop.f32.mrb[0].mxu0 }
 0xb8c   :  { %v2582_v20 = vadd.f32 %v4507_v25, %v2581_v12  ;;  %v2805_v18 = vpop.f32.mrb[1].mxu0 }
 0xb8e   :  { %2586 = vst.msk [vmem:[#allocation3] sm:$0x3] %vm2585_vm6, %v2582_v20 }
 0xb8f   :  { %3038 = shalt.err (!%p3035_p5)
}
 0xb90   :  { %s3039_s18 = scalar_lea.hbm %s4368_s8, 32 }
 0xb91   :  { %p3040_p6 = scmp.ne.s32.totalorder %s4368_s8, %s3039_s18  ;;  %p3043_p7 = scmp.lt.u32.totalorder %s3039_s18, %s4368_s8 }
 0xb93   :  { %p3045_p8 = pnand %p3043_p7, %p3040_p6 }
 0xb95   :  { %3048 = shalt.err (!%p3045_p8)
}
 0xb96   :  { %2596 = dma.vmem_to_hbm [thread:$0]  %s2594_s14, 32, %s4368_s8, [#allocation4]  }
 0xb97   :  { %3061 = dma.done.wait [#allocation4], 32  }
 0xb98   :  { %3062 = vsyncadd [#allocation4], 4294967264 }
 0xb99   :  { %2600 = vsyncpa [#allocation4], 1 }

</bundles_post_ra>
